<compile_context>
chip_gen: v7x
topology: tpu7x:2x2x1
jax: 0.10.0
libtpu: 0.0.40
codegen_flags: <defaults>
</compile_context>

<pallas_src>
import functools
import math

import jax
import jax.numpy as jnp
from jax.experimental import pallas as pl
from jax.experimental.pallas import tpu as pltpu

F32 = jnp.float32
BF16 = jnp.bfloat16


def _row_tile(m):
    """Whole-M single step when small; otherwise MXU-friendly row tiles that divide M."""
    if m <= 512:
        return m
    for t in (512, 256, 128, 64, 8):
        if m % t == 0:
            return t
    return m


# --------------------------------------------------------------------------- #
# Fused Pallas kernels
# --------------------------------------------------------------------------- #
def _mha_ln_kernel(xq_ref, xkv_ref, wqkv_ref, bqkv_ref, wo_ref, bo_ref,
                   g_ref, beta_ref, o_ref, *, n_heads, dim_k, scale, fused_qkv):
    """MultiHeadedAttention + residual + LayerNorm for one batch element."""
    N = n_heads * dim_k
    xq = xq_ref[0]                                     # [Sq, D] f32
    wqkv = wqkv_ref[...]                               # [D, 3N] bf16
    bqkv = bqkv_ref[...]                               # [1, 3N] f32

    if fused_qkv:
        # self-attention: one [Sq, D] x [D, 3N] MXU pass produces Q|K|V.
        qkv = jnp.dot(xq.astype(BF16), wqkv, preferred_element_type=F32) + bqkv
        q, k, v = qkv[:, :N], qkv[:, N:2 * N], qkv[:, 2 * N:]
    else:
        # cross-attention: Q from target, K|V from memory in one fused matmul.
        xkv = xkv_ref[0]                               # [Sk, D] f32
        q = jnp.dot(xq.astype(BF16), wqkv[:, :N],
                    preferred_element_type=F32) + bqkv[:, :N]
        kv = jnp.dot(xkv.astype(BF16), wqkv[:, N:],
                     preferred_element_type=F32) + bqkv[:, N:]
        k, v = kv[:, :N], kv[:, N:]

    qb, kb, vb = q.astype(BF16), k.astype(BF16), v.astype(BF16)
    heads = []
    for h in range(n_heads):                           # static unroll; all in VMEM/vregs
        sl = slice(h * dim_k, (h + 1) * dim_k)
        s = jax.lax.dot_general(qb[:, sl], kb[:, sl], (((1,), (1,)), ((), ())),
                                preferred_element_type=F32) * scale      # [Sq, Sk]
        m = jnp.max(s, axis=-1, keepdims=True)
        e = jnp.exp(s - m)
        p = e * pl.reciprocal(jnp.sum(e, axis=-1, keepdims=True), approx=True)
        heads.append(jnp.dot(p.astype(BF16), vb[:, sl],
                             preferred_element_type=F32))                # [Sq, dk]
    attn = jnp.concatenate(heads, axis=-1)                               # [Sq, N]

    out = jnp.dot(attn.astype(BF16), wo_ref[...],
                  preferred_element_type=F32) + bo_ref[...]              # [Sq, D]
    z = xq + out                                                         # residual (f32)
    mu = jnp.mean(z, axis=-1, keepdims=True)
    var = jnp.mean((z - mu) ** 2, axis=-1, keepdims=True)
    o_ref[0] = (z - mu) * jax.lax.rsqrt(var + 1e-5) * g_ref[...] + beta_ref[...]


def mha_ln_block(x_q, x_kv, ap, gamma, beta, *, n_heads, dim_k, fused_qkv):
    B, Sq, D = x_q.shape
    Sk = x_kv.shape[1]
    N = n_heads * dim_k
    kernel = functools.partial(_mha_ln_kernel, n_heads=n_heads, dim_k=dim_k,
                               scale=1.0 / math.sqrt(dim_k), fused_qkv=fused_qkv)
    return pl.pallas_call(
        kernel,
        out_shape=jax.ShapeDtypeStruct((B, Sq, D), F32),
        grid=(B,),
        in_specs=[
            pl.BlockSpec((1, Sq, D), lambda b: (b, 0, 0)),
            pl.BlockSpec((1, Sk, D), lambda b: (b, 0, 0)),
            pl.BlockSpec((D, 3 * N), lambda b: (0, 0)),
            pl.BlockSpec((1, 3 * N), lambda b: (0, 0)),
            pl.BlockSpec((N, D), lambda b: (0, 0)),
            pl.BlockSpec((1, D), lambda b: (0, 0)),
            pl.BlockSpec((1, D), lambda b: (0, 0)),
            pl.BlockSpec((1, D), lambda b: (0, 0)),
        ],
        out_specs=pl.BlockSpec((1, Sq, D), lambda b: (b, 0, 0)),
        compiler_params=pltpu.CompilerParams(dimension_semantics=("parallel",)),
    )(x_q, x_kv, ap["wqkv"], ap["bqkv"], ap["wo"], ap["bo"], gamma, beta)


def _ffn_ln_kernel(x_ref, w1_ref, b1_ref, w2_ref, b2_ref, g_ref, beta_ref, o_ref):
    """Linear+ReLU+Linear + residual + LayerNorm, fused."""
    x = x_ref[...]                                     # [TM, D] f32
    h = jnp.dot(x.astype(BF16), w1_ref[...], preferred_element_type=F32) + b1_ref[...]
    h = jnp.maximum(h, 0.0)
    y = jnp.dot(h.astype(BF16), w2_ref[...], preferred_element_type=F32) + b2_ref[...]
    z = x + y
    mu = jnp.mean(z, axis=-1, keepdims=True)
    var = jnp.mean((z - mu) ** 2, axis=-1, keepdims=True)
    o_ref[...] = (z - mu) * jax.lax.rsqrt(var + 1e-5) * g_ref[...] + beta_ref[...]


def ffn_ln_block(x, w1, b1, w2, b2, gamma, beta):
    B, S, D = x.shape
    M = B * S
    FF = w1.shape[1]
    tm = _row_tile(M)                                  # whole M in one step when it fits
    out = pl.pallas_call(
        _ffn_ln_kernel,
        out_shape=jax.ShapeDtypeStruct((M, D), F32),
        grid=(M // tm,),
        in_specs=[
            pl.BlockSpec((tm, D), lambda i: (i, 0)),
            pl.BlockSpec((D, FF), lambda i: (0, 0)),
            pl.BlockSpec((1, FF), lambda i: (0, 0)),
            pl.BlockSpec((FF, D), lambda i: (0, 0)),
            pl.BlockSpec((1, D), lambda i: (0, 0)),
            pl.BlockSpec((1, D), lambda i: (0, 0)),
            pl.BlockSpec((1, D), lambda i: (0, 0)),
        ],
        out_specs=pl.BlockSpec((tm, D), lambda i: (i, 0)),
        compiler_params=pltpu.CompilerParams(dimension_semantics=("parallel",)),
    )(x.reshape(M, D), w1, b1, w2, b2, gamma, beta)
    return out.reshape(B, S, D)


def _final_kernel(x_ref, w_ref, b_ref, o_ref, *, batch, seq):
    """Final Linear fused with softmax over the sequence axis (torch dim=1)."""
    x = x_ref[...]                                     # [B*S, D] f32
    y = jnp.dot(x.astype(BF16), w_ref[...], preferred_element_type=F32) + b_ref[...]
    for b in range(batch):                             # static unroll over batch
        yb = y[b * seq:(b + 1) * seq, :]               # [S, Dout]
        m = jnp.max(yb, axis=0, keepdims=True)
        e = jnp.exp(yb - m)
        denom = jnp.sum(e, axis=0, keepdims=True)
        # exact divide so every column sums to 1.0 at f32 precision
        o_ref[b * seq:(b + 1) * seq, :] = e / denom


def final_block(x, wf, bias):
    B, S, D = x.shape
    Dout = wf.shape[1]
    M = B * S
    kernel = functools.partial(_final_kernel, batch=B, seq=S)
    out = pl.pallas_call(
        kernel,
        out_shape=jax.ShapeDtypeStruct((M, Dout), F32),
        grid=(1,),
        in_specs=[
            pl.BlockSpec((M, D), lambda i: (0, 0)),
            pl.BlockSpec((D, Dout), lambda i: (0, 0)),
            pl.BlockSpec((1, Dout), lambda i: (0, 0)),
        ],
        out_specs=pl.BlockSpec((M, Dout), lambda i: (0, 0)),
        compiler_params=pltpu.CompilerParams(dimension_semantics=("arbitrary",)),
    )(x.reshape(M, D), wf, bias)
    return out.reshape(B, S, Dout)


# --------------------------------------------------------------------------- #
# Model glue (plain JAX, all under one jit)
# --------------------------------------------------------------------------- #
def position_encoding(seq_len, dims):
    pos = jnp.arange(seq_len, dtype=F32).reshape(1, seq_len, 1)
    dim = jnp.arange(dims, dtype=F32).reshape(1, 1, dims)
    phase = pos / (1e4 ** (dim / dims))
    even = (jnp.arange(dims).reshape(1, 1, dims) % 2) == 0
    return jnp.where(even, jnp.sin(phase), jnp.cos(phase))


def transformer_decoder(target, memory, kp, pos_enc, *, n_heads, dim_k):
    x = target + pos_enc                               # pos_enc is a hoisted constant
    for lp in kp["layers"]:
        x = mha_ln_block(x, x, lp["attn1"], lp["ln1_g"], lp["ln1_b"],
                         n_heads=n_heads, dim_k=dim_k, fused_qkv=True)
        x = mha_ln_block(x, memory, lp["attn2"], lp["ln2_g"], lp["ln2_b"],
                         n_heads=n_heads, dim_k=dim_k, fused_qkv=False)
        x = ffn_ln_block(x, lp["w1"], lp["b1"], lp["w2"], lp["b2"],
                         lp["ln3_g"], lp["ln3_b"])
    return final_block(x, kp["wf"], kp["bf"])


# --------------------------------------------------------------------------- #
# Parameters (deterministic synthetic init) + kernel-side prep
# --------------------------------------------------------------------------- #
def init_params(key, num_layers, D, H, FF):
    dk = max(D // H, 1)
    ki = iter(jax.random.split(key, 256))

    def w(shape, scale=0.05):
        return jax.random.normal(next(ki), shape, F32) * scale

    def attn():
        return {
            "n_heads": H, "dim_k": dk,
            "wq": w((D, H * dk)), "bq": w((H * dk,)),
            "wk": w((D, H * dk)), "bk": w((H * dk,)),
            "wv": w((D, H * dk)), "bv": w((H * dk,)),
            "wo": w((H * dk, D)), "bo": w((D,)),
        }

    layers = []
    for _ in range(num_layers):
        layers.append({
            "attn1": attn(), "ln1_g": jnp.ones((D,), F32), "ln1_b": jnp.zeros((D,), F32),
            "attn2": attn(), "ln2_g": jnp.ones((D,), F32), "ln2_b": jnp.zeros((D,), F32),
            "w1": w((D, FF)), "b1": w((FF,)),
            "w2": w((FF, D)), "b2": w((D,)),
            "ln3_g": jnp.ones((D,), F32), "ln3_b": jnp.zeros((D,), F32),
        })
    return {"layers": layers, "wf": w((D, D)), "bf": w((D,))}


def prep_params(params):
    """Kernel-side params: Q|K|V weights concatenated, matmul weights in bf16
    (halves weight DMA bytes; MXU accumulates in f32), biases/LN params as [1,N] f32."""
    def attn(a):
        return {
            "wqkv": jnp.concatenate([a["wq"], a["wk"], a["wv"]], axis=1).astype(BF16),
            "bqkv": jnp.concatenate([a["bq"], a["bk"], a["bv"]])[None, :].astype(F32),
            "wo": a["wo"].astype(BF16), "bo": a["bo"][None, :].astype(F32),
        }

    layers = []
    for lp in params["layers"]:
        layers.append({
            "attn1": attn(lp["attn1"]),
            "ln1_g": lp["ln1_g"][None, :], "ln1_b": lp["ln1_b"][None, :],
            "attn2": attn(lp["attn2"]),
            "ln2_g": lp["ln2_g"][None, :], "ln2_b": lp["ln2_b"][None, :],
            "w1": lp["w1"].astype(BF16), "b1": lp["b1"][None, :],
            "w2": lp["w2"].astype(BF16), "b2": lp["b2"][None, :],
            "ln3_g": lp["ln3_g"][None, :], "ln3_b": lp["ln3_b"][None, :],
        })
    return {"layers": layers, "wf": params["wf"].astype(BF16),
            "bf": params["bf"][None, :]}


# --------------------------------------------------------------------------- #
# Pure-JAX reference (mirrors the kernels' bf16-operand / f32-accumulate math)
# --------------------------------------------------------------------------- #
def _bf16_matmul(x, w):
    return jnp.dot(x.astype(BF16), w.astype(BF16), preferred_element_type=F32)


def _ref_ln(z, g, b):
    mu = jnp.mean(z, axis=-1, keepdims=True)
    var = jnp.mean((z - mu) ** 2, axis=-1, keepdims=True)
    return (z - mu) * jax.lax.rsqrt(var + 1e-5) * g + b


def _ref_mha(x_q, x_kv, a):
    H, dk = a["n_heads"], a["dim_k"]
    q = _bf16_matmul(x_q, a["wq"]) + a["bq"]
    k = _bf16_matmul(x_kv, a["wk"]) + a["bk"]
    v = _bf16_matmul(x_kv, a["wv"]) + a["bv"]
    B, Sq, _ = q.shape
    Sk = k.shape[1]
    qh = q.reshape(B, Sq, H, dk).astype(BF16)
    kh = k.reshape(B, Sk, H, dk).astype(BF16)
    vh = v.reshape(B, Sk, H, dk).astype(BF16)
    s = jnp.einsum("bqhd,bkhd->bhqk", qh, kh,
                   preferred_element_type=F32) * (1.0 / math.sqrt(dk))
    p = jax.nn.softmax(s, axis=-1)
    o = jnp.einsum("bhqk,bkhd->bqhd", p.astype(BF16), vh, preferred_element_type=F32)
    o = o.reshape(B, Sq, H * dk)
    return _bf16_matmul(o, a["wo"]) + a["bo"]


def ref_decoder(target, memory, params, pos_enc):
    x = target + pos_enc
    for lp in params["layers"]:
        x = _ref_ln(x + _ref_mha(x, x, lp["attn1"]), lp["ln1_g"], lp["ln1_b"])
        x = _ref_ln(x + _ref_mha(x, memory, lp["attn2"]), lp["ln2_g"], lp["ln2_b"])
        h = jnp.maximum(_bf16_matmul(x, lp["w1"]) + lp["b1"], 0.0)
        h = _bf16_matmul(h, lp["w2"]) + lp["b2"]
        x = _ref_ln(x + h, lp["ln3_g"], lp["ln3_b"])
    out = _bf16_matmul(x, params["wf"]) + params["bf"]
    return jax.nn.softmax(out, axis=1)


# --------------------------------------------------------------------------- #
if __name__ == "__main__":
    B, S, SM, D, H, FF, L = 2, 8, 8, 64, 4, 128, 2
    dk = max(D // H, 1)
    key = jax.random.PRNGKey(0)
    k1, k2, k3 = jax.random.split(key, 3)
    target = jax.random.normal(k1, (B, S, D), F32)
    memory = jax.random.normal(k2, (B, SM, D), F32)
    params = init_params(k3, L, D, H, FF)
    kparams = prep_params(params)
    pos_enc = position_encoding(S, D)                  # computed once (hoisted constant)

    fwd = jax.jit(functools.partial(transformer_decoder, n_heads=H, dim_k=dk))
    out = jax.block_until_ready(fwd(target, memory, kparams, pos_enc))

    assert out.shape == (B, S, D)
    assert bool(jnp.all(jnp.isfinite(out)))
    # torch.softmax(..., dim=1): columns sum to 1 along the sequence axis.
    assert bool(jnp.allclose(jnp.sum(out, axis=1), 1.0, atol=1e-3))

    ref = ref_decoder(target, memory, params, pos_enc)
    err = float(jnp.max(jnp.abs(out - ref)))
    assert err < 2e-3, f"max abs error vs reference: {err}"

    print("KERNEL_OK")
</pallas_src>

<mosaic_0001>
module attributes {stable_mosaic.version = 11 : i64} {
  func.func @_mha_ln_kernel(%arg0: i32, %arg1: memref<1x8x64xf32, #tpu.memory_space<vmem>>, %arg2: memref<1x8x64xf32, #tpu.memory_space<vmem>>, %arg3: memref<64x192xbf16, #tpu.memory_space<vmem>>, %arg4: memref<1x192xf32, #tpu.memory_space<vmem>>, %arg5: memref<64x64xbf16, #tpu.memory_space<vmem>>, %arg6: memref<1x64xf32, #tpu.memory_space<vmem>>, %arg7: memref<1x64xf32, #tpu.memory_space<vmem>>, %arg8: memref<1x64xf32, #tpu.memory_space<vmem>>, %arg9: memref<1x8x64xf32, #tpu.memory_space<vmem>>) attributes {dimension_semantics = [#tpu.dimension_semantics<parallel>], iteration_bounds = array<i64: 2>, scalar_prefetch = 0 : i64, scratch_operands = 0 : i64, tpu.core_type = #tpu.core_type<tc>, window_params = [{transform_indices = @transform_0, window_bounds = array<i64: 1, 8, 64>}, {transform_indices = @transform_1, window_bounds = array<i64: 1, 8, 64>}, {pipeline_mode = #tpu.pipeline_mode<synchronous>, transform_indices = @transform_2, window_bounds = array<i64: 64, 192>}, {pipeline_mode = #tpu.pipeline_mode<synchronous>, transform_indices = @transform_3, window_bounds = array<i64: 1, 192>}, {pipeline_mode = #tpu.pipeline_mode<synchronous>, transform_indices = @transform_4, window_bounds = array<i64: 64, 64>}, {pipeline_mode = #tpu.pipeline_mode<synchronous>, transform_indices = @transform_5, window_bounds = array<i64: 1, 64>}, {pipeline_mode = #tpu.pipeline_mode<synchronous>, transform_indices = @transform_6, window_bounds = array<i64: 1, 64>}, {pipeline_mode = #tpu.pipeline_mode<synchronous>, transform_indices = @transform_7, window_bounds = array<i64: 1, 64>}, {transform_indices = @transform_8, window_bounds = array<i64: 1, 8, 64>}]} {
    %c0 = arith.constant 0 : index
    %c0_0 = arith.constant 0 : index
    %c0_1 = arith.constant 0 : index
    %0 = vector.load %arg1[%c0, %c0_0, %c0_1] : memref<1x8x64xf32, #tpu.memory_space<vmem>>, vector<1x8x64xf32>
    %1 = vector.shape_cast %0 : vector<1x8x64xf32> to vector<8x64xf32>
    %c0_2 = arith.constant 0 : index
    %c0_3 = arith.constant 0 : index
    %2 = vector.load %arg3[%c0_2, %c0_3] : memref<64x192xbf16, #tpu.memory_space<vmem>>, vector<64x192xbf16>
    %c0_4 = arith.constant 0 : index
    %c0_5 = arith.constant 0 : index
    %3 = vector.load %arg4[%c0_4, %c0_5] : memref<1x192xf32, #tpu.memory_space<vmem>>, vector<1x192xf32>
    %4 = arith.truncf %1 : vector<8x64xf32> to vector<8x64xbf16>
    %cst = arith.constant dense<0.000000e+00> : vector<8x192xf32>
    %5 = tpu.matmul %4, %2, %cst {dimension_numbers = #tpu.dot_dimension_numbers<[1], [0], [0], [1], [0, 0, 1, 1], [], []>} : vector<8x64xbf16>, vector<64x192xbf16>, vector<8x192xf32> -> vector<8x192xf32>
    %6 = vector.broadcast %3 : vector<1x192xf32> to vector<8x192xf32>
    %7 = arith.addf %5, %6 : vector<8x192xf32>
    %8 = vector.extract_strided_slice %7 {offsets = [0, 0], sizes = [8, 64], strides = [1, 1]} : vector<8x192xf32> to vector<8x64xf32>
    %9 = vector.extract_strided_slice %7 {offsets = [0, 64], sizes = [8, 64], strides = [1, 1]} : vector<8x192xf32> to vector<8x64xf32>
    %10 = vector.extract_strided_slice %7 {offsets = [0, 128], sizes = [8, 64], strides = [1, 1]} : vector<8x192xf32> to vector<8x64xf32>
    %11 = arith.truncf %8 : vector<8x64xf32> to vector<8x64xbf16>
    %12 = arith.truncf %9 : vector<8x64xf32> to vector<8x64xbf16>
    %13 = arith.truncf %10 : vector<8x64xf32> to vector<8x64xbf16>
    %14 = vector.extract_strided_slice %11 {offsets = [0, 0], sizes = [8, 16], strides = [1, 1]} : vector<8x64xbf16> to vector<8x16xbf16>
    %15 = vector.extract_strided_slice %12 {offsets = [0, 0], sizes = [8, 16], strides = [1, 1]} : vector<8x64xbf16> to vector<8x16xbf16>
    %cst_6 = arith.constant dense<0.000000e+00> : vector<8x8xf32>
    %16 = tpu.matmul %14, %15, %cst_6 {dimension_numbers = #tpu.dot_dimension_numbers<[1], [1], [0], [0], [0, 0, 1, 0], [], []>} : vector<8x16xbf16>, vector<8x16xbf16>, vector<8x8xf32> -> vector<8x8xf32>
    %cst_7 = arith.constant 2.500000e-01 : f32
    %17 = vector.broadcast %cst_7 : f32 to vector<8x8xf32>
    %18 = arith.mulf %16, %17 : vector<8x8xf32>
    %cst_8 = arith.constant dense<0xFF800000> : vector<8xf32>
    %19 = vector.multi_reduction <maximumf>, %18, %cst_8 [1] : vector<8x8xf32> to vector<8xf32>
    %20 = vector.shape_cast %19 : vector<8xf32> to vector<8x1xf32>
    %21 = vector.broadcast %20 : vector<8x1xf32> to vector<8x8xf32>
    %22 = arith.subf %18, %21 : vector<8x8xf32>
    %23 = math.exp %22 : vector<8x8xf32>
    %cst_9 = arith.constant dense<0.000000e+00> : vector<8xf32>
    %24 = vector.multi_reduction <add>, %23, %cst_9 [1] : vector<8x8xf32> to vector<8xf32>
    %25 = vector.shape_cast %24 : vector<8xf32> to vector<8x1xf32>
    %26 = tpu.reciprocal %25 {approx = true} : vector<8x1xf32> -> vector<8x1xf32>
    %27 = vector.broadcast %26 : vector<8x1xf32> to vector<8x8xf32>
    %28 = arith.mulf %23, %27 : vector<8x8xf32>
    %29 = arith.truncf %28 : vector<8x8xf32> to vector<8x8xbf16>
    %30 = vector.extract_strided_slice %13 {offsets = [0, 0], sizes = [8, 16], strides = [1, 1]} : vector<8x64xbf16> to vector<8x16xbf16>
    %cst_10 = arith.constant dense<0.000000e+00> : vector<8x16xf32>
    %31 = tpu.matmul %29, %30, %cst_10 {dimension_numbers = #tpu.dot_dimension_numbers<[1], [0], [0], [1], [0, 0, 1, 1], [], []>} : vector<8x8xbf16>, vector<8x16xbf16>, vector<8x16xf32> -> vector<8x16xf32>
    %32 = vector.extract_strided_slice %11 {offsets = [0, 16], sizes = [8, 16], strides = [1, 1]} : vector<8x64xbf16> to vector<8x16xbf16>
    %33 = vector.extract_strided_slice %12 {offsets = [0, 16], sizes = [8, 16], strides = [1, 1]} : vector<8x64xbf16> to vector<8x16xbf16>
    %cst_11 = arith.constant dense<0.000000e+00> : vector<8x8xf32>
    %34 = tpu.matmul %32, %33, %cst_11 {dimension_numbers = #tpu.dot_dimension_numbers<[1], [1], [0], [0], [0, 0, 1, 0], [], []>} : vector<8x16xbf16>, vector<8x16xbf16>, vector<8x8xf32> -> vector<8x8xf32>
    %cst_12 = arith.constant 2.500000e-01 : f32
    %35 = vector.broadcast %cst_12 : f32 to vector<8x8xf32>
    %36 = arith.mulf %34, %35 : vector<8x8xf32>
    %cst_13 = arith.constant dense<0xFF800000> : vector<8xf32>
    %37 = vector.multi_reduction <maximumf>, %36, %cst_13 [1] : vector<8x8xf32> to vector<8xf32>
    %38 = vector.shape_cast %37 : vector<8xf32> to vector<8x1xf32>
    %39 = vector.broadcast %38 : vector<8x1xf32> to vector<8x8xf32>
    %40 = arith.subf %36, %39 : vector<8x8xf32>
    %41 = math.exp %40 : vector<8x8xf32>
    %cst_14 = arith.constant dense<0.000000e+00> : vector<8xf32>
    %42 = vector.multi_reduction <add>, %41, %cst_14 [1] : vector<8x8xf32> to vector<8xf32>
    %43 = vector.shape_cast %42 : vector<8xf32> to vector<8x1xf32>
    %44 = tpu.reciprocal %43 {approx = true} : vector<8x1xf32> -> vector<8x1xf32>
    %45 = vector.broadcast %44 : vector<8x1xf32> to vector<8x8xf32>
    %46 = arith.mulf %41, %45 : vector<8x8xf32>
    %47 = arith.truncf %46 : vector<8x8xf32> to vector<8x8xbf16>
    %48 = vector.extract_strided_slice %13 {offsets = [0, 16], sizes = [8, 16], strides = [1, 1]} : vector<8x64xbf16> to vector<8x16xbf16>
    %cst_15 = arith.constant dense<0.000000e+00> : vector<8x16xf32>
    %49 = tpu.matmul %47, %48, %cst_15 {dimension_numbers = #tpu.dot_dimension_numbers<[1], [0], [0], [1], [0, 0, 1, 1], [], []>} : vector<8x8xbf16>, vector<8x16xbf16>, vector<8x16xf32> -> vector<8x16xf32>
    %50 = vector.extract_strided_slice %11 {offsets = [0, 32], sizes = [8, 16], strides = [1, 1]} : vector<8x64xbf16> to vector<8x16xbf16>
    %51 = vector.extract_strided_slice %12 {offsets = [0, 32], sizes = [8, 16], strides = [1, 1]} : vector<8x64xbf16> to vector<8x16xbf16>
    %cst_16 = arith.constant dense<0.000000e+00> : vector<8x8xf32>
    %52 = tpu.matmul %50, %51, %cst_16 {dimension_numbers = #tpu.dot_dimension_numbers<[1], [1], [0], [0], [0, 0, 1, 0], [], []>} : vector<8x16xbf16>, vector<8x16xbf16>, vector<8x8xf32> -> vector<8x8xf32>
    %cst_17 = arith.constant 2.500000e-01 : f32
    %53 = vector.broadcast %cst_17 : f32 to vector<8x8xf32>
    %54 = arith.mulf %52, %53 : vector<8x8xf32>
    %cst_18 = arith.constant dense<0xFF800000> : vector<8xf32>
    %55 = vector.multi_reduction <maximumf>, %54, %cst_18 [1] : vector<8x8xf32> to vector<8xf32>
    %56 = vector.shape_cast %55 : vector<8xf32> to vector<8x1xf32>
    %57 = vector.broadcast %56 : vector<8x1xf32> to vector<8x8xf32>
    %58 = arith.subf %54, %57 : vector<8x8xf32>
    %59 = math.exp %58 : vector<8x8xf32>
    %cst_19 = arith.constant dense<0.000000e+00> : vector<8xf32>
    %60 = vector.multi_reduction <add>, %59, %cst_19 [1] : vector<8x8xf32> to vector<8xf32>
    %61 = vector.shape_cast %60 : vector<8xf32> to vector<8x1xf32>
    %62 = tpu.reciprocal %61 {approx = true} : vector<8x1xf32> -> vector<8x1xf32>
    %63 = vector.broadcast %62 : vector<8x1xf32> to vector<8x8xf32>
    %64 = arith.mulf %59, %63 : vector<8x8xf32>
    %65 = arith.truncf %64 : vector<8x8xf32> to vector<8x8xbf16>
    %66 = vector.extract_strided_slice %13 {offsets = [0, 32], sizes = [8, 16], strides = [1, 1]} : vector<8x64xbf16> to vector<8x16xbf16>
    %cst_20 = arith.constant dense<0.000000e+00> : vector<8x16xf32>
    %67 = tpu.matmul %65, %66, %cst_20 {dimension_numbers = #tpu.dot_dimension_numbers<[1], [0], [0], [1], [0, 0, 1, 1], [], []>} : vector<8x8xbf16>, vector<8x16xbf16>, vector<8x16xf32> -> vector<8x16xf32>
    %68 = vector.extract_strided_slice %11 {offsets = [0, 48], sizes = [8, 16], strides = [1, 1]} : vector<8x64xbf16> to vector<8x16xbf16>
    %69 = vector.extract_strided_slice %12 {offsets = [0, 48], sizes = [8, 16], strides = [1, 1]} : vector<8x64xbf16> to vector<8x16xbf16>
    %cst_21 = arith.constant dense<0.000000e+00> : vector<8x8xf32>
    %70 = tpu.matmul %68, %69, %cst_21 {dimension_numbers = #tpu.dot_dimension_numbers<[1], [1], [0], [0], [0, 0, 1, 0], [], []>} : vector<8x16xbf16>, vector<8x16xbf16>, vector<8x8xf32> -> vector<8x8xf32>
    %cst_22 = arith.constant 2.500000e-01 : f32
    %71 = vector.broadcast %cst_22 : f32 to vector<8x8xf32>
    %72 = arith.mulf %70, %71 : vector<8x8xf32>
    %cst_23 = arith.constant dense<0xFF800000> : vector<8xf32>
    %73 = vector.multi_reduction <maximumf>, %72, %cst_23 [1] : vector<8x8xf32> to vector<8xf32>
    %74 = vector.shape_cast %73 : vector<8xf32> to vector<8x1xf32>
    %75 = vector.broadcast %74 : vector<8x1xf32> to vector<8x8xf32>
    %76 = arith.subf %72, %75 : vector<8x8xf32>
    %77 = math.exp %76 : vector<8x8xf32>
    %cst_24 = arith.constant dense<0.000000e+00> : vector<8xf32>
    %78 = vector.multi_reduction <add>, %77, %cst_24 [1] : vector<8x8xf32> to vector<8xf32>
    %79 = vector.shape_cast %78 : vector<8xf32> to vector<8x1xf32>
    %80 = tpu.reciprocal %79 {approx = true} : vector<8x1xf32> -> vector<8x1xf32>
    %81 = vector.broadcast %80 : vector<8x1xf32> to vector<8x8xf32>
    %82 = arith.mulf %77, %81 : vector<8x8xf32>
    %83 = arith.truncf %82 : vector<8x8xf32> to vector<8x8xbf16>
    %84 = vector.extract_strided_slice %13 {offsets = [0, 48], sizes = [8, 16], strides = [1, 1]} : vector<8x64xbf16> to vector<8x16xbf16>
    %cst_25 = arith.constant dense<0.000000e+00> : vector<8x16xf32>
    %85 = tpu.matmul %83, %84, %cst_25 {dimension_numbers = #tpu.dot_dimension_numbers<[1], [0], [0], [1], [0, 0, 1, 1], [], []>} : vector<8x8xbf16>, vector<8x16xbf16>, vector<8x16xf32> -> vector<8x16xf32>
    %86 = tpu.concatenate %31, %49, %67, %85 in 1 : vector<8x16xf32>, vector<8x16xf32>, vector<8x16xf32>, vector<8x16xf32> -> vector<8x64xf32>
    %87 = arith.truncf %86 : vector<8x64xf32> to vector<8x64xbf16>
    %c0_26 = arith.constant 0 : index
    %c0_27 = arith.constant 0 : index
    %88 = vector.load %arg5[%c0_26, %c0_27] : memref<64x64xbf16, #tpu.memory_space<vmem>>, vector<64x64xbf16>
    %cst_28 = arith.constant dense<0.000000e+00> : vector<8x64xf32>
    %89 = tpu.matmul %87, %88, %cst_28 {dimension_numbers = #tpu.dot_dimension_numbers<[1], [0], [0], [1], [0, 0, 1, 1], [], []>} : vector<8x64xbf16>, vector<64x64xbf16>, vector<8x64xf32> -> vector<8x64xf32>
    %c0_29 = arith.constant 0 : index
    %c0_30 = arith.constant 0 : index
    %90 = vector.load %arg6[%c0_29, %c0_30] : memref<1x64xf32, #tpu.memory_space<vmem>>, vector<1x64xf32>
    %91 = vector.broadcast %90 : vector<1x64xf32> to vector<8x64xf32>
    %92 = arith.addf %89, %91 : vector<8x64xf32>
    %93 = arith.addf %1, %92 : vector<8x64xf32>
    %cst_31 = arith.constant dense<0.000000e+00> : vector<8xf32>
    %94 = vector.multi_reduction <add>, %93, %cst_31 [1] : vector<8x64xf32> to vector<8xf32>
    %95 = vector.shape_cast %94 : vector<8xf32> to vector<8x1xf32>
    %cst_32 = arith.constant 6.400000e+01 : f32
    %96 = vector.broadcast %cst_32 : f32 to vector<8x1xf32>
    %97 = arith.divf %95, %96 : vector<8x1xf32>
    %98 = vector.broadcast %97 : vector<8x1xf32> to vector<8x64xf32>
    %99 = arith.subf %93, %98 : vector<8x64xf32>
    %100 = arith.mulf %99, %99 : vector<8x64xf32>
    %cst_33 = arith.constant dense<0.000000e+00> : vector<8xf32>
    %101 = vector.multi_reduction <add>, %100, %cst_33 [1] : vector<8x64xf32> to vector<8xf32>
    %102 = vector.shape_cast %101 : vector<8xf32> to vector<8x1xf32>
    %cst_34 = arith.constant 6.400000e+01 : f32
    %103 = vector.broadcast %cst_34 : f32 to vector<8x1xf32>
    %104 = arith.divf %102, %103 : vector<8x1xf32>
    %105 = vector.broadcast %97 : vector<8x1xf32> to vector<8x64xf32>
    %106 = arith.subf %93, %105 : vector<8x64xf32>
    %cst_35 = arith.constant 9.99999974E-6 : f32
    %107 = vector.broadcast %cst_35 : f32 to vector<8x1xf32>
    %108 = arith.addf %104, %107 : vector<8x1xf32>
    %109 = math.rsqrt %108 : vector<8x1xf32>
    %110 = vector.broadcast %109 : vector<8x1xf32> to vector<8x64xf32>
    %111 = arith.mulf %106, %110 : vector<8x64xf32>
    %c0_36 = arith.constant 0 : index
    %c0_37 = arith.constant 0 : index
    %112 = vector.load %arg7[%c0_36, %c0_37] : memref<1x64xf32, #tpu.memory_space<vmem>>, vector<1x64xf32>
    %113 = vector.broadcast %112 : vector<1x64xf32> to vector<8x64xf32>
    %114 = arith.mulf %111, %113 : vector<8x64xf32>
    %c0_38 = arith.constant 0 : index
    %c0_39 = arith.constant 0 : index
    %115 = vector.load %arg8[%c0_38, %c0_39] : memref<1x64xf32, #tpu.memory_space<vmem>>, vector<1x64xf32>
    %116 = vector.broadcast %115 : vector<1x64xf32> to vector<8x64xf32>
    %117 = arith.addf %114, %116 : vector<8x64xf32>
    %c0_40 = arith.constant 0 : index
    %c0_41 = arith.constant 0 : index
    %c0_42 = arith.constant 0 : index
    %118 = vector.load %arg9[%c0_40, %c0_41, %c0_42] : memref<1x8x64xf32, #tpu.memory_space<vmem>>, vector<1x8x64xf32>
    %119 = vector.shape_cast %118 : vector<1x8x64xf32> to vector<8x64xf32>
    %120 = vector.shape_cast %117 : vector<8x64xf32> to vector<1x8x64xf32>
    tpu.vector_store %arg9[%c0_40, %c0_41, %c0_42], %120 {strides = array<i32>} : memref<1x8x64xf32, #tpu.memory_space<vmem>>, vector<1x8x64xf32>,
    return
  }
  func.func @transform_0(%arg0: i32) -> (i32, i32, i32) {
    %c0_i32 = arith.constant 0 : i32
    %c0_i32_0 = arith.constant 0 : i32
    %c0_i32_1 = arith.constant 0 : i32
    return %arg0, %c0_i32, %c0_i32_0 : i32, i32, i32
  }
  func.func @transform_1(%arg0: i32) -> (i32, i32, i32) {
    %c0_i32 = arith.constant 0 : i32
    %c0_i32_0 = arith.constant 0 : i32
    %c0_i32_1 = arith.constant 0 : i32
    return %arg0, %c0_i32, %c0_i32_0 : i32, i32, i32
  }
  func.func @transform_2(%arg0: i32) -> (i32, i32) {
    %c0_i32 = arith.constant 0 : i32
    %c0_i32_0 = arith.constant 0 : i32
    %c0_i32_1 = arith.constant 0 : i32
    return %c0_i32, %c0_i32_0 : i32, i32
  }
  func.func @transform_3(%arg0: i32) -> (i32, i32) {
    %c0_i32 = arith.constant 0 : i32
    %c0_i32_0 = arith.constant 0 : i32
    %c0_i32_1 = arith.constant 0 : i32
    return %c0_i32, %c0_i32_0 : i32, i32
  }
  func.func @transform_4(%arg0: i32) -> (i32, i32) {
    %c0_i32 = arith.constant 0 : i32
    %c0_i32_0 = arith.constant 0 : i32
    %c0_i32_1 = arith.constant 0 : i32
    return %c0_i32, %c0_i32_0 : i32, i32
  }
  func.func @transform_5(%arg0: i32) -> (i32, i32) {
    %c0_i32 = arith.constant 0 : i32
    %c0_i32_0 = arith.constant 0 : i32
    %c0_i32_1 = arith.constant 0 : i32
    return %c0_i32, %c0_i32_0 : i32, i32
  }
  func.func @transform_6(%arg0: i32) -> (i32, i32) {
    %c0_i32 = arith.constant 0 : i32
    %c0_i32_0 = arith.constant 0 : i32
    %c0_i32_1 = arith.constant 0 : i32
    return %c0_i32, %c0_i32_0 : i32, i32
  }
  func.func @transform_7(%arg0: i32) -> (i32, i32) {
    %c0_i32 = arith.constant 0 : i32
    %c0_i32_0 = arith.constant 0 : i32
    %c0_i32_1 = arith.constant 0 : i32
    return %c0_i32, %c0_i32_0 : i32, i32
  }
  func.func @transform_8(%arg0: i32) -> (i32, i32, i32) {
    %c0_i32 = arith.constant 0 : i32
    %c0_i32_0 = arith.constant 0 : i32
    %c0_i32_1 = arith.constant 0 : i32
    return %arg0, %c0_i32, %c0_i32_0 : i32, i32, i32
  }
}

module attributes {stable_mosaic.version = 11 : i64} {
  func.func @_mha_ln_kernel(%arg0: i32, %arg1: memref<1x8x64xf32, #tpu.memory_space<vmem>>, %arg2: memref<1x8x64xf32, #tpu.memory_space<vmem>>, %arg3: memref<64x192xbf16, #tpu.memory_space<vmem>>, %arg4: memref<1x192xf32, #tpu.memory_space<vmem>>, %arg5: memref<64x64xbf16, #tpu.memory_space<vmem>>, %arg6: memref<1x64xf32, #tpu.memory_space<vmem>>, %arg7: memref<1x64xf32, #tpu.memory_space<vmem>>, %arg8: memref<1x64xf32, #tpu.memory_space<vmem>>, %arg9: memref<1x8x64xf32, #tpu.memory_space<vmem>>) attributes {dimension_semantics = [#tpu.dimension_semantics<parallel>], iteration_bounds = array<i64: 2>, scalar_prefetch = 0 : i64, scratch_operands = 0 : i64, tpu.core_type = #tpu.core_type<tc>, window_params = [{transform_indices = @transform_0, window_bounds = array<i64: 1, 8, 64>}, {transform_indices = @transform_1, window_bounds = array<i64: 1, 8, 64>}, {pipeline_mode = #tpu.pipeline_mode<synchronous>, transform_indices = @transform_2, window_bounds = array<i64: 64, 192>}, {pipeline_mode = #tpu.pipeline_mode<synchronous>, transform_indices = @transform_3, window_bounds = array<i64: 1, 192>}, {pipeline_mode = #tpu.pipeline_mode<synchronous>, transform_indices = @transform_4, window_bounds = array<i64: 64, 64>}, {pipeline_mode = #tpu.pipeline_mode<synchronous>, transform_indices = @transform_5, window_bounds = array<i64: 1, 64>}, {pipeline_mode = #tpu.pipeline_mode<synchronous>, transform_indices = @transform_6, window_bounds = array<i64: 1, 64>}, {pipeline_mode = #tpu.pipeline_mode<synchronous>, transform_indices = @transform_7, window_bounds = array<i64: 1, 64>}, {transform_indices = @transform_8, window_bounds = array<i64: 1, 8, 64>}]} {
    %c0 = arith.constant 0 : index
    %c0_0 = arith.constant 0 : index
    %c0_1 = arith.constant 0 : index
    %0 = vector.load %arg1[%c0, %c0_0, %c0_1] : memref<1x8x64xf32, #tpu.memory_space<vmem>>, vector<1x8x64xf32>
    %1 = vector.shape_cast %0 : vector<1x8x64xf32> to vector<8x64xf32>
    %c0_2 = arith.constant 0 : index
    %c0_3 = arith.constant 0 : index
    %2 = vector.load %arg3[%c0_2, %c0_3] : memref<64x192xbf16, #tpu.memory_space<vmem>>, vector<64x192xbf16>
    %c0_4 = arith.constant 0 : index
    %c0_5 = arith.constant 0 : index
    %3 = vector.load %arg4[%c0_4, %c0_5] : memref<1x192xf32, #tpu.memory_space<vmem>>, vector<1x192xf32>
    %c0_6 = arith.constant 0 : index
    %c0_7 = arith.constant 0 : index
    %c0_8 = arith.constant 0 : index
    %4 = vector.load %arg2[%c0_6, %c0_7, %c0_8] : memref<1x8x64xf32, #tpu.memory_space<vmem>>, vector<1x8x64xf32>
    %5 = vector.shape_cast %4 : vector<1x8x64xf32> to vector<8x64xf32>
    %6 = arith.truncf %1 : vector<8x64xf32> to vector<8x64xbf16>
    %7 = vector.extract_strided_slice %2 {offsets = [0, 0], sizes = [64, 64], strides = [1, 1]} : vector<64x192xbf16> to vector<64x64xbf16>
    %cst = arith.constant dense<0.000000e+00> : vector<8x64xf32>
    %8 = tpu.matmul %6, %7, %cst {dimension_numbers = #tpu.dot_dimension_numbers<[1], [0], [0], [1], [0, 0, 1, 1], [], []>} : vector<8x64xbf16>, vector<64x64xbf16>, vector<8x64xf32> -> vector<8x64xf32>
    %9 = vector.extract_strided_slice %3 {offsets = [0, 0], sizes = [1, 64], strides = [1, 1]} : vector<1x192xf32> to vector<1x64xf32>
    %10 = vector.broadcast %9 : vector<1x64xf32> to vector<8x64xf32>
    %11 = arith.addf %8, %10 : vector<8x64xf32>
    %12 = arith.truncf %5 : vector<8x64xf32> to vector<8x64xbf16>
    %13 = vector.extract_strided_slice %2 {offsets = [0, 64], sizes = [64, 128], strides = [1, 1]} : vector<64x192xbf16> to vector<64x128xbf16>
    %cst_9 = arith.constant dense<0.000000e+00> : vector<8x128xf32>
    %14 = tpu.matmul %12, %13, %cst_9 {dimension_numbers = #tpu.dot_dimension_numbers<[1], [0], [0], [1], [0, 0, 1, 1], [], []>} : vector<8x64xbf16>, vector<64x128xbf16>, vector<8x128xf32> -> vector<8x128xf32>
    %15 = vector.extract_strided_slice %3 {offsets = [0, 64], sizes = [1, 128], strides = [1, 1]} : vector<1x192xf32> to vector<1x128xf32>
    %16 = vector.broadcast %15 : vector<1x128xf32> to vector<8x128xf32>
    %17 = arith.addf %14, %16 : vector<8x128xf32>
    %18 = vector.extract_strided_slice %17 {offsets = [0, 0], sizes = [8, 64], strides = [1, 1]} : vector<8x128xf32> to vector<8x64xf32>
    %19 = vector.extract_strided_slice %17 {offsets = [0, 64], sizes = [8, 64], strides = [1, 1]} : vector<8x128xf32> to vector<8x64xf32>
    %20 = arith.truncf %11 : vector<8x64xf32> to vector<8x64xbf16>
    %21 = arith.truncf %18 : vector<8x64xf32> to vector<8x64xbf16>
    %22 = arith.truncf %19 : vector<8x64xf32> to vector<8x64xbf16>
    %23 = vector.extract_strided_slice %20 {offsets = [0, 0], sizes = [8, 16], strides = [1, 1]} : vector<8x64xbf16> to vector<8x16xbf16>
    %24 = vector.extract_strided_slice %21 {offsets = [0, 0], sizes = [8, 16], strides = [1, 1]} : vector<8x64xbf16> to vector<8x16xbf16>
    %cst_10 = arith.constant dense<0.000000e+00> : vector<8x8xf32>
    %25 = tpu.matmul %23, %24, %cst_10 {dimension_numbers = #tpu.dot_dimension_numbers<[1], [1], [0], [0], [0, 0, 1, 0], [], []>} : vector<8x16xbf16>, vector<8x16xbf16>, vector<8x8xf32> -> vector<8x8xf32>
    %cst_11 = arith.constant 2.500000e-01 : f32
    %26 = vector.broadcast %cst_11 : f32 to vector<8x8xf32>
    %27 = arith.mulf %25, %26 : vector<8x8xf32>
    %cst_12 = arith.constant dense<0xFF800000> : vector<8xf32>
    %28 = vector.multi_reduction <maximumf>, %27, %cst_12 [1] : vector<8x8xf32> to vector<8xf32>
    %29 = vector.shape_cast %28 : vector<8xf32> to vector<8x1xf32>
    %30 = vector.broadcast %29 : vector<8x1xf32> to vector<8x8xf32>
    %31 = arith.subf %27, %30 : vector<8x8xf32>
    %32 = math.exp %31 : vector<8x8xf32>
    %cst_13 = arith.constant dense<0.000000e+00> : vector<8xf32>
    %33 = vector.multi_reduction <add>, %32, %cst_13 [1] : vector<8x8xf32> to vector<8xf32>
    %34 = vector.shape_cast %33 : vector<8xf32> to vector<8x1xf32>
    %35 = tpu.reciprocal %34 {approx = true} : vector<8x1xf32> -> vector<8x1xf32>
    %36 = vector.broadcast %35 : vector<8x1xf32> to vector<8x8xf32>
    %37 = arith.mulf %32, %36 : vector<8x8xf32>
    %38 = arith.truncf %37 : vector<8x8xf32> to vector<8x8xbf16>
    %39 = vector.extract_strided_slice %22 {offsets = [0, 0], sizes = [8, 16], strides = [1, 1]} : vector<8x64xbf16> to vector<8x16xbf16>
    %cst_14 = arith.constant dense<0.000000e+00> : vector<8x16xf32>
    %40 = tpu.matmul %38, %39, %cst_14 {dimension_numbers = #tpu.dot_dimension_numbers<[1], [0], [0], [1], [0, 0, 1, 1], [], []>} : vector<8x8xbf16>, vector<8x16xbf16>, vector<8x16xf32> -> vector<8x16xf32>
    %41 = vector.extract_strided_slice %20 {offsets = [0, 16], sizes = [8, 16], strides = [1, 1]} : vector<8x64xbf16> to vector<8x16xbf16>
    %42 = vector.extract_strided_slice %21 {offsets = [0, 16], sizes = [8, 16], strides = [1, 1]} : vector<8x64xbf16> to vector<8x16xbf16>
    %cst_15 = arith.constant dense<0.000000e+00> : vector<8x8xf32>
    %43 = tpu.matmul %41, %42, %cst_15 {dimension_numbers = #tpu.dot_dimension_numbers<[1], [1], [0], [0], [0, 0, 1, 0], [], []>} : vector<8x16xbf16>, vector<8x16xbf16>, vector<8x8xf32> -> vector<8x8xf32>
    %cst_16 = arith.constant 2.500000e-01 : f32
    %44 = vector.broadcast %cst_16 : f32 to vector<8x8xf32>
    %45 = arith.mulf %43, %44 : vector<8x8xf32>
    %cst_17 = arith.constant dense<0xFF800000> : vector<8xf32>
    %46 = vector.multi_reduction <maximumf>, %45, %cst_17 [1] : vector<8x8xf32> to vector<8xf32>
    %47 = vector.shape_cast %46 : vector<8xf32> to vector<8x1xf32>
    %48 = vector.broadcast %47 : vector<8x1xf32> to vector<8x8xf32>
    %49 = arith.subf %45, %48 : vector<8x8xf32>
    %50 = math.exp %49 : vector<8x8xf32>
    %cst_18 = arith.constant dense<0.000000e+00> : vector<8xf32>
    %51 = vector.multi_reduction <add>, %50, %cst_18 [1] : vector<8x8xf32> to vector<8xf32>
    %52 = vector.shape_cast %51 : vector<8xf32> to vector<8x1xf32>
    %53 = tpu.reciprocal %52 {approx = true} : vector<8x1xf32> -> vector<8x1xf32>
    %54 = vector.broadcast %53 : vector<8x1xf32> to vector<8x8xf32>
    %55 = arith.mulf %50, %54 : vector<8x8xf32>
    %56 = arith.truncf %55 : vector<8x8xf32> to vector<8x8xbf16>
    %57 = vector.extract_strided_slice %22 {offsets = [0, 16], sizes = [8, 16], strides = [1, 1]} : vector<8x64xbf16> to vector<8x16xbf16>
    %cst_19 = arith.constant dense<0.000000e+00> : vector<8x16xf32>
    %58 = tpu.matmul %56, %57, %cst_19 {dimension_numbers = #tpu.dot_dimension_numbers<[1], [0], [0], [1], [0, 0, 1, 1], [], []>} : vector<8x8xbf16>, vector<8x16xbf16>, vector<8x16xf32> -> vector<8x16xf32>
    %59 = vector.extract_strided_slice %20 {offsets = [0, 32], sizes = [8, 16], strides = [1, 1]} : vector<8x64xbf16> to vector<8x16xbf16>
    %60 = vector.extract_strided_slice %21 {offsets = [0, 32], sizes = [8, 16], strides = [1, 1]} : vector<8x64xbf16> to vector<8x16xbf16>
    %cst_20 = arith.constant dense<0.000000e+00> : vector<8x8xf32>
    %61 = tpu.matmul %59, %60, %cst_20 {dimension_numbers = #tpu.dot_dimension_numbers<[1], [1], [0], [0], [0, 0, 1, 0], [], []>} : vector<8x16xbf16>, vector<8x16xbf16>, vector<8x8xf32> -> vector<8x8xf32>
    %cst_21 = arith.constant 2.500000e-01 : f32
    %62 = vector.broadcast %cst_21 : f32 to vector<8x8xf32>
    %63 = arith.mulf %61, %62 : vector<8x8xf32>
    %cst_22 = arith.constant dense<0xFF800000> : vector<8xf32>
    %64 = vector.multi_reduction <maximumf>, %63, %cst_22 [1] : vector<8x8xf32> to vector<8xf32>
    %65 = vector.shape_cast %64 : vector<8xf32> to vector<8x1xf32>
    %66 = vector.broadcast %65 : vector<8x1xf32> to vector<8x8xf32>
    %67 = arith.subf %63, %66 : vector<8x8xf32>
    %68 = math.exp %67 : vector<8x8xf32>
    %cst_23 = arith.constant dense<0.000000e+00> : vector<8xf32>
    %69 = vector.multi_reduction <add>, %68, %cst_23 [1] : vector<8x8xf32> to vector<8xf32>
    %70 = vector.shape_cast %69 : vector<8xf32> to vector<8x1xf32>
    %71 = tpu.reciprocal %70 {approx = true} : vector<8x1xf32> -> vector<8x1xf32>
    %72 = vector.broadcast %71 : vector<8x1xf32> to vector<8x8xf32>
    %73 = arith.mulf %68, %72 : vector<8x8xf32>
    %74 = arith.truncf %73 : vector<8x8xf32> to vector<8x8xbf16>
    %75 = vector.extract_strided_slice %22 {offsets = [0, 32], sizes = [8, 16], strides = [1, 1]} : vector<8x64xbf16> to vector<8x16xbf16>
    %cst_24 = arith.constant dense<0.000000e+00> : vector<8x16xf32>
    %76 = tpu.matmul %74, %75, %cst_24 {dimension_numbers = #tpu.dot_dimension_numbers<[1], [0], [0], [1], [0, 0, 1, 1], [], []>} : vector<8x8xbf16>, vector<8x16xbf16>, vector<8x16xf32> -> vector<8x16xf32>
    %77 = vector.extract_strided_slice %20 {offsets = [0, 48], sizes = [8, 16], strides = [1, 1]} : vector<8x64xbf16> to vector<8x16xbf16>
    %78 = vector.extract_strided_slice %21 {offsets = [0, 48], sizes = [8, 16], strides = [1, 1]} : vector<8x64xbf16> to vector<8x16xbf16>
    %cst_25 = arith.constant dense<0.000000e+00> : vector<8x8xf32>
    %79 = tpu.matmul %77, %78, %cst_25 {dimension_numbers = #tpu.dot_dimension_numbers<[1], [1], [0], [0], [0, 0, 1, 0], [], []>} : vector<8x16xbf16>, vector<8x16xbf16>, vector<8x8xf32> -> vector<8x8xf32>
    %cst_26 = arith.constant 2.500000e-01 : f32
    %80 = vector.broadcast %cst_26 : f32 to vector<8x8xf32>
    %81 = arith.mulf %79, %80 : vector<8x8xf32>
    %cst_27 = arith.constant dense<0xFF800000> : vector<8xf32>
    %82 = vector.multi_reduction <maximumf>, %81, %cst_27 [1] : vector<8x8xf32> to vector<8xf32>
    %83 = vector.shape_cast %82 : vector<8xf32> to vector<8x1xf32>
    %84 = vector.broadcast %83 : vector<8x1xf32> to vector<8x8xf32>
    %85 = arith.subf %81, %84 : vector<8x8xf32>
    %86 = math.exp %85 : vector<8x8xf32>
    %cst_28 = arith.constant dense<0.000000e+00> : vector<8xf32>
    %87 = vector.multi_reduction <add>, %86, %cst_28 [1] : vector<8x8xf32> to vector<8xf32>
    %88 = vector.shape_cast %87 : vector<8xf32> to vector<8x1xf32>
    %89 = tpu.reciprocal %88 {approx = true} : vector<8x1xf32> -> vector<8x1xf32>
    %90 = vector.broadcast %89 : vector<8x1xf32> to vector<8x8xf32>
    %91 = arith.mulf %86, %90 : vector<8x8xf32>
    %92 = arith.truncf %91 : vector<8x8xf32> to vector<8x8xbf16>
    %93 = vector.extract_strided_slice %22 {offsets = [0, 48], sizes = [8, 16], strides = [1, 1]} : vector<8x64xbf16> to vector<8x16xbf16>
    %cst_29 = arith.constant dense<0.000000e+00> : vector<8x16xf32>
    %94 = tpu.matmul %92, %93, %cst_29 {dimension_numbers = #tpu.dot_dimension_numbers<[1], [0], [0], [1], [0, 0, 1, 1], [], []>} : vector<8x8xbf16>, vector<8x16xbf16>, vector<8x16xf32> -> vector<8x16xf32>
    %95 = tpu.concatenate %40, %58, %76, %94 in 1 : vector<8x16xf32>, vector<8x16xf32>, vector<8x16xf32>, vector<8x16xf32> -> vector<8x64xf32>
    %96 = arith.truncf %95 : vector<8x64xf32> to vector<8x64xbf16>
    %c0_30 = arith.constant 0 : index
    %c0_31 = arith.constant 0 : index
    %97 = vector.load %arg5[%c0_30, %c0_31] : memref<64x64xbf16, #tpu.memory_space<vmem>>, vector<64x64xbf16>
    %cst_32 = arith.constant dense<0.000000e+00> : vector<8x64xf32>
    %98 = tpu.matmul %96, %97, %cst_32 {dimension_numbers = #tpu.dot_dimension_numbers<[1], [0], [0], [1], [0, 0, 1, 1], [], []>} : vector<8x64xbf16>, vector<64x64xbf16>, vector<8x64xf32> -> vector<8x64xf32>
    %c0_33 = arith.constant 0 : index
    %c0_34 = arith.constant 0 : index
    %99 = vector.load %arg6[%c0_33, %c0_34] : memref<1x64xf32, #tpu.memory_space<vmem>>, vector<1x64xf32>
    %100 = vector.broadcast %99 : vector<1x64xf32> to vector<8x64xf32>
    %101 = arith.addf %98, %100 : vector<8x64xf32>
    %102 = arith.addf %1, %101 : vector<8x64xf32>
    %cst_35 = arith.constant dense<0.000000e+00> : vector<8xf32>
    %103 = vector.multi_reduction <add>, %102, %cst_35 [1] : vector<8x64xf32> to vector<8xf32>
    %104 = vector.shape_cast %103 : vector<8xf32> to vector<8x1xf32>
    %cst_36 = arith.constant 6.400000e+01 : f32
    %105 = vector.broadcast %cst_36 : f32 to vector<8x1xf32>
    %106 = arith.divf %104, %105 : vector<8x1xf32>
    %107 = vector.broadcast %106 : vector<8x1xf32> to vector<8x64xf32>
    %108 = arith.subf %102, %107 : vector<8x64xf32>
    %109 = arith.mulf %108, %108 : vector<8x64xf32>
    %cst_37 = arith.constant dense<0.000000e+00> : vector<8xf32>
    %110 = vector.multi_reduction <add>, %109, %cst_37 [1] : vector<8x64xf32> to vector<8xf32>
    %111 = vector.shape_cast %110 : vector<8xf32> to vector<8x1xf32>
    %cst_38 = arith.constant 6.400000e+01 : f32
    %112 = vector.broadcast %cst_38 : f32 to vector<8x1xf32>
    %113 = arith.divf %111, %112 : vector<8x1xf32>
    %114 = vector.broadcast %106 : vector<8x1xf32> to vector<8x64xf32>
    %115 = arith.subf %102, %114 : vector<8x64xf32>
    %cst_39 = arith.constant 9.99999974E-6 : f32
    %116 = vector.broadcast %cst_39 : f32 to vector<8x1xf32>
    %117 = arith.addf %113, %116 : vector<8x1xf32>
    %118 = math.rsqrt %117 : vector<8x1xf32>
    %119 = vector.broadcast %118 : vector<8x1xf32> to vector<8x64xf32>
    %120 = arith.mulf %115, %119 : vector<8x64xf32>
    %c0_40 = arith.constant 0 : index
    %c0_41 = arith.constant 0 : index
    %121 = vector.load %arg7[%c0_40, %c0_41] : memref<1x64xf32, #tpu.memory_space<vmem>>, vector<1x64xf32>
    %122 = vector.broadcast %121 : vector<1x64xf32> to vector<8x64xf32>
    %123 = arith.mulf %120, %122 : vector<8x64xf32>
    %c0_42 = arith.constant 0 : index
    %c0_43 = arith.constant 0 : index
    %124 = vector.load %arg8[%c0_42, %c0_43] : memref<1x64xf32, #tpu.memory_space<vmem>>, vector<1x64xf32>
    %125 = vector.broadcast %124 : vector<1x64xf32> to vector<8x64xf32>
    %126 = arith.addf %123, %125 : vector<8x64xf32>
    %c0_44 = arith.constant 0 : index
    %c0_45 = arith.constant 0 : index
    %c0_46 = arith.constant 0 : index
    %127 = vector.load %arg9[%c0_44, %c0_45, %c0_46] : memref<1x8x64xf32, #tpu.memory_space<vmem>>, vector<1x8x64xf32>
    %128 = vector.shape_cast %127 : vector<1x8x64xf32> to vector<8x64xf32>
    %129 = vector.shape_cast %126 : vector<8x64xf32> to vector<1x8x64xf32>
    tpu.vector_store %arg9[%c0_44, %c0_45, %c0_46], %129 {strides = array<i32>} : memref<1x8x64xf32, #tpu.memory_space<vmem>>, vector<1x8x64xf32>,
    return
  }
  func.func @transform_0(%arg0: i32) -> (i32, i32, i32) {
    %c0_i32 = arith.constant 0 : i32
    %c0_i32_0 = arith.constant 0 : i32
    %c0_i32_1 = arith.constant 0 : i32
    return %arg0, %c0_i32, %c0_i32_0 : i32, i32, i32
  }
  func.func @transform_1(%arg0: i32) -> (i32, i32, i32) {
    %c0_i32 = arith.constant 0 : i32
    %c0_i32_0 = arith.constant 0 : i32
    %c0_i32_1 = arith.constant 0 : i32
    return %arg0, %c0_i32, %c0_i32_0 : i32, i32, i32
  }
  func.func @transform_2(%arg0: i32) -> (i32, i32) {
    %c0_i32 = arith.constant 0 : i32
    %c0_i32_0 = arith.constant 0 : i32
    %c0_i32_1 = arith.constant 0 : i32
    return %c0_i32, %c0_i32_0 : i32, i32
  }
  func.func @transform_3(%arg0: i32) -> (i32, i32) {
    %c0_i32 = arith.constant 0 : i32
    %c0_i32_0 = arith.constant 0 : i32
    %c0_i32_1 = arith.constant 0 : i32
    return %c0_i32, %c0_i32_0 : i32, i32
  }
  func.func @transform_4(%arg0: i32) -> (i32, i32) {
    %c0_i32 = arith.constant 0 : i32
    %c0_i32_0 = arith.constant 0 : i32
    %c0_i32_1 = arith.constant 0 : i32
    return %c0_i32, %c0_i32_0 : i32, i32
  }
  func.func @transform_5(%arg0: i32) -> (i32, i32) {
    %c0_i32 = arith.constant 0 : i32
    %c0_i32_0 = arith.constant 0 : i32
    %c0_i32_1 = arith.constant 0 : i32
    return %c0_i32, %c0_i32_0 : i32, i32
  }
  func.func @transform_6(%arg0: i32) -> (i32, i32) {
    %c0_i32 = arith.constant 0 : i32
    %c0_i32_0 = arith.constant 0 : i32
    %c0_i32_1 = arith.constant 0 : i32
    return %c0_i32, %c0_i32_0 : i32, i32
  }
  func.func @transform_7(%arg0: i32) -> (i32, i32) {
    %c0_i32 = arith.constant 0 : i32
    %c0_i32_0 = arith.constant 0 : i32
    %c0_i32_1 = arith.constant 0 : i32
    return %c0_i32, %c0_i32_0 : i32, i32
  }
  func.func @transform_8(%arg0: i32) -> (i32, i32, i32) {
    %c0_i32 = arith.constant 0 : i32
    %c0_i32_0 = arith.constant 0 : i32
    %c0_i32_1 = arith.constant 0 : i32
    return %arg0, %c0_i32, %c0_i32_0 : i32, i32, i32
  }
}

module attributes {stable_mosaic.version = 11 : i64} {
  func.func @_ffn_ln_kernel(%arg0: i32, %arg1: memref<16x64xf32, #tpu.memory_space<vmem>>, %arg2: memref<64x128xbf16, #tpu.memory_space<vmem>>, %arg3: memref<1x128xf32, #tpu.memory_space<vmem>>, %arg4: memref<128x64xbf16, #tpu.memory_space<vmem>>, %arg5: memref<1x64xf32, #tpu.memory_space<vmem>>, %arg6: memref<1x64xf32, #tpu.memory_space<vmem>>, %arg7: memref<1x64xf32, #tpu.memory_space<vmem>>, %arg8: memref<16x64xf32, #tpu.memory_space<vmem>>) attributes {dimension_semantics = [#tpu.dimension_semantics<parallel>], iteration_bounds = array<i64: 1>, scalar_prefetch = 0 : i64, scratch_operands = 0 : i64, tpu.core_type = #tpu.core_type<tc>, window_params = [{transform_indices = @transform_0, window_bounds = array<i64: 16, 64>}, {pipeline_mode = #tpu.pipeline_mode<synchronous>, transform_indices = @transform_1, window_bounds = array<i64: 64, 128>}, {pipeline_mode = #tpu.pipeline_mode<synchronous>, transform_indices = @transform_2, window_bounds = array<i64: 1, 128>}, {pipeline_mode = #tpu.pipeline_mode<synchronous>, transform_indices = @transform_3, window_bounds = array<i64: 128, 64>}, {pipeline_mode = #tpu.pipeline_mode<synchronous>, transform_indices = @transform_4, window_bounds = array<i64: 1, 64>}, {pipeline_mode = #tpu.pipeline_mode<synchronous>, transform_indices = @transform_5, window_bounds = array<i64: 1, 64>}, {pipeline_mode = #tpu.pipeline_mode<synchronous>, transform_indices = @transform_6, window_bounds = array<i64: 1, 64>}, {transform_indices = @transform_7, window_bounds = array<i64: 16, 64>}]} {
    %c0 = arith.constant 0 : index
    %c0_0 = arith.constant 0 : index
    %0 = vector.load %arg1[%c0, %c0_0] : memref<16x64xf32, #tpu.memory_space<vmem>>, vector<16x64xf32>
    %1 = arith.truncf %0 : vector<16x64xf32> to vector<16x64xbf16>
    %c0_1 = arith.constant 0 : index
    %c0_2 = arith.constant 0 : index
    %2 = vector.load %arg2[%c0_1, %c0_2] : memref<64x128xbf16, #tpu.memory_space<vmem>>, vector<64x128xbf16>
    %cst = arith.constant dense<0.000000e+00> : vector<16x128xf32>
    %3 = tpu.matmul %1, %2, %cst {dimension_numbers = #tpu.dot_dimension_numbers<[1], [0], [0], [1], [0, 0, 1, 1], [], []>} : vector<16x64xbf16>, vector<64x128xbf16>, vector<16x128xf32> -> vector<16x128xf32>
    %c0_3 = arith.constant 0 : index
    %c0_4 = arith.constant 0 : index
    %4 = vector.load %arg3[%c0_3, %c0_4] : memref<1x128xf32, #tpu.memory_space<vmem>>, vector<1x128xf32>
    %5 = vector.broadcast %4 : vector<1x128xf32> to vector<16x128xf32>
    %6 = arith.addf %3, %5 : vector<16x128xf32>
    %cst_5 = arith.constant 0.000000e+00 : f32
    %7 = vector.broadcast %cst_5 : f32 to vector<16x128xf32>
    %8 = arith.maximumf %6, %7 : vector<16x128xf32>
    %9 = arith.truncf %8 : vector<16x128xf32> to vector<16x128xbf16>
    %c0_6 = arith.constant 0 : index
    %c0_7 = arith.constant 0 : index
    %10 = vector.load %arg4[%c0_6, %c0_7] : memref<128x64xbf16, #tpu.memory_space<vmem>>, vector<128x64xbf16>
    %cst_8 = arith.constant dense<0.000000e+00> : vector<16x64xf32>
    %11 = tpu.matmul %9, %10, %cst_8 {dimension_numbers = #tpu.dot_dimension_numbers<[1], [0], [0], [1], [0, 0, 1, 1], [], []>} : vector<16x128xbf16>, vector<128x64xbf16>, vector<16x64xf32> -> vector<16x64xf32>
    %c0_9 = arith.constant 0 : index
    %c0_10 = arith.constant 0 : index
    %12 = vector.load %arg5[%c0_9, %c0_10] : memref<1x64xf32, #tpu.memory_space<vmem>>, vector<1x64xf32>
    %13 = vector.broadcast %12 : vector<1x64xf32> to vector<16x64xf32>
    %14 = arith.addf %11, %13 : vector<16x64xf32>
    %15 = arith.addf %0, %14 : vector<16x64xf32>
    %cst_11 = arith.constant dense<0.000000e+00> : vector<16xf32>
    %16 = vector.multi_reduction <add>, %15, %cst_11 [1] : vector<16x64xf32> to vector<16xf32>
    %17 = vector.shape_cast %16 : vector<16xf32> to vector<16x1xf32>
    %cst_12 = arith.constant 6.400000e+01 : f32
    %18 = vector.broadcast %cst_12 : f32 to vector<16x1xf32>
    %19 = arith.divf %17, %18 : vector<16x1xf32>
    %20 = vector.broadcast %19 : vector<16x1xf32> to vector<16x64xf32>
    %21 = arith.subf %15, %20 : vector<16x64xf32>
    %22 = arith.mulf %21, %21 : vector<16x64xf32>
    %cst_13 = arith.constant dense<0.000000e+00> : vector<16xf32>
    %23 = vector.multi_reduction <add>, %22, %cst_13 [1] : vector<16x64xf32> to vector<16xf32>
    %24 = vector.shape_cast %23 : vector<16xf32> to vector<16x1xf32>
    %cst_14 = arith.constant 6.400000e+01 : f32
    %25 = vector.broadcast %cst_14 : f32 to vector<16x1xf32>
    %26 = arith.divf %24, %25 : vector<16x1xf32>
    %27 = vector.broadcast %19 : vector<16x1xf32> to vector<16x64xf32>
    %28 = arith.subf %15, %27 : vector<16x64xf32>
    %cst_15 = arith.constant 9.99999974E-6 : f32
    %29 = vector.broadcast %cst_15 : f32 to vector<16x1xf32>
    %30 = arith.addf %26, %29 : vector<16x1xf32>
    %31 = math.rsqrt %30 : vector<16x1xf32>
    %32 = vector.broadcast %31 : vector<16x1xf32> to vector<16x64xf32>
    %33 = arith.mulf %28, %32 : vector<16x64xf32>
    %c0_16 = arith.constant 0 : index
    %c0_17 = arith.constant 0 : index
    %34 = vector.load %arg6[%c0_16, %c0_17] : memref<1x64xf32, #tpu.memory_space<vmem>>, vector<1x64xf32>
    %35 = vector.broadcast %34 : vector<1x64xf32> to vector<16x64xf32>
    %36 = arith.mulf %33, %35 : vector<16x64xf32>
    %c0_18 = arith.constant 0 : index
    %c0_19 = arith.constant 0 : index
    %37 = vector.load %arg7[%c0_18, %c0_19] : memref<1x64xf32, #tpu.memory_space<vmem>>, vector<1x64xf32>
    %38 = vector.broadcast %37 : vector<1x64xf32> to vector<16x64xf32>
    %39 = arith.addf %36, %38 : vector<16x64xf32>
    %c0_20 = arith.constant 0 : index
    %c0_21 = arith.constant 0 : index
    %40 = vector.load %arg8[%c0_20, %c0_21] : memref<16x64xf32, #tpu.memory_space<vmem>>, vector<16x64xf32>
    tpu.vector_store %arg8[%c0_20, %c0_21], %39 {strides = array<i32>} : memref<16x64xf32, #tpu.memory_space<vmem>>, vector<16x64xf32>,
    return
  }
  func.func @transform_0(%arg0: i32) -> (i32, i32) {
    %c0_i32 = arith.constant 0 : i32
    %c0_i32_0 = arith.constant 0 : i32
    return %arg0, %c0_i32 : i32, i32
  }
  func.func @transform_1(%arg0: i32) -> (i32, i32) {
    %c0_i32 = arith.constant 0 : i32
    %c0_i32_0 = arith.constant 0 : i32
    %c0_i32_1 = arith.constant 0 : i32
    return %c0_i32, %c0_i32_0 : i32, i32
  }
  func.func @transform_2(%arg0: i32) -> (i32, i32) {
    %c0_i32 = arith.constant 0 : i32
    %c0_i32_0 = arith.constant 0 : i32
    %c0_i32_1 = arith.constant 0 : i32
    return %c0_i32, %c0_i32_0 : i32, i32
  }
  func.func @transform_3(%arg0: i32) -> (i32, i32) {
    %c0_i32 = arith.constant 0 : i32
    %c0_i32_0 = arith.constant 0 : i32
    %c0_i32_1 = arith.constant 0 : i32
    return %c0_i32, %c0_i32_0 : i32, i32
  }
  func.func @transform_4(%arg0: i32) -> (i32, i32) {
    %c0_i32 = arith.constant 0 : i32
    %c0_i32_0 = arith.constant 0 : i32
    %c0_i32_1 = arith.constant 0 : i32
    return %c0_i32, %c0_i32_0 : i32, i32
  }
  func.func @transform_5(%arg0: i32) -> (i32, i32) {
    %c0_i32 = arith.constant 0 : i32
    %c0_i32_0 = arith.constant 0 : i32
    %c0_i32_1 = arith.constant 0 : i32
    return %c0_i32, %c0_i32_0 : i32, i32
  }
  func.func @transform_6(%arg0: i32) -> (i32, i32) {
    %c0_i32 = arith.constant 0 : i32
    %c0_i32_0 = arith.constant 0 : i32
    %c0_i32_1 = arith.constant 0 : i32
    return %c0_i32, %c0_i32_0 : i32, i32
  }
  func.func @transform_7(%arg0: i32) -> (i32, i32) {
    %c0_i32 = arith.constant 0 : i32
    %c0_i32_0 = arith.constant 0 : i32
    return %arg0, %c0_i32 : i32, i32
  }
}

module attributes {stable_mosaic.version = 11 : i64} {
  func.func @_mha_ln_kernel(%arg0: i32, %arg1: memref<1x8x64xf32, #tpu.memory_space<vmem>>, %arg2: memref<1x8x64xf32, #tpu.memory_space<vmem>>, %arg3: memref<64x192xbf16, #tpu.memory_space<vmem>>, %arg4: memref<1x192xf32, #tpu.memory_space<vmem>>, %arg5: memref<64x64xbf16, #tpu.memory_space<vmem>>, %arg6: memref<1x64xf32, #tpu.memory_space<vmem>>, %arg7: memref<1x64xf32, #tpu.memory_space<vmem>>, %arg8: memref<1x64xf32, #tpu.memory_space<vmem>>, %arg9: memref<1x8x64xf32, #tpu.memory_space<vmem>>) attributes {dimension_semantics = [#tpu.dimension_semantics<parallel>], iteration_bounds = array<i64: 2>, scalar_prefetch = 0 : i64, scratch_operands = 0 : i64, tpu.core_type = #tpu.core_type<tc>, window_params = [{transform_indices = @transform_0, window_bounds = array<i64: 1, 8, 64>}, {transform_indices = @transform_1, window_bounds = array<i64: 1, 8, 64>}, {pipeline_mode = #tpu.pipeline_mode<synchronous>, transform_indices = @transform_2, window_bounds = array<i64: 64, 192>}, {pipeline_mode = #tpu.pipeline_mode<synchronous>, transform_indices = @transform_3, window_bounds = array<i64: 1, 192>}, {pipeline_mode = #tpu.pipeline_mode<synchronous>, transform_indices = @transform_4, window_bounds = array<i64: 64, 64>}, {pipeline_mode = #tpu.pipeline_mode<synchronous>, transform_indices = @transform_5, window_bounds = array<i64: 1, 64>}, {pipeline_mode = #tpu.pipeline_mode<synchronous>, transform_indices = @transform_6, window_bounds = array<i64: 1, 64>}, {pipeline_mode = #tpu.pipeline_mode<synchronous>, transform_indices = @transform_7, window_bounds = array<i64: 1, 64>}, {transform_indices = @transform_8, window_bounds = array<i64: 1, 8, 64>}]} {
    %c0 = arith.constant 0 : index
    %c0_0 = arith.constant 0 : index
    %c0_1 = arith.constant 0 : index
    %0 = vector.load %arg1[%c0, %c0_0, %c0_1] : memref<1x8x64xf32, #tpu.memory_space<vmem>>, vector<1x8x64xf32>
    %1 = vector.shape_cast %0 : vector<1x8x64xf32> to vector<8x64xf32>
    %c0_2 = arith.constant 0 : index
    %c0_3 = arith.constant 0 : index
    %2 = vector.load %arg3[%c0_2, %c0_3] : memref<64x192xbf16, #tpu.memory_space<vmem>>, vector<64x192xbf16>
    %c0_4 = arith.constant 0 : index
    %c0_5 = arith.constant 0 : index
    %3 = vector.load %arg4[%c0_4, %c0_5] : memref<1x192xf32, #tpu.memory_space<vmem>>, vector<1x192xf32>
    %4 = arith.truncf %1 : vector<8x64xf32> to vector<8x64xbf16>
    %cst = arith.constant dense<0.000000e+00> : vector<8x192xf32>
    %5 = tpu.matmul %4, %2, %cst {dimension_numbers = #tpu.dot_dimension_numbers<[1], [0], [0], [1], [0, 0, 1, 1], [], []>} : vector<8x64xbf16>, vector<64x192xbf16>, vector<8x192xf32> -> vector<8x192xf32>
    %6 = vector.broadcast %3 : vector<1x192xf32> to vector<8x192xf32>
    %7 = arith.addf %5, %6 : vector<8x192xf32>
    %8 = vector.extract_strided_slice %7 {offsets = [0, 0], sizes = [8, 64], strides = [1, 1]} : vector<8x192xf32> to vector<8x64xf32>
    %9 = vector.extract_strided_slice %7 {offsets = [0, 64], sizes = [8, 64], strides = [1, 1]} : vector<8x192xf32> to vector<8x64xf32>
    %10 = vector.extract_strided_slice %7 {offsets = [0, 128], sizes = [8, 64], strides = [1, 1]} : vector<8x192xf32> to vector<8x64xf32>
    %11 = arith.truncf %8 : vector<8x64xf32> to vector<8x64xbf16>
    %12 = arith.truncf %9 : vector<8x64xf32> to vector<8x64xbf16>
    %13 = arith.truncf %10 : vector<8x64xf32> to vector<8x64xbf16>
    %14 = vector.extract_strided_slice %11 {offsets = [0, 0], sizes = [8, 16], strides = [1, 1]} : vector<8x64xbf16> to vector<8x16xbf16>
    %15 = vector.extract_strided_slice %12 {offsets = [0, 0], sizes = [8, 16], strides = [1, 1]} : vector<8x64xbf16> to vector<8x16xbf16>
    %cst_6 = arith.constant dense<0.000000e+00> : vector<8x8xf32>
    %16 = tpu.matmul %14, %15, %cst_6 {dimension_numbers = #tpu.dot_dimension_numbers<[1], [1], [0], [0], [0, 0, 1, 0], [], []>} : vector<8x16xbf16>, vector<8x16xbf16>, vector<8x8xf32> -> vector<8x8xf32>
    %cst_7 = arith.constant 2.500000e-01 : f32
    %17 = vector.broadcast %cst_7 : f32 to vector<8x8xf32>
    %18 = arith.mulf %16, %17 : vector<8x8xf32>
    %cst_8 = arith.constant dense<0xFF800000> : vector<8xf32>
    %19 = vector.multi_reduction <maximumf>, %18, %cst_8 [1] : vector<8x8xf32> to vector<8xf32>
    %20 = vector.shape_cast %19 : vector<8xf32> to vector<8x1xf32>
    %21 = vector.broadcast %20 : vector<8x1xf32> to vector<8x8xf32>
    %22 = arith.subf %18, %21 : vector<8x8xf32>
    %23 = math.exp %22 : vector<8x8xf32>
    %cst_9 = arith.constant dense<0.000000e+00> : vector<8xf32>
    %24 = vector.multi_reduction <add>, %23, %cst_9 [1] : vector<8x8xf32> to vector<8xf32>
    %25 = vector.shape_cast %24 : vector<8xf32> to vector<8x1xf32>
    %26 = tpu.reciprocal %25 {approx = true} : vector<8x1xf32> -> vector<8x1xf32>
    %27 = vector.broadcast %26 : vector<8x1xf32> to vector<8x8xf32>
    %28 = arith.mulf %23, %27 : vector<8x8xf32>
    %29 = arith.truncf %28 : vector<8x8xf32> to vector<8x8xbf16>
    %30 = vector.extract_strided_slice %13 {offsets = [0, 0], sizes = [8, 16], strides = [1, 1]} : vector<8x64xbf16> to vector<8x16xbf16>
    %cst_10 = arith.constant dense<0.000000e+00> : vector<8x16xf32>
    %31 = tpu.matmul %29, %30, %cst_10 {dimension_numbers = #tpu.dot_dimension_numbers<[1], [0], [0], [1], [0, 0, 1, 1], [], []>} : vector<8x8xbf16>, vector<8x16xbf16>, vector<8x16xf32> -> vector<8x16xf32>
    %32 = vector.extract_strided_slice %11 {offsets = [0, 16], sizes = [8, 16], strides = [1, 1]} : vector<8x64xbf16> to vector<8x16xbf16>
    %33 = vector.extract_strided_slice %12 {offsets = [0, 16], sizes = [8, 16], strides = [1, 1]} : vector<8x64xbf16> to vector<8x16xbf16>
    %cst_11 = arith.constant dense<0.000000e+00> : vector<8x8xf32>
    %34 = tpu.matmul %32, %33, %cst_11 {dimension_numbers = #tpu.dot_dimension_numbers<[1], [1], [0], [0], [0, 0, 1, 0], [], []>} : vector<8x16xbf16>, vector<8x16xbf16>, vector<8x8xf32> -> vector<8x8xf32>
    %cst_12 = arith.constant 2.500000e-01 : f32
    %35 = vector.broadcast %cst_12 : f32 to vector<8x8xf32>
    %36 = arith.mulf %34, %35 : vector<8x8xf32>
    %cst_13 = arith.constant dense<0xFF800000> : vector<8xf32>
    %37 = vector.multi_reduction <maximumf>, %36, %cst_13 [1] : vector<8x8xf32> to vector<8xf32>
    %38 = vector.shape_cast %37 : vector<8xf32> to vector<8x1xf32>
    %39 = vector.broadcast %38 : vector<8x1xf32> to vector<8x8xf32>
    %40 = arith.subf %36, %39 : vector<8x8xf32>
    %41 = math.exp %40 : vector<8x8xf32>
    %cst_14 = arith.constant dense<0.000000e+00> : vector<8xf32>
    %42 = vector.multi_reduction <add>, %41, %cst_14 [1] : vector<8x8xf32> to vector<8xf32>
    %43 = vector.shape_cast %42 : vector<8xf32> to vector<8x1xf32>
    %44 = tpu.reciprocal %43 {approx = true} : vector<8x1xf32> -> vector<8x1xf32>
    %45 = vector.broadcast %44 : vector<8x1xf32> to vector<8x8xf32>
    %46 = arith.mulf %41, %45 : vector<8x8xf32>
    %47 = arith.truncf %46 : vector<8x8xf32> to vector<8x8xbf16>
    %48 = vector.extract_strided_slice %13 {offsets = [0, 16], sizes = [8, 16], strides = [1, 1]} : vector<8x64xbf16> to vector<8x16xbf16>
    %cst_15 = arith.constant dense<0.000000e+00> : vector<8x16xf32>
    %49 = tpu.matmul %47, %48, %cst_15 {dimension_numbers = #tpu.dot_dimension_numbers<[1], [0], [0], [1], [0, 0, 1, 1], [], []>} : vector<8x8xbf16>, vector<8x16xbf16>, vector<8x16xf32> -> vector<8x16xf32>
    %50 = vector.extract_strided_slice %11 {offsets = [0, 32], sizes = [8, 16], strides = [1, 1]} : vector<8x64xbf16> to vector<8x16xbf16>
    %51 = vector.extract_strided_slice %12 {offsets = [0, 32], sizes = [8, 16], strides = [1, 1]} : vector<8x64xbf16> to vector<8x16xbf16>
    %cst_16 = arith.constant dense<0.000000e+00> : vector<8x8xf32>
    %52 = tpu.matmul %50, %51, %cst_16 {dimension_numbers = #tpu.dot_dimension_numbers<[1], [1], [0], [0], [0, 0, 1, 0], [], []>} : vector<8x16xbf16>, vector<8x16xbf16>, vector<8x8xf32> -> vector<8x8xf32>
    %cst_17 = arith.constant 2.500000e-01 : f32
    %53 = vector.broadcast %cst_17 : f32 to vector<8x8xf32>
    %54 = arith.mulf %52, %53 : vector<8x8xf32>
    %cst_18 = arith.constant dense<0xFF800000> : vector<8xf32>
    %55 = vector.multi_reduction <maximumf>, %54, %cst_18 [1] : vector<8x8xf32> to vector<8xf32>
    %56 = vector.shape_cast %55 : vector<8xf32> to vector<8x1xf32>
    %57 = vector.broadcast %56 : vector<8x1xf32> to vector<8x8xf32>
    %58 = arith.subf %54, %57 : vector<8x8xf32>
    %59 = math.exp %58 : vector<8x8xf32>
    %cst_19 = arith.constant dense<0.000000e+00> : vector<8xf32>
    %60 = vector.multi_reduction <add>, %59, %cst_19 [1] : vector<8x8xf32> to vector<8xf32>
    %61 = vector.shape_cast %60 : vector<8xf32> to vector<8x1xf32>
    %62 = tpu.reciprocal %61 {approx = true} : vector<8x1xf32> -> vector<8x1xf32>
    %63 = vector.broadcast %62 : vector<8x1xf32> to vector<8x8xf32>
    %64 = arith.mulf %59, %63 : vector<8x8xf32>
    %65 = arith.truncf %64 : vector<8x8xf32> to vector<8x8xbf16>
    %66 = vector.extract_strided_slice %13 {offsets = [0, 32], sizes = [8, 16], strides = [1, 1]} : vector<8x64xbf16> to vector<8x16xbf16>
    %cst_20 = arith.constant dense<0.000000e+00> : vector<8x16xf32>
    %67 = tpu.matmul %65, %66, %cst_20 {dimension_numbers = #tpu.dot_dimension_numbers<[1], [0], [0], [1], [0, 0, 1, 1], [], []>} : vector<8x8xbf16>, vector<8x16xbf16>, vector<8x16xf32> -> vector<8x16xf32>
    %68 = vector.extract_strided_slice %11 {offsets = [0, 48], sizes = [8, 16], strides = [1, 1]} : vector<8x64xbf16> to vector<8x16xbf16>
    %69 = vector.extract_strided_slice %12 {offsets = [0, 48], sizes = [8, 16], strides = [1, 1]} : vector<8x64xbf16> to vector<8x16xbf16>
    %cst_21 = arith.constant dense<0.000000e+00> : vector<8x8xf32>
    %70 = tpu.matmul %68, %69, %cst_21 {dimension_numbers = #tpu.dot_dimension_numbers<[1], [1], [0], [0], [0, 0, 1, 0], [], []>} : vector<8x16xbf16>, vector<8x16xbf16>, vector<8x8xf32> -> vector<8x8xf32>
    %cst_22 = arith.constant 2.500000e-01 : f32
    %71 = vector.broadcast %cst_22 : f32 to vector<8x8xf32>
    %72 = arith.mulf %70, %71 : vector<8x8xf32>
    %cst_23 = arith.constant dense<0xFF800000> : vector<8xf32>
    %73 = vector.multi_reduction <maximumf>, %72, %cst_23 [1] : vector<8x8xf32> to vector<8xf32>
    %74 = vector.shape_cast %73 : vector<8xf32> to vector<8x1xf32>
    %75 = vector.broadcast %74 : vector<8x1xf32> to vector<8x8xf32>
    %76 = arith.subf %72, %75 : vector<8x8xf32>
    %77 = math.exp %76 : vector<8x8xf32>
    %cst_24 = arith.constant dense<0.000000e+00> : vector<8xf32>
    %78 = vector.multi_reduction <add>, %77, %cst_24 [1] : vector<8x8xf32> to vector<8xf32>
    %79 = vector.shape_cast %78 : vector<8xf32> to vector<8x1xf32>
    %80 = tpu.reciprocal %79 {approx = true} : vector<8x1xf32> -> vector<8x1xf32>
    %81 = vector.broadcast %80 : vector<8x1xf32> to vector<8x8xf32>
    %82 = arith.mulf %77, %81 : vector<8x8xf32>
    %83 = arith.truncf %82 : vector<8x8xf32> to vector<8x8xbf16>
    %84 = vector.extract_strided_slice %13 {offsets = [0, 48], sizes = [8, 16], strides = [1, 1]} : vector<8x64xbf16> to vector<8x16xbf16>
    %cst_25 = arith.constant dense<0.000000e+00> : vector<8x16xf32>
    %85 = tpu.matmul %83, %84, %cst_25 {dimension_numbers = #tpu.dot_dimension_numbers<[1], [0], [0], [1], [0, 0, 1, 1], [], []>} : vector<8x8xbf16>, vector<8x16xbf16>, vector<8x16xf32> -> vector<8x16xf32>
    %86 = tpu.concatenate %31, %49, %67, %85 in 1 : vector<8x16xf32>, vector<8x16xf32>, vector<8x16xf32>, vector<8x16xf32> -> vector<8x64xf32>
    %87 = arith.truncf %86 : vector<8x64xf32> to vector<8x64xbf16>
    %c0_26 = arith.constant 0 : index
    %c0_27 = arith.constant 0 : index
    %88 = vector.load %arg5[%c0_26, %c0_27] : memref<64x64xbf16, #tpu.memory_space<vmem>>, vector<64x64xbf16>
    %cst_28 = arith.constant dense<0.000000e+00> : vector<8x64xf32>
    %89 = tpu.matmul %87, %88, %cst_28 {dimension_numbers = #tpu.dot_dimension_numbers<[1], [0], [0], [1], [0, 0, 1, 1], [], []>} : vector<8x64xbf16>, vector<64x64xbf16>, vector<8x64xf32> -> vector<8x64xf32>
    %c0_29 = arith.constant 0 : index
    %c0_30 = arith.constant 0 : index
    %90 = vector.load %arg6[%c0_29, %c0_30] : memref<1x64xf32, #tpu.memory_space<vmem>>, vector<1x64xf32>
    %91 = vector.broadcast %90 : vector<1x64xf32> to vector<8x64xf32>
    %92 = arith.addf %89, %91 : vector<8x64xf32>
    %93 = arith.addf %1, %92 : vector<8x64xf32>
    %cst_31 = arith.constant dense<0.000000e+00> : vector<8xf32>
    %94 = vector.multi_reduction <add>, %93, %cst_31 [1] : vector<8x64xf32> to vector<8xf32>
    %95 = vector.shape_cast %94 : vector<8xf32> to vector<8x1xf32>
    %cst_32 = arith.constant 6.400000e+01 : f32
    %96 = vector.broadcast %cst_32 : f32 to vector<8x1xf32>
    %97 = arith.divf %95, %96 : vector<8x1xf32>
    %98 = vector.broadcast %97 : vector<8x1xf32> to vector<8x64xf32>
    %99 = arith.subf %93, %98 : vector<8x64xf32>
    %100 = arith.mulf %99, %99 : vector<8x64xf32>
    %cst_33 = arith.constant dense<0.000000e+00> : vector<8xf32>
    %101 = vector.multi_reduction <add>, %100, %cst_33 [1] : vector<8x64xf32> to vector<8xf32>
    %102 = vector.shape_cast %101 : vector<8xf32> to vector<8x1xf32>
    %cst_34 = arith.constant 6.400000e+01 : f32
    %103 = vector.broadcast %cst_34 : f32 to vector<8x1xf32>
    %104 = arith.divf %102, %103 : vector<8x1xf32>
    %105 = vector.broadcast %97 : vector<8x1xf32> to vector<8x64xf32>
    %106 = arith.subf %93, %105 : vector<8x64xf32>
    %cst_35 = arith.constant 9.99999974E-6 : f32
    %107 = vector.broadcast %cst_35 : f32 to vector<8x1xf32>
    %108 = arith.addf %104, %107 : vector<8x1xf32>
    %109 = math.rsqrt %108 : vector<8x1xf32>
    %110 = vector.broadcast %109 : vector<8x1xf32> to vector<8x64xf32>
    %111 = arith.mulf %106, %110 : vector<8x64xf32>
    %c0_36 = arith.constant 0 : index
    %c0_37 = arith.constant 0 : index
    %112 = vector.load %arg7[%c0_36, %c0_37] : memref<1x64xf32, #tpu.memory_space<vmem>>, vector<1x64xf32>
    %113 = vector.broadcast %112 : vector<1x64xf32> to vector<8x64xf32>
    %114 = arith.mulf %111, %113 : vector<8x64xf32>
    %c0_38 = arith.constant 0 : index
    %c0_39 = arith.constant 0 : index
    %115 = vector.load %arg8[%c0_38, %c0_39] : memref<1x64xf32, #tpu.memory_space<vmem>>, vector<1x64xf32>
    %116 = vector.broadcast %115 : vector<1x64xf32> to vector<8x64xf32>
    %117 = arith.addf %114, %116 : vector<8x64xf32>
    %c0_40 = arith.constant 0 : index
    %c0_41 = arith.constant 0 : index
    %c0_42 = arith.constant 0 : index
    %118 = vector.load %arg9[%c0_40, %c0_41, %c0_42] : memref<1x8x64xf32, #tpu.memory_space<vmem>>, vector<1x8x64xf32>
    %119 = vector.shape_cast %118 : vector<1x8x64xf32> to vector<8x64xf32>
    %120 = vector.shape_cast %117 : vector<8x64xf32> to vector<1x8x64xf32>
    tpu.vector_store %arg9[%c0_40, %c0_41, %c0_42], %120 {strides = array<i32>} : memref<1x8x64xf32, #tpu.memory_space<vmem>>, vector<1x8x64xf32>,
    return
  }
  func.func @transform_0(%arg0: i32) -> (i32, i32, i32) {
    %c0_i32 = arith.constant 0 : i32
    %c0_i32_0 = arith.constant 0 : i32
    %c0_i32_1 = arith.constant 0 : i32
    return %arg0, %c0_i32, %c0_i32_0 : i32, i32, i32
  }
  func.func @transform_1(%arg0: i32) -> (i32, i32, i32) {
    %c0_i32 = arith.constant 0 : i32
    %c0_i32_0 = arith.constant 0 : i32
    %c0_i32_1 = arith.constant 0 : i32
    return %arg0, %c0_i32, %c0_i32_0 : i32, i32, i32
  }
  func.func @transform_2(%arg0: i32) -> (i32, i32) {
    %c0_i32 = arith.constant 0 : i32
    %c0_i32_0 = arith.constant 0 : i32
    %c0_i32_1 = arith.constant 0 : i32
    return %c0_i32, %c0_i32_0 : i32, i32
  }
  func.func @transform_3(%arg0: i32) -> (i32, i32) {
    %c0_i32 = arith.constant 0 : i32
    %c0_i32_0 = arith.constant 0 : i32
    %c0_i32_1 = arith.constant 0 : i32
    return %c0_i32, %c0_i32_0 : i32, i32
  }
  func.func @transform_4(%arg0: i32) -> (i32, i32) {
    %c0_i32 = arith.constant 0 : i32
    %c0_i32_0 = arith.constant 0 : i32
    %c0_i32_1 = arith.constant 0 : i32
    return %c0_i32, %c0_i32_0 : i32, i32
  }
  func.func @transform_5(%arg0: i32) -> (i32, i32) {
    %c0_i32 = arith.constant 0 : i32
    %c0_i32_0 = arith.constant 0 : i32
    %c0_i32_1 = arith.constant 0 : i32
    return %c0_i32, %c0_i32_0 : i32, i32
  }
  func.func @transform_6(%arg0: i32) -> (i32, i32) {
    %c0_i32 = arith.constant 0 : i32
    %c0_i32_0 = arith.constant 0 : i32
    %c0_i32_1 = arith.constant 0 : i32
    return %c0_i32, %c0_i32_0 : i32, i32
  }
  func.func @transform_7(%arg0: i32) -> (i32, i32) {
    %c0_i32 = arith.constant 0 : i32
    %c0_i32_0 = arith.constant 0 : i32
    %c0_i32_1 = arith.constant 0 : i32
    return %c0_i32, %c0_i32_0 : i32, i32
  }
  func.func @transform_8(%arg0: i32) -> (i32, i32, i32) {
    %c0_i32 = arith.constant 0 : i32
    %c0_i32_0 = arith.constant 0 : i32
    %c0_i32_1 = arith.constant 0 : i32
    return %arg0, %c0_i32, %c0_i32_0 : i32, i32, i32
  }
}

module attributes {stable_mosaic.version = 11 : i64} {
  func.func @_final_kernel(%arg0: i32, %arg1: memref<16x64xf32, #tpu.memory_space<vmem>>, %arg2: memref<64x64xbf16, #tpu.memory_space<vmem>>, %arg3: memref<1x64xf32, #tpu.memory_space<vmem>>, %arg4: memref<16x64xf32, #tpu.memory_space<vmem>>) attributes {dimension_semantics = [#tpu.dimension_semantics<arbitrary>], iteration_bounds = array<i64: 1>, scalar_prefetch = 0 : i64, scratch_operands = 0 : i64, tpu.core_type = #tpu.core_type<tc>, window_params = [{pipeline_mode = #tpu.pipeline_mode<synchronous>, transform_indices = @transform_0, window_bounds = array<i64: 16, 64>}, {pipeline_mode = #tpu.pipeline_mode<synchronous>, transform_indices = @transform_1, window_bounds = array<i64: 64, 64>}, {pipeline_mode = #tpu.pipeline_mode<synchronous>, transform_indices = @transform_2, window_bounds = array<i64: 1, 64>}, {pipeline_mode = #tpu.pipeline_mode<synchronous>, transform_indices = @transform_3, window_bounds = array<i64: 16, 64>}]} {
    %c0 = arith.constant 0 : index
    %c0_0 = arith.constant 0 : index
    %0 = vector.load %arg1[%c0, %c0_0] : memref<16x64xf32, #tpu.memory_space<vmem>>, vector<16x64xf32>
    %1 = arith.truncf %0 : vector<16x64xf32> to vector<16x64xbf16>
    %c0_1 = arith.constant 0 : index
    %c0_2 = arith.constant 0 : index
    %2 = vector.load %arg2[%c0_1, %c0_2] : memref<64x64xbf16, #tpu.memory_space<vmem>>, vector<64x64xbf16>
    %cst = arith.constant dense<0.000000e+00> : vector<16x64xf32>
    %3 = tpu.matmul %1, %2, %cst {dimension_numbers = #tpu.dot_dimension_numbers<[1], [0], [0], [1], [0, 0, 1, 1], [], []>} : vector<16x64xbf16>, vector<64x64xbf16>, vector<16x64xf32> -> vector<16x64xf32>
    %c0_3 = arith.constant 0 : index
    %c0_4 = arith.constant 0 : index
    %4 = vector.load %arg3[%c0_3, %c0_4] : memref<1x64xf32, #tpu.memory_space<vmem>>, vector<1x64xf32>
    %5 = vector.broadcast %4 : vector<1x64xf32> to vector<16x64xf32>
    %6 = arith.addf %3, %5 : vector<16x64xf32>
    %7 = vector.extract_strided_slice %6 {offsets = [0, 0], sizes = [8, 64], strides = [1, 1]} : vector<16x64xf32> to vector<8x64xf32>
    %cst_5 = arith.constant dense<0xFF800000> : vector<64xf32>
    %8 = vector.multi_reduction <maximumf>, %7, %cst_5 [0] : vector<8x64xf32> to vector<64xf32>
    %9 = vector.shape_cast %8 : vector<64xf32> to vector<1x64xf32>
    %10 = vector.broadcast %9 : vector<1x64xf32> to vector<8x64xf32>
    %11 = arith.subf %7, %10 : vector<8x64xf32>
    %12 = math.exp %11 : vector<8x64xf32>
    %cst_6 = arith.constant dense<0.000000e+00> : vector<64xf32>
    %13 = vector.multi_reduction <add>, %12, %cst_6 [0] : vector<8x64xf32> to vector<64xf32>
    %14 = vector.shape_cast %13 : vector<64xf32> to vector<1x64xf32>
    %15 = vector.broadcast %14 : vector<1x64xf32> to vector<8x64xf32>
    %16 = arith.divf %12, %15 : vector<8x64xf32>
    %c0_7 = arith.constant 0 : index
    %c0_8 = arith.constant 0 : index
    %17 = vector.load %arg4[%c0_7, %c0_8] : memref<16x64xf32, #tpu.memory_space<vmem>>, vector<8x64xf32>
    tpu.vector_store %arg4[%c0_7, %c0_8], %16 {strides = array<i32>} : memref<16x64xf32, #tpu.memory_space<vmem>>, vector<8x64xf32>,
    %18 = vector.extract_strided_slice %6 {offsets = [8, 0], sizes = [8, 64], strides = [1, 1]} : vector<16x64xf32> to vector<8x64xf32>
    %cst_9 = arith.constant dense<0xFF800000> : vector<64xf32>
    %19 = vector.multi_reduction <maximumf>, %18, %cst_9 [0] : vector<8x64xf32> to vector<64xf32>
    %20 = vector.shape_cast %19 : vector<64xf32> to vector<1x64xf32>
    %21 = vector.broadcast %20 : vector<1x64xf32> to vector<8x64xf32>
    %22 = arith.subf %18, %21 : vector<8x64xf32>
    %23 = math.exp %22 : vector<8x64xf32>
    %cst_10 = arith.constant dense<0.000000e+00> : vector<64xf32>
    %24 = vector.multi_reduction <add>, %23, %cst_10 [0] : vector<8x64xf32> to vector<64xf32>
    %25 = vector.shape_cast %24 : vector<64xf32> to vector<1x64xf32>
    %26 = vector.broadcast %25 : vector<1x64xf32> to vector<8x64xf32>
    %27 = arith.divf %23, %26 : vector<8x64xf32>
    %c8 = arith.constant 8 : index
    %c0_11 = arith.constant 0 : index
    %28 = vector.load %arg4[%c8, %c0_11] : memref<16x64xf32, #tpu.memory_space<vmem>>, vector<8x64xf32>
    tpu.vector_store %arg4[%c8, %c0_11], %27 {strides = array<i32>} : memref<16x64xf32, #tpu.memory_space<vmem>>, vector<8x64xf32>,
    return
  }
  func.func @transform_0(%arg0: i32) -> (i32, i32) {
    %c0_i32 = arith.constant 0 : i32
    %c0_i32_0 = arith.constant 0 : i32
    %c0_i32_1 = arith.constant 0 : i32
    return %c0_i32, %c0_i32_0 : i32, i32
  }
  func.func @transform_1(%arg0: i32) -> (i32, i32) {
    %c0_i32 = arith.constant 0 : i32
    %c0_i32_0 = arith.constant 0 : i32
    %c0_i32_1 = arith.constant 0 : i32
    return %c0_i32, %c0_i32_0 : i32, i32
  }
  func.func @transform_2(%arg0: i32) -> (i32, i32) {
    %c0_i32 = arith.constant 0 : i32
    %c0_i32_0 = arith.constant 0 : i32
    %c0_i32_1 = arith.constant 0 : i32
    return %c0_i32, %c0_i32_0 : i32, i32
  }
  func.func @transform_3(%arg0: i32) -> (i32, i32) {
    %c0_i32 = arith.constant 0 : i32
    %c0_i32_0 = arith.constant 0 : i32
    %c0_i32_1 = arith.constant 0 : i32
    return %c0_i32, %c0_i32_0 : i32, i32
  }
}

</mosaic_0001>

<bundles_post_ra>
// kernel: transformer_decoder.9
= control target key start
LH: loop header
LB: loop body
LE: loop exit
PB: predicated region body
PF: predicated region fallthrough
CT: control target
= control target key end

     0   :  { %v363_v0 = vmov 0.0   ;;  %vm364_vm0 = vmmov 0   ;;  %vm69_vm1 = vcmask 523264   ;;  %s472_s1 = inlined_call_operand.vmem [shape: bf16[64,128], index: 1, kind: input, shape index: {}]   ;;  %s473_s3 = inlined_call_operand.vmem [shape: bf16[128,64], index: 3, kind: input, shape index: {}]   ;;  %s474_s0 = inlined_call_operand.vmem [shape: f32[16,64], index: 0, kind: input, shape index: {}]   ;;  %s475_s2 = inlined_call_operand.vmem [shape: f32[1,128], index: 2, kind: input, shape index: {}]   ;;  %s476_s4 = inlined_call_operand.vmem [shape: f32[1,64], index: 4, kind: input, shape index: {}]   ;;  %s477_s5 = inlined_call_operand.vmem [shape: f32[1,64], index: 5, kind: input, shape index: {}]   ;;  %s478_s6 = inlined_call_operand.vmem [shape: f32[1,64], index: 6, kind: input, shape index: {}]   ;;  %s479_s7 = inlined_call_operand.vmem [shape: f32[16,64], index: 7, kind: output, shape index: {}]  }
   0x1   :  { %313 = vmatprep.subr.bf16.mxu0 %v363_v0  ;;  %v347_v1 = vld [vmem:[%s472_s1] sm:$0xff]   ;;  %321 = vmatprep.mubr.msk.bf16.mxu0 %vm364_vm0, %v363_v0  ;;  %v348_v2 = vld [vmem:[%s472_s1 + $0x8] sm:$0xff]   ;;  %v349_v4 = vld [vmem:[%s472_s1 + $0x10] sm:$0xff]  }
   0x2   :  { %325 = vmatprep.subr.bf16.mxu1 %v363_v0  ;;  %341 = vmatprep.mubr.msk.bf16.mxu1 %vm364_vm0, %v363_v0  ;;  %v351_v3 = vld [vmem:[%s473_s3] sm:$0xff]   ;;  %v352_v5 = vld [vmem:[%s473_s3 + $0x8] sm:$0xff]   ;;  %v350_v6 = vld [vmem:[%s472_s1 + $0x18] sm:$0xff]  }
   0x3   :  { %314 = vmatpush3.bf16.msra.mxu0 %v347_v1  ;;  %326 = vmatpush3.bf16.msra.mxu1 %v351_v3  ;;  %v27_v7 = vld [vmem:[%s474_s0] sm:$0xff]  ;;  %v28_v8 = vld [vmem:[%s474_s0 + $0x8] sm:$0xff]  ;;  %v353_v9 = vld [vmem:[%s473_s3 + $0x10] sm:$0xff]  }
   0x4   :  { %315 = vmatprep.subr.bf16.mxu0 %v363_v0  ;;  %327 = vmatprep.subr.bf16.mxu1 %v363_v0  ;;  %v29_v10 = vpack.c.bf16 %v28_v8, %v27_v7  ;;  %v354_v11 = vld [vmem:[%s473_s3 + $0x18] sm:$0xff]   ;;  %v355_v12 = vld [vmem:[%s473_s3 + $0x20] sm:$0xff]   ;;  %v356_v13 = vld [vmem:[%s473_s3 + $0x28] sm:$0xff]  }
   0x5   :  { %v357_v14 = vld [vmem:[%s473_s3 + $0x30] sm:$0xff]   ;;  %v358_v15 = vld [vmem:[%s473_s3 + $0x38] sm:$0xff]   ;;  %v282_v16 = vld [vmem:[%s475_s2] ss:$0 sm:$0xff] }
   0x6   :  { %v288_v26 = vld [vmem:[%s476_s4] ss:$0 sm:$0xff] }
   0x7   :  { %316 = vmatpush3.bf16.msra.mxu0 %v348_v2  ;;  %328 = vmatpush3.bf16.msra.mxu1 %v352_v5  ;;  %v297_v54 = vld [vmem:[%s477_s5] ss:$0 sm:$0xff] }
   0x8   :  { %317 = vmatprep.subr.bf16.mxu0 %v363_v0  ;;  %329 = vmatprep.subr.bf16.mxu1 %v363_v0  ;;  %v298_v56 = vld [vmem:[%s478_s6] ss:$0 sm:$0xff] }
   0xb   :  { %318 = vmatpush3.bf16.msra.mxu0 %v349_v4  ;;  %330 = vmatpush3.bf16.msra.mxu1 %v353_v9 }
   0xc   :  { %319 = vmatprep.subr.bf16.mxu0 %v363_v0  ;;  %331 = vmatprep.subr.bf16.mxu1 %v363_v0 }
   0xf   :  { %320 = vmatpush3.bf16.msra.mxu0 %v350_v6  ;;  %332 = vmatpush3.bf16.msra.mxu1 %v354_v11 }
  0x10   :  { %333 = vmatprep.subr.bf16.mxu1 %v363_v0 }
  0x12   :  { %322 = vmatmul.mubr.msk.bf16.vlgmr.msra.gmra.mrb[0].mxu0 %vm69_vm1, %v29_v10 }
  0x13   :  { %334 = vmatpush3.bf16.msra.mxu1 %v355_v12 }
  0x14   :  { %335 = vmatprep.subr.bf16.mxu1 %v363_v0 }
  0x17   :  { %336 = vmatpush3.bf16.msra.mxu1 %v356_v13 }
  0x18   :  { %337 = vmatprep.subr.bf16.mxu1 %v363_v0 }
  0x1b   :  { %338 = vmatpush3.bf16.msra.mxu1 %v357_v14 }
  0x1c   :  { %339 = vmatprep.subr.bf16.mxu1 %v363_v0 }
  0x1f   :  { %340 = vmatpush3.bf16.msra.mxu1 %v358_v15 }
  0xe5   :  { %v107_v17 = vpop.f32.mrb[0].mxu0 }
  0xe6   :  { %v108_v18 = vadd.f32 %v282_v16, %v107_v17  ;;  %v323_v19 = vpop.f32.mrb[1].mxu0 }
  0xe7   :  { %v110_v20 = vpop.f32.mrb[2].mxu0 }
  0xe8   :  { %v111_v21 = vadd.f32 %v282_v16, %v110_v20  ;;  %v324_v22 = vpop.f32.mrb[3].mxu0  ;;  %v114_v23 = vmax.f32 %v108_v18, 0.0 }
  0xea   :  { %v115_v24 = vmax.f32 %v111_v21, 0.0 }
  0xec   :  { %v116_v25 = vpack.c.bf16 %v115_v24, %v114_v23 }
  0xee   :  { %342 = vmatmul.mubr.bf16.vlgmr.msra.gmra.mrb[0].mxu1 %v116_v25 }
 0x1c1   :  { %v222_v27 = vpop.f32.mrb[0].mxu1 }
 0x1c2   :  { %v223_v28 = vadd.f32 %v288_v26, %v222_v27  ;;  %v343_v29 = vpop.f32.mrb[1].mxu1 }
 0x1c3   :  { %v225_v30 = vpop.f32.mrb[2].mxu1 }
 0x1c4   :  { %v226_v31 = vadd.f32 %v288_v26, %v225_v30  ;;  %v344_v32 = vpop.f32.mrb[3].mxu1  ;;  %v229_v33 = vadd.f32 %v223_v28, %v27_v7 }
 0x1c6   :  { %v231_v34 = vsel %vm69_vm1, %v229_v33, 0.0  ;;  %v230_v35 = vadd.f32 %v226_v31, %v28_v8 }
 0x1c7   :  { %232 = vadd.xlane.f32.xlu0 %v231_v34 }
 0x1c8   :  { %v234_v36 = vsel %vm69_vm1, %v230_v35, 0.0 }
 0x1cb   :  { %235 = vadd.xlane.f32.xlu0 %v234_v36 }
 0x254   :  { %v233_v37 = vpop.xlane.xlu0 %232 }
 0x255   :  { %v238_v38 = vmul.f32 0.015625, %v233_v37 }
 0x257   :  { %v240_v39 = vsub.f32 %v229_v33, %v238_v38 }
 0x258   :  { %v236_v40 = vpop.xlane.xlu0 %235 }
 0x259   :  { %v239_v41 = vmul.f32 0.015625, %v236_v40  ;;  %v242_v42 = vmul.f32 %v240_v39, %v240_v39 }
 0x25b   :  { %v241_v43 = vsub.f32 %v230_v35, %v239_v41  ;;  %v244_v44 = vsel %vm69_vm1, %v242_v42, 0.0 }
 0x25c   :  { %245 = vadd.xlane.f32.xlu1 %v244_v44 }
 0x25d   :  { %v243_v45 = vmul.f32 %v241_v43, %v241_v43 }
 0x25f   :  { %v247_v46 = vsel %vm69_vm1, %v243_v45, 0.0 }
 0x260   :  { %248 = vadd.xlane.f32.xlu1 %v247_v46 }
 0x2e9   :  { %v246_v47 = vpop.xlane.xlu1 %245 }
 0x2ea   :  { %v250_v48 = vmul.f32 0.015625, %v246_v47 }
 0x2ec   :  { %v252_v49 = vadd.f32 1e-05, %v250_v48 }
 0x2ed   :  { %v249_v50 = vpop.xlane.xlu1 %248 }
 0x2ee   :  { %359 = vrsqrt.f32 %v252_v49  ;;  %v251_v51 = vmul.f32 0.015625, %v249_v50 }
 0x2f0   :  { %v253_v52 = vadd.f32 1e-05, %v251_v51 }
 0x2f2   :  { %361 = vrsqrt.f32 %v253_v52 }
 0x2f8   :  { %v360_v53 = vpop.eup %359 }
 0x2f9   :  { %v256_v55 = vmul.f32 %v360_v53, %v240_v39 }
 0x2fb   :  { %v265_v57 = vmul.f32 %v297_v54, %v256_v55 }
 0x2fc   :  { %v362_v58 = vpop.eup %361 }
 0x2fd   :  { %v274_v59 = vadd.f32 %v298_v56, %v265_v57  ;;  %v257_v60 = vmul.f32 %v362_v58, %v241_v43 }
 0x2ff   :  { %276 = vst.msk [vmem:[%s479_s7] sm:$0xff] %vm69_vm1, %v274_v59  ;;  %v266_v61 = vmul.f32 %v297_v54, %v257_v60 }
 0x301   :  { %v275_v62 = vadd.f32 %v298_v56, %v266_v61 }
 0x303   :  { %277 = vst.msk [vmem:[%s479_s7 + $0x8] sm:$0xff] %vm69_vm1, %v275_v62 }

// kernel: transformer_decoder.7
= control target key start
LH: loop header
LB: loop body
LE: loop exit
PB: predicated region body
PF: predicated region fallthrough
CT: control target
= control target key end

     0   :  { %13 = vsyncpa [#allocation3], 0  ;;  %s1377_s26 = smov 0   ;;  %s1550_s0 = inlined_call_operand.vmem [shape: f32[2,8,64], index: 0, kind: input, shape index: {}, may-alias: {0,1}]   ;;  %s1551_s1 = inlined_call_operand.vmem [shape: f32[2,8,64], index: 1, kind: input, shape index: {}, may-alias: {0,1}]   ;;  %s1552_s2 = inlined_call_operand.hbm [shape: bf16[64,192], index: 2, kind: input, shape index: {}]   ;;  %s1553_s3 = inlined_call_operand.vmem [shape: f32[1,192], index: 3, kind: input, shape index: {}]   ;;  %s1554_s4 = inlined_call_operand.vmem [shape: bf16[64,64], index: 4, kind: input, shape index: {}]   ;;  %s1555_s5 = inlined_call_operand.vmem [shape: f32[1,64], index: 5, kind: input, shape index: {}]   ;;  %s1556_s6 = inlined_call_operand.vmem [shape: f32[1,64], index: 6, kind: input, shape index: {}]   ;;  %s1557_s7 = inlined_call_operand.vmem [shape: f32[1,64], index: 7, kind: input, shape index: {}]   ;;  %s1558_s8 = inlined_call_operand.vmem [shape: f32[2,8,64], index: 8, kind: output, shape index: {}]  }
   0x1 LB: > { %s1383_s27 = sadd.s32 4294967295, %s1317_s26   ;;  %p1099_p0 = scmp.ge.s32.totalorder %s1317_s26, 1  ;;  %s1317_s26 = sphi %s1377_s26, %s19_s26  }
   0x2   : > { %p228_p1 = scmp.lt.s32.totalorder %s1317_s26, 3  ;;  %s1319_s28 = smov [#allocation2]  }
   0x3   : > { %s240_s29 = sshll.u32 %s1319_s28, 4  ;;  %p1559_p3 = scmp.eq.s32.totalorder %s1383_s27, 0  ;;  %s241_s29 = int_to_ptr.vmem [resolvable:$true] %s240_s29 }
   0x4   : > { %p1387_p2 = pnand %p1099_p0, %p228_p1  ;;  %s1279_s12 = scalar_lea.hbm %s1552_s2, 1024 }
   0x5   : > { %p1280_p6 = scmp.ne.s32.totalorder %s1552_s2, %s1279_s12  ;;  %p1286_p10 = scmp.lt.u32.totalorder %s1279_s12, %s1552_s2 }
   0x6   : > { %s1561_s30 = scalar_select %p1387_p2, 1, 0 }
   0x7   : > { %p1218_p4 = pneg %p1387_p2 }
   0x9   : > { %p1396_p5 = pnand %p1559_p3, %p1218_p4 }
   0xb   : > { %p1281_p7 = pneg %p1396_p5 }
   0xd   : > { %p1282_p8 = pnand %p1281_p7, %p1280_p6 }
   0xf   : > { %p1283_p9 = pneg %p1282_p8 }
  0x11   : > { %p1288_p11 = pnand %p1286_p10, %p1283_p9 }
  0x13   : > { %1291 = shalt.err (!%p1288_p11)
}
  0x14   : > { %s1292_s17 = scalar_lea.vmem %s241_s29, 1024  ;;  %p1300_p1 = scmp.lt.s32.totalorder %s241_s29, %s241_s29 }
  0x15   : > { %p1293_p12 = scmp.ne.s32.totalorder %s241_s29, %s1292_s17  ;;  %p1301_p4 = scmp.lt.s32.totalorder %s1292_s17, %s1292_s17 }
  0x17   : > { %p1295_p13 = pnand %p1293_p12, %p1281_p7  ;;  %p1302_p3 = por %p1301_p4, %p1300_p1 }
  0x19   : > { %p1296_p0 = pneg %p1295_p13 }
  0x1b   : > { %p1303_p2 = pnand %p1302_p3, %p1296_p0 }
  0x1d   : > { %1306 = shalt.err (!%p1303_p2)
}
  0x1e   : > { %s1320_s18 = smov 128   ;;  %s1321_s19 = smov 8  }
  0x1f   : > { %1221 = dma.hbm_to_vmem [thread:$0]  (!%p1396_p5), %s1552_s2, 1024, %s241_s29, [#allocation3], %s1320_s18, %s1320_s18, %s1321_s19  }
  0x20   : > { %p1563_p6 = scmp.ne.s32.totalorder %s1561_s30, 0 }
  0x21   : > { %p1564_p8 = scmp.eq.s32.totalorder (!%p1563_p6), %s1383_s27, 0 }
  0x22   : > { %285 = sbr.rel (%p1563_p6) target bundleno = 2350 (0x92e), region = 52 }
  0x29   : > { %1312 = dma.done.wait (%p1564_p8), [#allocation3], 1024   ;;  %p1565_p7 = pmov %p1564_p8 }
  0x2a   : > { %v1322_v0 = vmov 0   ;;  %p321_p2 = scmp.lt.s32.totalorder %s1383_s27, 1  ;;  %v1245_v1 = vld [vmem:[#allocation2 + $0x4] ss:$8 sps:$4 sm:$0xff]   ;;  %v1247_v2 = vld [vmem:[#allocation2] ss:$8 sps:$4 sm:$0xff]   ;;  %v346_v11 = vlaneseq }
  0x2b   : > { %1314 = vsyncadd (%p1565_p7), [#allocation3], 4294966272  ;;  %432 = vmatprep.mubr.bf16.mxu0 %v1322_v0  ;;  %400 = vmatprep.subr.bf16.mxu0 %v1245_v1  ;;  %v1248_v3 = vld [vmem:[#allocation2 + $0x14] ss:$8 sps:$4 sm:$0xff]   ;;  %v1250_v4 = vld [vmem:[#allocation2 + $0x10] ss:$8 sps:$4 sm:$0xff]  }
  0x2c   : > { %s1567_s27 = smov (!%p321_p2, %s1383_s27), 1  ;;  %401 = vmatpush1.bf16.msra.mxu0 %v1247_v2  ;;  %v1251_v5 = vld [vmem:[#allocation2 + $0x24] ss:$8 sps:$4 sm:$0xff]   ;;  %v1253_v6 = vld [vmem:[#allocation2 + $0x20] ss:$8 sps:$4 sm:$0xff]   ;;  %vm396_vm0 = vcmask 523264  }
  0x2d   : > { %402 = vmatprep.subr.bf16.mxu0 %v1248_v3  ;;  %s1104_s22 = sshll.u32 %s1567_s27, 3  ;;  %v1254_v7 = vld [vmem:[#allocation2 + $0x34] ss:$8 sps:$4 sm:$0xff]   ;;  %v1256_v8 = vld [vmem:[#allocation2 + $0x30] ss:$8 sps:$4 sm:$0xff]   ;;  %v347_v12 = vshrl.u32 %v346_v11, 7 }
  0x2e   : > { %s324_s25 = scalar_lea.vmem %s1550_s0, %s1104_s22  ;;  %v1323_v13 = vmov 0.0   ;;  %v343_v15 = vld [vmem:[%s1553_s3] sm:$0x3]  ;;  %vm1324_vm1 = vmmov 0   ;;  %s1325_s29 = smov 48   ;;  %vm446_vm2 = vcmask 130048  }
  0x2f   : > { %v1432_v9 = vld [vmem:[%s324_s25] sm:$0xff]  ;;  %1154 = vmatprep.subr.bf16.mxu1 %v1323_v13  ;;  %v348_v14 = vsub.s32 0, %v347_v12  ;;  %1156 = vmatprep.mubr.msk.bf16.mxu1 %vm1324_vm1, %v1323_v13  ;;  %s1326_s30 = smov 64   ;;  %v352_v23 = vsub.s32 1, %v347_v12  ;;  %vm510_vm3 = vcmask 1043456   ;;  %vm494_vm4 = vcmask 64512  }
  0x30   : > { %403 = vmatpush1.bf16.msra.mxu0 %v1250_v4  ;;  %v344_v10 = vpack.c.bf16 %v1432_v9, %v1432_v9  ;;  %s1327_s9 = smov 80   ;;  %s1328_s10 = smov 112   ;;  %vm901_vm5 = vcmask 261120   ;;  %vm903_vm6 = vcmask 392192  }
  0x31   : > { %404 = vmatprep.subr.bf16.mxu0 %v1251_v5  ;;  %v349_v16 = vrot.slane %v343_v15, %v348_v14  ;;  %v353_v24 = vrot.slane %v343_v15, %v352_v23  ;;  %s1329_s11 = smov 32   ;;  %s1330_s12 = smov 96  }
  0x32   : > { %s1331_s13 = smov 16  }
  0x34   : > { %405 = vmatpush1.bf16.msra.mxu0 %v1253_v6 }
  0x35   : > { %406 = vmatprep.subr.bf16.mxu0 %v1254_v7 }
  0x38   : > { %407 = vmatpush1.bf16.msra.mxu0 %v1256_v8 }
  0x39   : > { %1178 = vmatprep.subr.bf16.mxu0 %v1323_v13 }
  0x3b   : > { %1114 = vmatmul.mubr.msk.bf16.vlgmr.msra.gmra.mrb[0].mxu0 %vm396_vm0, %v344_v10 }
  0x3c   : > { %1180 = vmatprep.mubr.msk.bf16.mxu0 %vm1324_vm1, %v1323_v13 }
 0x10e   : > { %v434_v17 = vpop.f32.mrb[0].mxu0 }
 0x10f   : > { %v435_v18 = vadd.f32 %v434_v17, %v349_v16  ;;  %v436_v19 = vpop.f32.mrb[1].mxu0 }
 0x110   : > { %v438_v20 = vpop.f32.mrb[2].mxu0  ;;  %v437_v26 = vadd.f32 %v436_v19, %v353_v24 }
 0x111   : > { %v441_v21 = vpack.c.bf16 %v435_v18, %v435_v18  ;;  %v439_v22 = vpop.f32.mrb[3].mxu0 }
 0x112   : > { %v1449_v28 = vpack.c.bf16 %v437_v26, %v437_v26 }
 0x113   : > { %556 = vrot.lane.b32.xlu1 %v441_v21, %s1325_s29  ;;  %444 = vrot.lane.b32.xlu0 %v441_v21, %s1326_s30 }
 0x114   : > { %v512_v29 = vsel %vm510_vm3, %v1449_v28, 0 }
 0x185   : > { %v445_v25 = vpop.permute.xlu0 %444  ;;  %v557_v41 = vpop.permute.xlu1 %556 }
 0x186   : > { %v451_v27 = vsel %vm446_vm2, %v445_v25, 0  ;;  %v562_v50 = vsel %vm446_vm2, %v557_v41, 0 }
 0x187   : > { %1155 = vmatpush3.bf16.xpose.msra.mxu1 %v451_v27 }
 0x188   : > { %1160 = vmatprep.subr.bf16.mxu1 %v1323_v13 }
 0x18e   : > { %1157 = vmatmul.mubr.msk.bf16.vlgmr.msra.gmra.mrb[0].mxu1 %vm446_vm2, %v441_v21 }
 0x18f   : > { %1161 = vmatpush3.bf16.msra.mxu1 %v512_v29  ;;  %1162 = vmatprep.mubr.msk.bf16.mxu1 %vm1324_vm1, %v1323_v13 }
 0x190   : > { %1166 = vmatprep.subr.bf16.mxu1 %v1323_v13 }
 0x261   : > { %v487_v30 = vpop.f32.mrb[0].mxu1 }
 0x262   : > { %v493_v31 = vmul.f32 0.25, %v487_v30  ;;  %v1158_v32 = vpop.f32.mrb[1].mxu1 }
 0x263   : > { %v490_v33 = vpop.f32.mrb[2].mxu1 }
 0x264   : > { %v1159_v34 = vpop.f32.mrb[3].mxu1  ;;  %v495_v35 = vsel %vm494_vm4, %v493_v31, -inf }
 0x265   : > { %496 = vmax.xlane.f32.xlu0 %v495_v35 }
 0x27b   : > { %777 = vrot.lane.b32.xlu0 %v441_v21, %s1327_s9 }
 0x2f2   : > { %v497_v36 = vpop.xlane.xlu0 %496 }
 0x2f3   : > { %v498_v37 = vsub.f32 %v493_v31, %v497_v36 }
 0x2f5   : > { %v499_v38 = vmul.f32 1.442695, %v498_v37 }
 0x2f6   : > { %v778_v53 = vpop.permute.xlu0 %777 }
 0x2f7   : > { %1261 = vpow2.f32 %v499_v38 }
 0x301   : > { %v1262_v39 = vpop.eup %1261 }
 0x302   : > { %v501_v40 = vsel %vm494_vm4, %v1262_v39, 0.0 }
 0x303   : > { %502 = vadd.xlane.f32.xlu1 %v501_v40 }
 0x314   : > { %554 = vrot.lane.b32.xlu1 %v441_v21, %s1328_s10 }
 0x318   : > { %668 = vrot.lane.b32.xlu1 %v441_v21, %s1329_s11 }
 0x31c   : > { %666 = vrot.lane.b32.xlu1 %v441_v21, %s1330_s12 }
 0x320   : > { %779 = vrot.lane.b32.xlu1 %v441_v21, %s1331_s13 }
 0x390   : > { %v503_v42 = vpop.xlane.xlu1 %502 }
 0x391   : > { %1263 = vrcp.f32 %v503_v42 }
 0x394   : > { %v555_v43 = vpop.permute.xlu1 %554 }
 0x398   : > { %v669_v44 = vpop.permute.xlu1 %668 }
 0x399   : > { %v674_v45 = vsel %vm446_vm2, %v669_v44, 0 }
 0x39a   : > { %1179 = vmatpush3.bf16.xpose.msra.mxu0 %v674_v45 }
 0x39b   : > { %v1264_v46 = vpop.eup %1263  ;;  %1190 = vmatprep.subr.bf16.mxu0 %v1323_v13 }
 0x39c   : > { %v505_v47 = vmul.f32 %v1264_v46, %v1262_v39  ;;  %v667_v48 = vpop.permute.xlu1 %666 }
 0x39e   : > { %v506_v49 = vpack.c.bf16 %v505_v47, %v505_v47  ;;  %v1257_v47 = vld [vmem:[%s1554_s4] sm:$0xff]  }
 0x3a0   : > { %1163 = vmatmul.mubr.msk.bf16.vlgmr.msra.gmra.mrb[4].mxu1 %vm494_vm4, %v506_v49  ;;  %v780_v51 = vpop.permute.xlu1 %779  ;;  %v1259_v49 = vld [vmem:[%s1554_s4 + $0x10] sm:$0xff]  }
 0x3a1   : > { %1167 = vmatpush3.bf16.xpose.msra.mxu1 %v562_v50  ;;  %v785_v52 = vsel %vm446_vm2, %v780_v51, 0  ;;  %1181 = vmatmul.mubr.msk.bf16.vlgmr.msra.gmra.mrb[4].mxu0 %vm446_vm2, %v667_v48  ;;  %v1258_v48 = vld [vmem:[%s1554_s4 + $0x8] sm:$0xff]  }
 0x3a2   : > { %1191 = vmatpush3.bf16.xpose.msra.mxu0 %v785_v52  ;;  %1168 = vmatprep.mubr.msk.bf16.mxu1 %vm1324_vm1, %v1323_v13 }
 0x3a3   : > { %1192 = vmatprep.mubr.msk.bf16.mxu0 %vm1324_vm1, %v1323_v13  ;;  %1172 = vmatprep.subr.bf16.mxu1 %v1323_v13 }
 0x3a4   : > { %1202 = vmatprep.subr.bf16.mxu0 %v1323_v13 }
 0x3a8   : > { %1169 = vmatmul.mubr.msk.bf16.vlgmr.msra.gmra.mrb[8].mxu1 %vm446_vm2, %v555_v43 }
 0x3a9   : > { %1193 = vmatmul.mubr.msk.bf16.vlgmr.msra.gmra.mrb[8].mxu0 %vm446_vm2, %v778_v53  ;;  %1174 = vmatprep.mubr.msk.bf16.mxu1 %vm1324_vm1, %v1323_v13 }
 0x3aa   : > { %1210 = vmatprep.mubr.msk.bf16.mxu0 %vm1324_vm1, %v1323_v13  ;;  %1203 = vmatpush3.bf16.msra.mxu0 %v1257_v47 }
 0x3ab   : > { %1204 = vmatprep.subr.bf16.mxu0 %v1323_v13 }
 0x3ae   : > { %1205 = vmatpush3.bf16.msra.mxu0 %v1258_v48 }
 0x3af   : > { %1206 = vmatprep.subr.bf16.mxu0 %v1323_v13 }
 0x3b2   : > { %1207 = vmatpush3.bf16.msra.mxu0 %v1259_v49 }
 0x3b3   : > { %1208 = vmatprep.subr.bf16.mxu0 %v1323_v13 }
 0x473   : > { %v1482_v54 = vpop.f32.mrb[4].mxu1 }
 0x474   : > { %v1164_v55 = vpop.f32.mrb[5].mxu1  ;;  %v710_v56 = vpop.f32.mrb[4].mxu0 }
 0x475   : > { %v716_v57 = vmul.f32 0.25, %v710_v56  ;;  %v551_v58 = vpop.f32.mrb[6].mxu1  ;;  %v1182_v59 = vpop.f32.mrb[5].mxu0  ;;  %v1260_v55 = vld [vmem:[%s1554_s4 + $0x18] sm:$0xff]  }
 0x476   : > { %v1165_v60 = vpop.f32.mrb[7].mxu1  ;;  %v713_v61 = vpop.f32.mrb[6].mxu0  ;;  %1209 = vmatpush3.bf16.msra.mxu0 %v1260_v55 }
 0x477   : > { %v1183_v62 = vpop.f32.mrb[7].mxu0  ;;  %v717_v63 = vsel %vm494_vm4, %v716_v57, -inf }
 0x478   : > { %718 = vmax.xlane.f32.xlu0 %v717_v63 }
 0x47b   : > { %v598_v0 = vpop.f32.mrb[8].mxu1 }
 0x47c   : > { %v604_v1 = vmul.f32 0.25, %v598_v0  ;;  %v1170_v2 = vpop.f32.mrb[9].mxu1  ;;  %v821_v3 = vpop.f32.mrb[8].mxu0 }
 0x47d   : > { %v601_v4 = vpop.f32.mrb[10].mxu1  ;;  %v1194_v5 = vpop.f32.mrb[9].mxu0  ;;  %v827_v6 = vmul.f32 0.25, %v821_v3 }
 0x47e   : > { %v1171_v7 = vpop.f32.mrb[11].mxu1  ;;  %v824_v8 = vpop.f32.mrb[10].mxu0  ;;  %v605_v10 = vsel %vm494_vm4, %v604_v1, -inf }
 0x47f   : > { %v1195_v11 = vpop.f32.mrb[11].mxu0  ;;  %606 = vmax.xlane.f32.xlu1 %v605_v10  ;;  %v828_v12 = vsel %vm494_vm4, %v827_v6, -inf }
 0x483   : > { %829 = vmax.xlane.f32.xlu1 %v828_v12 }
 0x48e   : > { %618 = vrot.lane.b32.xlu0 %v1449_v28, %s1328_s10  ;;  %s332_s10 = scalar_lea.vmem %s1558_s8, %s1104_s22 }
 0x505   : > { %v719_v14 = vpop.xlane.xlu0 %718 }
 0x506   : > { %v720_v15 = vsub.f32 %v716_v57, %v719_v14 }
 0x508   : > { %v721_v16 = vmul.f32 1.442695, %v720_v15 }
 0x509   : > { %v619_v17 = vpop.permute.xlu0 %618 }
 0x50a   : > { %1265 = vpow2.f32 %v721_v16  ;;  %v624_v18 = vsel %vm510_vm3, %v619_v17, 0 }
 0x50b   : > { %1173 = vmatpush3.bf16.msra.mxu1 %v624_v18 }
 0x50c   : > { %v607_v19 = vpop.xlane.xlu1 %606  ;;  %1184 = vmatprep.subr.bf16.mxu1 %v1323_v13 }
 0x50d   : > { %v608_v20 = vsub.f32 %v604_v1, %v607_v19 }
 0x50f   : > { %v609_v23 = vmul.f32 1.442695, %v608_v20 }
 0x510   : > { %v830_v21 = vpop.xlane.xlu1 %829 }
 0x511   : > { %v831_v22 = vsub.f32 %v827_v6, %v830_v21  ;;  %v1123_v6 = vld [vmem:[%s1555_s5] ss:$0 sm:$0xff] }
 0x513   : > { %v832_v24 = vmul.f32 1.442695, %v831_v22 }
 0x514   : > { %v1266_v25 = vpop.eup %1265 }
 0x515   : > { %1267 = vpow2.f32 %v832_v24  ;;  %v723_v26 = vsel %vm494_vm4, %v1266_v25, 0.0 }
 0x516   : > { %724 = vadd.xlane.f32.xlu1 %v723_v26  ;;  %1269 = vpow2.f32 %v609_v23 }
 0x51f   : > { %v1268_v27 = vpop.eup %1267 }
 0x520   : > { %v834_v29 = vsel %vm494_vm4, %v1268_v27, 0.0  ;;  %v1270_v30 = vpop.eup %1269 }
 0x521   : > { %835 = vadd.xlane.f32.xlu1 %v834_v29  ;;  %v611_v31 = vsel %vm494_vm4, %v1270_v30, 0.0 }
 0x525   : > { %612 = vadd.xlane.f32.xlu1 %v611_v31 }
 0x536   : > { %729 = vrot.lane.b32.xlu1 %v1449_v28, %s1330_s12 }
 0x53a   : > { %840 = vrot.lane.b32.xlu1 %v1449_v28, %s1327_s9 }
 0x5a3   : > { %v725_v32 = vpop.xlane.xlu1 %724 }
 0x5ae   : > { %v836_v33 = vpop.xlane.xlu1 %835 }
 0x5b2   : > { %v613_v34 = vpop.xlane.xlu1 %612 }
 0x5b3   : > { %1271 = vrcp.f32 %v613_v34 }
 0x5b4   : > { %1273 = vrcp.f32 %v725_v32 }
 0x5b5   : > { %1275 = vrcp.f32 %v836_v33 }
 0x5b6   : > { %v730_v37 = vpop.permute.xlu1 %729 }
 0x5b7   : > { %v735_v40 = vsel %vm510_vm3, %v730_v37, 0 }
 0x5ba   : > { %v841_v41 = vpop.permute.xlu1 %840 }
 0x5bb   : > { %v846_v44 = vsel %vm510_vm3, %v841_v41, 0 }
 0x5bd   : > { %v1272_v35 = vpop.eup %1271 }
 0x5be   : > { %v615_v36 = vmul.f32 %v1272_v35, %v1270_v30  ;;  %v1274_v39 = vpop.eup %1273 }
 0x5bf   : > { %v727_v28 = vmul.f32 %v1274_v39, %v1266_v25  ;;  %v1276_v43 = vpop.eup %1275  ;;  %v1130_v25 = vld [vmem:[%s1557_s7] ss:$0 sm:$0xff] }
 0x5c0   : > { %v616_v38 = vpack.c.bf16 %v615_v36, %v615_v36  ;;  %v838_v45 = vmul.f32 %v1276_v43, %v1268_v27 }
 0x5c1   : > { %v728_v42 = vpack.c.bf16 %v727_v28, %v727_v28 }
 0x5c2   : > { %1175 = vmatmul.mubr.msk.bf16.vlgmr.msra.gmra.mrb[12].mxu1 %vm494_vm4, %v616_v38  ;;  %v839_v46 = vpack.c.bf16 %v838_v45, %v838_v45 }
 0x5c3   : > { %1185 = vmatpush3.bf16.msra.mxu1 %v735_v40  ;;  %1186 = vmatprep.mubr.msk.bf16.mxu1 %vm1324_vm1, %v1323_v13 }
 0x5c4   : > { %1196 = vmatprep.subr.bf16.mxu1 %v1323_v13 }
 0x5ca   : > { %1187 = vmatmul.mubr.msk.bf16.vlgmr.msra.gmra.mrb[16].mxu1 %vm494_vm4, %v728_v42 }
 0x5cb   : > { %1197 = vmatpush3.bf16.msra.mxu1 %v846_v44  ;;  %1198 = vmatprep.mubr.msk.bf16.mxu1 %vm1324_vm1, %v1323_v13 }
 0x5d2   : > { %1199 = vmatmul.mubr.msk.bf16.vlgmr.msra.gmra.mrb[20].mxu1 %vm494_vm4, %v839_v46 }
 0x695   : > { %v660_v50 = vpop.f32.mrb[12].mxu1 }
 0x696   : > { %889 = vrot.lane.b32.xlu0 %v660_v50, %s1331_s13  ;;  %v1176_v51 = vpop.f32.mrb[13].mxu1 }
 0x697   : > { %v663_v52 = vpop.f32.mrb[14].mxu1 }
 0x698   : > { %v1177_v53 = vpop.f32.mrb[15].mxu1 }
 0x69d   : > { %v771_v56 = vpop.f32.mrb[16].mxu1 }
 0x69e   : > { %893 = vrot.lane.b32.xlu1 %v771_v56, %s1329_s11  ;;  %v1188_v57 = vpop.f32.mrb[17].mxu1 }
 0x69f   : > { %v774_v58 = vpop.f32.mrb[18].mxu1 }
 0x6a0   : > { %v1189_v59 = vpop.f32.mrb[19].mxu1 }
 0x6a5   : > { %v882_v60 = vpop.f32.mrb[20].mxu1 }
 0x6a6   : > { %897 = vrot.lane.b32.xlu0 %v882_v60, %s1325_s29  ;;  %v1200_v61 = vpop.f32.mrb[21].mxu1 }
 0x6a7   : > { %v885_v62 = vpop.f32.mrb[22].mxu1 }
 0x6a8   : > { %v1201_v63 = vpop.f32.mrb[23].mxu1 }
 0x708   : > { %v890_v0 = vpop.permute.xlu0 %889 }
 0x709   : > { %v900_v1 = vsel %vm446_vm2, %v1482_v54, %v890_v0 }
 0x710   : > { %v894_v13 = vpop.permute.xlu1 %893 }
 0x711   : > { %v902_v2 = vsel %vm901_vm5, %v900_v1, %v894_v13 }
 0x718   : > { %v898_v3 = vpop.permute.xlu0 %897 }
 0x719   : > { %v904_v4 = vsel %vm903_vm6, %v902_v2, %v898_v3 }
 0x71a   : > { %v905_v5 = vpack.c.bf16 %v904_v4, %v904_v4 }
 0x71c   : > { %1211 = vmatmul.mubr.msk.bf16.vlgmr.msra.gmra.mrb[12].mxu0 %vm396_vm0, %v905_v5 }
 0x7ef   : > { %v982_v7 = vpop.f32.mrb[12].mxu0 }
 0x7f0   : > { %v983_v8 = vadd.f32 %v1123_v6, %v982_v7  ;;  %v1212_v10 = vpop.f32.mrb[13].mxu0 }
 0x7f1   : > { %v985_v11 = vpop.f32.mrb[14].mxu0 }
 0x7f2   : > { %v1213_v12 = vpop.f32.mrb[15].mxu0  ;;  %v988_v14 = vadd.f32 %v983_v8, %v1432_v9  ;;  %v1129_v9 = vld [vmem:[%s1556_s6] ss:$0 sm:$0xff] }
 0x7f4   : > { %v989_v15 = vsel %vm396_vm0, %v988_v14, 0.0 }
 0x7f5   : > { %990 = vadd.xlane.f32.xlu1 %v989_v15 }
 0x882   : > { %v991_v54 = vpop.xlane.xlu1 %990 }
 0x883   : > { %v993_v16 = vmul.f32 0.015625, %v991_v54 }
 0x885   : > { %v994_v17 = vsub.f32 %v988_v14, %v993_v16 }
 0x887   : > { %v995_v18 = vmul.f32 %v994_v17, %v994_v17 }
 0x889   : > { %v996_v19 = vsel %vm396_vm0, %v995_v18, 0.0 }
 0x88a   : > { %997 = vadd.xlane.f32.xlu0 %v996_v19 }
 0x917   : > { %v998_v20 = vpop.xlane.xlu0 %997 }
 0x918   : > { %v999_v21 = vmul.f32 0.015625, %v998_v20 }
 0x91a   : > { %v1000_v22 = vadd.f32 1e-05, %v999_v21 }
 0x91c   : > { %1277 = vrsqrt.f32 %v1000_v22 }
 0x926   : > { %v1278_v23 = vpop.eup %1277 }
 0x927   : > { %v1002_v24 = vmul.f32 %v1278_v23, %v994_v17 }
 0x929   : > { %v1010_v26 = vmul.f32 %v1129_v9, %v1002_v24 }
 0x92b   : > { %v1018_v27 = vadd.f32 %v1130_v25, %v1010_v26 }
 0x92d   : > { %1019 = vst.msk [vmem:[%s332_s10] sm:$0xff] %vm396_vm0, %v1018_v27 }
 0x92e PF: > { %s19_s26 = sadd.s32 1, %s1317_s26  }
 0x92f   : > { %p16_p3 = scmp.ge.s32.totalorder %s19_s26, 4  }
 0x931   :  { %18 = sbr.rel (!%p16_p3) target bundleno = 1 (0x1), region = 90 }
 0x938   :  { %1039 = vsyncpa [#allocation3], 1 }
 0x939   :  { %1041 = vsyncpa [#allocation3 + $0x1], 1 }

// kernel: transformer_decoder.8
= control target key start
LH: loop header
LB: loop body
LE: loop exit
PB: predicated region body
PF: predicated region fallthrough
CT: control target
= control target key end

     0   :  { %s1404_s27 = smov 0   ;;  %s1587_s0 = inlined_call_operand.vmem [shape: f32[2,8,64], index: 0, kind: input, shape index: {}]   ;;  %s1588_s1 = inlined_call_operand.vmem [shape: f32[2,8,64], index: 1, kind: input, shape index: {}]   ;;  %s1589_s2 = inlined_call_operand.vmem [shape: bf16[64,192], index: 2, kind: input, shape index: {}]   ;;  %s1590_s3 = inlined_call_operand.vmem [shape: f32[1,192], index: 3, kind: input, shape index: {}]   ;;  %s1591_s4 = inlined_call_operand.vmem [shape: bf16[64,64], index: 4, kind: input, shape index: {}]   ;;  %s1592_s5 = inlined_call_operand.vmem [shape: f32[1,64], index: 5, kind: input, shape index: {}]   ;;  %s1593_s6 = inlined_call_operand.vmem [shape: f32[1,64], index: 6, kind: input, shape index: {}]   ;;  %s1594_s7 = inlined_call_operand.vmem [shape: f32[1,64], index: 7, kind: input, shape index: {}]   ;;  %s1595_s8 = inlined_call_operand.vmem [shape: f32[2,8,64], index: 8, kind: output, shape index: {}]  }
   0x1 LB: > { %s1140_s28 = sadd.s32 4294967295, %s1348_s27   ;;  %p1144_p0 = scmp.ge.s32.totalorder %s1348_s27, 1  ;;  %s1348_s27 = sphi %s1404_s27, %s18_s27  }
   0x2   : > { %p270_p1 = scmp.lt.s32.totalorder %s1348_s27, 3 }
   0x4   : > { %p271_p2 = pnand %p1144_p0, %p270_p1 }
   0x5   : > { %v1308_v0 = vld [vmem:[%s1589_s2 + $0x10] ss:$8 sps:$4 sm:$0xff] (!%p271_p2)   ;;  %v1350_v1 = vmov (!%p271_p2), 0.0   ;;  %v1310_v2 = vld [vmem:[%s1589_s2 + $0x14] ss:$8 sps:$4 sm:$0xff] (!%p271_p2)   ;;  %s1351_s11 = smov (!%p271_p2), 64   ;;  %v332_v8 = vlaneseq (!%p271_p2) }
   0x6   : > { %274 = sbr.rel (%p271_p2) target bundleno = 1896 (0x768), region = 52  ;;  %1207 = vmatprep.subr.bf16.mxu0 (!%p271_p2), %v1350_v1  ;;  %1219 = vmatprep.subr.bf16.mxu1 (!%p271_p2), %v1350_v1  ;;  %v1311_v3 = vld [vmem:[%s1589_s2] ss:$8 sps:$4 sm:$0xff] (!%p271_p2)   ;;  %p306_p3 = scmp.lt.s32.totalorder (!%p271_p2), %s1140_s28, 1  ;;  %v1313_v4 = vld [vmem:[%s1589_s2 + $0x4] ss:$8 sps:$4 sm:$0xff] (!%p271_p2)  }
   0x7   : > { %426 = vrot.lane.b32.xlu1 (!%p271_p2), %v1308_v0, %s1351_s11  ;;  %422 = vrot.lane.b32.xlu0 (!%p271_p2), %v1311_v3, %s1351_s11  ;;  %v1314_v5 = vld [vmem:[%s1589_s2 + $0x24] ss:$8 sps:$4 sm:$0xff] (!%p271_p2)   ;;  %v1316_v6 = vld [vmem:[%s1589_s2 + $0x20] ss:$8 sps:$4 sm:$0xff] (!%p271_p2)   ;;  %vm1352_vm0 = vmmov (!%p271_p2), 0   ;;  %v333_v11 = vshrl.u32 (!%p271_p2), %v332_v8, 7 }
   0x8   : > { %1208 = vmatpush3.bf16.msra.mxu0 (!%p271_p2), %v1311_v3  ;;  %1215 = vmatprep.mubr.msk.bf16.mxu0 (!%p271_p2), %vm1352_vm0, %v1350_v1  ;;  %v1317_v7 = vld [vmem:[%s1589_s2 + $0x34] ss:$8 sps:$4 sm:$0xff] (!%p271_p2)   ;;  %v1319_v9 = vld [vmem:[%s1589_s2 + $0x30] ss:$8 sps:$4 sm:$0xff] (!%p271_p2)   ;;  %v328_v12 = vld [vmem:[%s1590_s3] sm:$0x3] (!%p271_p2) }
   0x9   : > { %1209 = vmatprep.subr.bf16.mxu0 (!%p271_p2), %v1350_v1  ;;  %1227 = vmatprep.mubr.msk.bf16.mxu1 (!%p271_p2), %vm1352_vm0, %v1350_v1  ;;  %v408_v14 = vsub.s32 (!%p271_p2), 1, %v333_v11  ;;  %v334_v15 = vsub.s32 (!%p271_p2), 0, %v333_v11  ;;  %vm361_vm1 = vcmask (!%p271_p2), 523264   ;;  %s1353_s13 = smov (!%p271_p2), 112   ;;  %s1354_s14 = smov (!%p271_p2), 96   ;;  %vm498_vm2 = vcmask (!%p271_p2), 130048  }
   0xa   : > { %s1355_s15 = smov (!%p271_p2), 80   ;;  %vm546_vm3 = vcmask (!%p271_p2), 64512   ;;  %vm565_vm4 = vcmask (!%p271_p2), 1043456   ;;  %s1357_s16 = smov (!%p271_p2), 16   ;;  %vm956_vm5 = vcmask (!%p271_p2), 261120   ;;  %vm958_vm6 = vcmask (!%p271_p2), 392192  }
   0xb   : > { %428 = vrot.lane.b32.xlu1 (!%p271_p2), %v1310_v2, %s1351_s11  ;;  %424 = vrot.lane.b32.xlu0 (!%p271_p2), %v1313_v4, %s1351_s11  ;;  %v409_v16 = vrot.slane (!%p271_p2), %v328_v12, %v408_v14  ;;  %v335_v17 = vrot.slane (!%p271_p2), %v328_v12, %v334_v15  ;;  %s1358_s17 = smov (!%p271_p2), 48  }
   0xc   : > { %1210 = vmatpush3.bf16.msra.mxu0 (!%p271_p2), %v1308_v0 }
   0xd   : > { %s1597_s28 = smov (!%p306_p3, %s1140_s28), 1  ;;  %1211 = vmatprep.subr.bf16.mxu0 %v1350_v1 }
   0xe   : > { %s1433_s18 = sshll.u32 %s1597_s28, 3 }
   0xf   : > { %s309_s23 = scalar_lea.vmem %s1587_s0, %s1433_s18  ;;  %432 = vrot.lane.b32.xlu1 %v1314_v5, %s1351_s11  ;;  %430 = vrot.lane.b32.xlu0 %v1316_v6, %s1351_s11  ;;  %s313_s12 = scalar_lea.vmem %s1588_s1, %s1433_s18 }
  0x10   : > { %1212 = vmatpush3.bf16.msra.mxu0 %v1316_v6  ;;  %v1456_v10 = vld [vmem:[%s309_s23] sm:$0xff] }
  0x11   : > { %1213 = vmatprep.subr.bf16.mxu0 %v1350_v1  ;;  %v330_v13 = vpack.c.bf16 %v1456_v10, %v1456_v10  ;;  %v329_v29 = vld [vmem:[%s313_s12] sm:$0xff] }
  0x12   : > { %v405_v31 = vpack.c.bf16 %v329_v29, %v329_v29 }
  0x13   : > { %436 = vrot.lane.b32.xlu1 %v1317_v7, %s1351_s11  ;;  %434 = vrot.lane.b32.xlu0 %v1319_v9, %s1351_s11 }
  0x14   : > { %1214 = vmatpush3.bf16.msra.mxu0 %v1319_v9 }
  0x15   : > { %1243 = vmatprep.subr.bf16.mxu0 %v1350_v1 }
  0x17   : > { %1216 = vmatmul.mubr.msk.bf16.vlgmr.msra.gmra.mrb[0].mxu0 %vm361_vm1, %v330_v13  ;;  %449 = vrot.lane.b32.xlu1 %v409_v16, %s1351_s11 }
  0x18   : > { %447 = vrot.lane.b32.xlu0 %v335_v17, %s1351_s11  ;;  %1245 = vmatprep.mubr.msk.bf16.mxu0 %vm1352_vm0, %v1350_v1 }
  0x79   : > { %v427_v18 = vpop.permute.xlu1 %426  ;;  %v423_v19 = vpop.permute.xlu0 %422 }
  0x7d   : > { %v429_v20 = vpop.permute.xlu1 %428  ;;  %v425_v21 = vpop.permute.xlu0 %424 }
  0x7e   : > { %v439_v22 = vsel %vm361_vm1, %v423_v19, %v425_v21  ;;  %v440_v25 = vsel %vm361_vm1, %v427_v18, %v429_v20 }
  0x7f   : > { %1220 = vmatpush3.bf16.msra.mxu1 %v439_v22 }
  0x80   : > { %1221 = vmatprep.subr.bf16.mxu1 %v1350_v1 }
  0x81   : > { %v433_v23 = vpop.permute.xlu1 %432  ;;  %v431_v24 = vpop.permute.xlu0 %430 }
  0x82   : > { %v441_v26 = vsel %vm361_vm1, %v431_v24, %v433_v23 }
  0x83   : > { %1222 = vmatpush3.bf16.msra.mxu1 %v440_v25 }
  0x84   : > { %1223 = vmatprep.subr.bf16.mxu1 %v1350_v1 }
  0x85   : > { %v437_v27 = vpop.permute.xlu1 %436  ;;  %v435_v28 = vpop.permute.xlu0 %434 }
  0x86   : > { %v442_v30 = vsel %vm361_vm1, %v435_v28, %v437_v27 }
  0x87   : > { %1224 = vmatpush3.bf16.msra.mxu1 %v441_v26 }
  0x88   : > { %1225 = vmatprep.subr.bf16.mxu1 %v1350_v1 }
  0x89   : > { %v450_v38 = vpop.permute.xlu1 %449 }
  0x8a   : > { %v448_v39 = vpop.permute.xlu0 %447 }
  0x8b   : > { %1226 = vmatpush3.bf16.msra.mxu1 %v442_v30  ;;  %v451_v40 = vsel %vm361_vm1, %v448_v39, %v450_v38 }
  0x8c   : > { %1231 = vmatprep.subr.bf16.mxu1 %v1350_v1 }
  0x8e   : > { %1228 = vmatmul.mubr.msk.bf16.vlgmr.msra.gmra.mrb[0].mxu1 %vm361_vm1, %v405_v31 }
  0x8f   : > { %1233 = vmatprep.mubr.msk.bf16.mxu1 %vm1352_vm0, %v1350_v1 }
  0xea   : > { %v399_v32 = vpop.f32.mrb[0].mxu0 }
  0xeb   : > { %v400_v33 = vadd.f32 %v399_v32, %v335_v17  ;;  %v1217_v34 = vpop.f32.mrb[1].mxu0 }
  0xec   : > { %v402_v35 = vpop.f32.mrb[2].mxu0 }
  0xed   : > { %v496_v36 = vpack.c.bf16 %v400_v33, %v400_v33  ;;  %v1218_v37 = vpop.f32.mrb[3].mxu0 }
  0xef   : > { %610 = vrot.lane.b32.xlu1 %v496_v36, %s1353_s13 }
  0xf3   : > { %721 = vrot.lane.b32.xlu1 %v496_v36, %s1354_s14 }
  0xf7   : > { %832 = vrot.lane.b32.xlu1 %v496_v36, %s1355_s15 }
 0x161   : > { %v490_v41 = vpop.f32.mrb[0].mxu1  ;;  %v611_v51 = vpop.permute.xlu1 %610 }
 0x162   : > { %v491_v42 = vadd.f32 %v490_v41, %v451_v40  ;;  %v1229_v43 = vpop.f32.mrb[1].mxu1 }
 0x163   : > { %v493_v44 = vpop.f32.mrb[2].mxu1 }
 0x164   : > { %v1488_v45 = vpack.c.bf16 %v491_v42, %v491_v42  ;;  %v1230_v46 = vpop.f32.mrb[3].mxu1 }
 0x165   : > { %v722_v54 = vpop.permute.xlu1 %721 }
 0x166   : > { %612 = vrot.lane.b32.xlu0 %v1488_v45, %s1353_s13  ;;  %v503_v47 = vsel %vm498_vm2, %v1488_v45, 0 }
 0x167   : > { %1232 = vmatpush3.bf16.xpose.msra.mxu1 %v503_v47 }
 0x168   : > { %1237 = vmatprep.subr.bf16.mxu1 %v1350_v1 }
 0x169   : > { %v833_v56 = vpop.permute.xlu1 %832 }
 0x16a   : > { %723 = vrot.lane.b32.xlu0 %v1488_v45, %s1354_s14 }
 0x16e   : > { %834 = vrot.lane.b32.xlu0 %v1488_v45, %s1355_s15  ;;  %1234 = vmatmul.mubr.msk.bf16.vlgmr.msra.gmra.mrb[4].mxu1 %vm498_vm2, %v496_v36  ;;  %s317_s15 = scalar_lea.vmem %s1595_s8, %s1433_s18 }
 0x16f   : > { %1239 = vmatprep.mubr.msk.bf16.mxu1 %vm1352_vm0, %v1350_v1 }
 0x1d8   : > { %v613_v48 = vpop.permute.xlu0 %612 }
 0x1d9   : > { %v618_v49 = vsel %vm498_vm2, %v613_v48, 0 }
 0x1da   : > { %1244 = vmatpush3.bf16.xpose.msra.mxu0 %v618_v49 }
 0x1db   : > { %1255 = vmatprep.subr.bf16.mxu0 %v1350_v1 }
 0x1dc   : > { %v724_v50 = vpop.permute.xlu0 %723 }
 0x1dd   : > { %v729_v52 = vsel %vm498_vm2, %v724_v50, 0 }
 0x1e0   : > { %v835_v53 = vpop.permute.xlu0 %834 }
 0x1e1   : > { %1246 = vmatmul.mubr.msk.bf16.vlgmr.msra.gmra.mrb[4].mxu0 %vm498_vm2, %v611_v51  ;;  %v840_v55 = vsel %vm498_vm2, %v835_v53, 0 }
 0x1e2   : > { %1256 = vmatpush3.bf16.xpose.msra.mxu0 %v729_v52  ;;  %1257 = vmatprep.mubr.msk.bf16.mxu0 %vm1352_vm0, %v1350_v1 }
 0x1e3   : > { %1267 = vmatprep.subr.bf16.mxu0 %v1350_v1 }
 0x1e9   : > { %1258 = vmatmul.mubr.msk.bf16.vlgmr.msra.gmra.mrb[8].mxu0 %vm498_vm2, %v722_v54 }
 0x1ea   : > { %1268 = vmatpush3.bf16.xpose.msra.mxu0 %v840_v55  ;;  %1269 = vmatprep.mubr.msk.bf16.mxu0 %vm1352_vm0, %v1350_v1 }
 0x1eb   : > { %1279 = vmatprep.subr.bf16.mxu0 %v1350_v1 }
 0x1f1   : > { %1270 = vmatmul.mubr.msk.bf16.vlgmr.msra.gmra.mrb[12].mxu0 %vm498_vm2, %v833_v56 }
 0x1f2   : > { %1287 = vmatprep.mubr.msk.bf16.mxu0 %vm1352_vm0, %v1350_v1 }
 0x241   : > { %v539_v57 = vpop.f32.mrb[4].mxu1 }
 0x242   : > { %v545_v58 = vmul.f32 0.25, %v539_v57  ;;  %v1235_v59 = vpop.f32.mrb[5].mxu1 }
 0x243   : > { %v542_v60 = vpop.f32.mrb[6].mxu1 }
 0x244   : > { %v1236_v61 = vpop.f32.mrb[7].mxu1  ;;  %v547_v62 = vsel %vm546_vm3, %v545_v58, -inf }
 0x245   : > { %548 = vmax.xlane.f32.xlu0 %v547_v62 }
 0x2b4   : > { %v654_v63 = vpop.f32.mrb[4].mxu0 }
 0x2b5   : > { %v660_v0 = vmul.f32 0.25, %v654_v63  ;;  %v1247_v2 = vpop.f32.mrb[5].mxu0 }
 0x2b6   : > { %v657_v3 = vpop.f32.mrb[6].mxu0 }
 0x2b7   : > { %v1248_v4 = vpop.f32.mrb[7].mxu0  ;;  %v661_v5 = vsel %vm546_vm3, %v660_v0, -inf }
 0x2b8   : > { %662 = vmax.xlane.f32.xlu1 %v661_v5  ;;  %v1320_v4 = vld [vmem:[%s1591_s4] sm:$0xff]   ;;  %v1321_v5 = vld [vmem:[%s1591_s4 + $0x8] sm:$0xff]  }
 0x2b9   : > { %1280 = vmatpush3.bf16.msra.mxu0 %v1320_v4 }
 0x2ba   : > { %1281 = vmatprep.subr.bf16.mxu0 %v1350_v1 }
 0x2bc   : > { %v765_v6 = vpop.f32.mrb[8].mxu0 }
 0x2bd   : > { %v771_v7 = vmul.f32 0.25, %v765_v6  ;;  %v1259_v8 = vpop.f32.mrb[9].mxu0  ;;  %1282 = vmatpush3.bf16.msra.mxu0 %v1321_v5  ;;  %v1322_v6 = vld [vmem:[%s1591_s4 + $0x10] sm:$0xff]  }
 0x2be   : > { %v768_v9 = vpop.f32.mrb[10].mxu0  ;;  %1283 = vmatprep.subr.bf16.mxu0 %v1350_v1 }
 0x2bf   : > { %v1260_v11 = vpop.f32.mrb[11].mxu0  ;;  %v772_v12 = vsel %vm546_vm3, %v771_v7, -inf }
 0x2c0   : > { %773 = vmax.xlane.f32.xlu0 %v772_v12  ;;  %v1323_v12 = vld [vmem:[%s1591_s4 + $0x18] sm:$0xff]  }
 0x2c1   : > { %1284 = vmatpush3.bf16.msra.mxu0 %v1322_v6 }
 0x2c2   : > { %1285 = vmatprep.subr.bf16.mxu0 %v1350_v1 }
 0x2c4   : > { %v876_v13 = vpop.f32.mrb[12].mxu0 }
 0x2c5   : > { %v882_v14 = vmul.f32 0.25, %v876_v13  ;;  %v1271_v15 = vpop.f32.mrb[13].mxu0  ;;  %1286 = vmatpush3.bf16.msra.mxu0 %v1323_v12 }
 0x2c6   : > { %v879_v16 = vpop.f32.mrb[14].mxu0 }
 0x2c7   : > { %v1272_v17 = vpop.f32.mrb[15].mxu0  ;;  %v883_v18 = vsel %vm546_vm3, %v882_v14, -inf }
 0x2c8   : > { %884 = vmax.xlane.f32.xlu0 %v883_v18 }
 0x2d2   : > { %v549_v19 = vpop.xlane.xlu0 %548 }
 0x2d3   : > { %v550_v20 = vsub.f32 %v545_v58, %v549_v19 }
 0x2d5   : > { %v551_v21 = vmul.f32 1.442695, %v550_v20 }
 0x2d7   : > { %1324 = vpow2.f32 %v551_v21 }
 0x2e1   : > { %v1325_v22 = vpop.eup %1324 }
 0x2e2   : > { %v553_v23 = vsel %vm546_vm3, %v1325_v22, 0.0 }
 0x2e3   : > { %554 = vadd.xlane.f32.xlu1 %v553_v23 }
 0x2f4   : > { %560 = vrot.lane.b32.xlu1 %v1488_v45, %s1351_s11  ;;  %s1356_s11 = smov 32  }
 0x345   : > { %v663_v24 = vpop.xlane.xlu1 %662 }
 0x346   : > { %v664_v25 = vsub.f32 %v660_v0, %v663_v24 }
 0x348   : > { %v665_v26 = vmul.f32 1.442695, %v664_v25 }
 0x34a   : > { %1326 = vpow2.f32 %v665_v26 }
 0x34d   : > { %v774_v27 = vpop.xlane.xlu0 %773 }
 0x34e   : > { %v775_v28 = vsub.f32 %v771_v7, %v774_v27  ;;  %v1166_v27 = vld [vmem:[%s1592_s5] ss:$0 sm:$0xff] }
 0x350   : > { %v776_v29 = vmul.f32 1.442695, %v775_v28 }
 0x352   : > { %1328 = vpow2.f32 %v776_v29 }
 0x354   : > { %v1327_v30 = vpop.eup %1326 }
 0x355   : > { %v885_v31 = vpop.xlane.xlu0 %884  ;;  %v667_v32 = vsel %vm546_vm3, %v1327_v30, 0.0 }
 0x356   : > { %v886_v33 = vsub.f32 %v882_v14, %v885_v31  ;;  %668 = vadd.xlane.f32.xlu0 %v667_v32 }
 0x358   : > { %v887_v34 = vmul.f32 1.442695, %v886_v33 }
 0x35a   : > { %1330 = vpow2.f32 %v887_v34 }
 0x35c   : > { %v1329_v35 = vpop.eup %1328 }
 0x35d   : > { %v778_v36 = vsel %vm546_vm3, %v1329_v35, 0.0 }
 0x35e   : > { %779 = vadd.xlane.f32.xlu1 %v778_v36 }
 0x364   : > { %v1331_v37 = vpop.eup %1330 }
 0x365   : > { %v889_v38 = vsel %vm546_vm3, %v1331_v37, 0.0 }
 0x366   : > { %890 = vadd.xlane.f32.xlu0 %v889_v38 }
 0x36f   : > { %784 = vrot.lane.b32.xlu1 %v1488_v45, %s1356_s11 }
 0x370   : > { %v555_v39 = vpop.xlane.xlu1 %554 }
 0x371   : > { %1332 = vrcp.f32 %v555_v39 }
 0x373   : > { %895 = vrot.lane.b32.xlu1 %v1488_v45, %s1357_s16 }
 0x374   : > { %v561_v40 = vpop.permute.xlu1 %560 }
 0x375   : > { %v567_v41 = vsel %vm565_vm4, %v561_v40, 0 }
 0x376   : > { %1238 = vmatpush3.bf16.msra.mxu1 %v567_v41 }
 0x377   : > { %1249 = vmatprep.subr.bf16.mxu1 %v1350_v1 }
 0x37b   : > { %v1333_v42 = vpop.eup %1332 }
 0x37c   : > { %v557_v43 = vmul.f32 %v1333_v42, %v1325_v22  ;;  %673 = vrot.lane.b32.xlu0 %v1488_v45, %s1358_s17 }
 0x37e   : > { %v558_v44 = vpack.c.bf16 %v557_v43, %v557_v43 }
 0x380   : > { %1240 = vmatmul.mubr.msk.bf16.vlgmr.msra.gmra.mrb[8].mxu1 %vm546_vm3, %v558_v44 }
 0x381   : > { %1251 = vmatprep.mubr.msk.bf16.mxu1 %vm1352_vm0, %v1350_v1 }
 0x3e3   : > { %v669_v46 = vpop.xlane.xlu0 %668 }
 0x3e4   : > { %1334 = vrcp.f32 %v669_v46  ;;  %v1173_v46 = vld [vmem:[%s1594_s7] ss:$0 sm:$0xff] }
 0x3eb   : > { %v780_v47 = vpop.xlane.xlu1 %779 }
 0x3ec   : > { %1336 = vrcp.f32 %v780_v47 }
 0x3ee   : > { %v1335_v48 = vpop.eup %1334 }
 0x3ef   : > { %v671_v50 = vmul.f32 %v1335_v48, %v1327_v30  ;;  %v785_v53 = vpop.permute.xlu1 %784 }
 0x3f0   : > { %v790_v55 = vsel %vm565_vm4, %v785_v53, 0 }
 0x3f1   : > { %v672_v45 = vpack.c.bf16 %v671_v50, %v671_v50 }
 0x3f3   : > { %v891_v49 = vpop.xlane.xlu0 %890  ;;  %v896_v57 = vpop.permute.xlu1 %895 }
 0x3f4   : > { %1338 = vrcp.f32 %v891_v49  ;;  %v901_v60 = vsel %vm565_vm4, %v896_v57, 0 }
 0x3f6   : > { %v1337_v54 = vpop.eup %1336 }
 0x3f7   : > { %v674_v51 = vpop.permute.xlu0 %673  ;;  %v782_v56 = vmul.f32 %v1337_v54, %v1329_v35 }
 0x3f8   : > { %v679_v52 = vsel %vm565_vm4, %v674_v51, 0 }
 0x3f9   : > { %1250 = vmatpush3.bf16.msra.mxu1 %v679_v52  ;;  %v783_v58 = vpack.c.bf16 %v782_v56, %v782_v56 }
 0x3fa   : > { %1261 = vmatprep.subr.bf16.mxu1 %v1350_v1 }
 0x3fc   : > { %1252 = vmatmul.mubr.msk.bf16.vlgmr.msra.gmra.mrb[12].mxu1 %vm546_vm3, %v672_v45 }
 0x3fd   : > { %1262 = vmatpush3.bf16.msra.mxu1 %v790_v55  ;;  %1263 = vmatprep.mubr.msk.bf16.mxu1 %vm1352_vm0, %v1350_v1 }
 0x3fe   : > { %1273 = vmatprep.subr.bf16.mxu1 %v1350_v1  ;;  %v1339_v59 = vpop.eup %1338 }
 0x3ff   : > { %v893_v61 = vmul.f32 %v1339_v59, %v1331_v37 }
 0x401   : > { %v894_v62 = vpack.c.bf16 %v893_v61, %v893_v61 }
 0x404   : > { %1264 = vmatmul.mubr.msk.bf16.vlgmr.msra.gmra.mrb[16].mxu1 %vm546_vm3, %v783_v58 }
 0x405   : > { %1274 = vmatpush3.bf16.msra.mxu1 %v901_v60  ;;  %1275 = vmatprep.mubr.msk.bf16.mxu1 %vm1352_vm0, %v1350_v1 }
 0x40c   : > { %1276 = vmatmul.mubr.msk.bf16.vlgmr.msra.gmra.mrb[20].mxu1 %vm546_vm3, %v894_v62 }
 0x453   : > { %v603_v63 = vpop.f32.mrb[8].mxu1 }
 0x454   : > { %v1241_v0 = vpop.f32.mrb[9].mxu1 }
 0x455   : > { %v606_v2 = vpop.f32.mrb[10].mxu1 }
 0x456   : > { %v1242_v3 = vpop.f32.mrb[11].mxu1 }
 0x4cf   : > { %v715_v7 = vpop.f32.mrb[12].mxu1 }
 0x4d0   : > { %944 = vrot.lane.b32.xlu0 %v715_v7, %s1357_s16  ;;  %v1253_v8 = vpop.f32.mrb[13].mxu1 }
 0x4d1   : > { %v718_v9 = vpop.f32.mrb[14].mxu1 }
 0x4d2   : > { %v1254_v11 = vpop.f32.mrb[15].mxu1 }
 0x4d7   : > { %v826_v13 = vpop.f32.mrb[16].mxu1 }
 0x4d8   : > { %948 = vrot.lane.b32.xlu1 %v826_v13, %s1356_s11  ;;  %v1265_v14 = vpop.f32.mrb[17].mxu1 }
 0x4d9   : > { %v829_v15 = vpop.f32.mrb[18].mxu1 }
 0x4da   : > { %v1266_v16 = vpop.f32.mrb[19].mxu1 }
 0x4df   : > { %v937_v17 = vpop.f32.mrb[20].mxu1 }
 0x4e0   : > { %952 = vrot.lane.b32.xlu0 %v937_v17, %s1358_s17  ;;  %v1277_v18 = vpop.f32.mrb[21].mxu1 }
 0x4e1   : > { %v940_v19 = vpop.f32.mrb[22].mxu1 }
 0x4e2   : > { %v1278_v20 = vpop.f32.mrb[23].mxu1 }
 0x542   : > { %v945_v21 = vpop.permute.xlu0 %944 }
 0x543   : > { %v955_v22 = vsel %vm498_vm2, %v603_v63, %v945_v21 }
 0x54a   : > { %v949_v1 = vpop.permute.xlu1 %948 }
 0x54b   : > { %v957_v23 = vsel %vm956_vm5, %v955_v22, %v949_v1 }
 0x552   : > { %v953_v24 = vpop.permute.xlu0 %952 }
 0x553   : > { %v959_v25 = vsel %vm958_vm6, %v957_v23, %v953_v24 }
 0x554   : > { %v960_v26 = vpack.c.bf16 %v959_v25, %v959_v25 }
 0x556   : > { %1288 = vmatmul.mubr.msk.bf16.vlgmr.msra.gmra.mrb[16].mxu0 %vm361_vm1, %v960_v26 }
 0x629   : > { %v1037_v28 = vpop.f32.mrb[16].mxu0 }
 0x62a   : > { %v1038_v29 = vadd.f32 %v1166_v27, %v1037_v28  ;;  %v1289_v30 = vpop.f32.mrb[17].mxu0 }
 0x62b   : > { %v1040_v31 = vpop.f32.mrb[18].mxu0 }
 0x62c   : > { %v1290_v32 = vpop.f32.mrb[19].mxu0  ;;  %v1043_v33 = vadd.f32 %v1038_v29, %v1456_v10  ;;  %v1172_v10 = vld [vmem:[%s1593_s6] ss:$0 sm:$0xff] }
 0x62e   : > { %v1044_v34 = vsel %vm361_vm1, %v1043_v33, 0.0 }
 0x62f   : > { %1045 = vadd.xlane.f32.xlu1 %v1044_v34 }
 0x6bc   : > { %v1046_v35 = vpop.xlane.xlu1 %1045 }
 0x6bd   : > { %v1048_v36 = vmul.f32 0.015625, %v1046_v35 }
 0x6bf   : > { %v1049_v37 = vsub.f32 %v1043_v33, %v1048_v36 }
 0x6c1   : > { %v1050_v38 = vmul.f32 %v1049_v37, %v1049_v37 }
 0x6c3   : > { %v1051_v39 = vsel %vm361_vm1, %v1050_v38, 0.0 }
 0x6c4   : > { %1052 = vadd.xlane.f32.xlu0 %v1051_v39 }
 0x751   : > { %v1053_v40 = vpop.xlane.xlu0 %1052 }
 0x752   : > { %v1054_v41 = vmul.f32 0.015625, %v1053_v40 }
 0x754   : > { %v1055_v42 = vadd.f32 1e-05, %v1054_v41 }
 0x756   : > { %1340 = vrsqrt.f32 %v1055_v42 }
 0x760   : > { %v1341_v43 = vpop.eup %1340 }
 0x761   : > { %v1057_v44 = vmul.f32 %v1341_v43, %v1049_v37 }
 0x763   : > { %v1065_v47 = vmul.f32 %v1172_v10, %v1057_v44 }
 0x765   : > { %v1073_v48 = vadd.f32 %v1173_v46, %v1065_v47 }
 0x767   : > { %1074 = vst.msk [vmem:[%s317_s15] sm:$0xff] %vm361_vm1, %v1073_v48 }
 0x768 PF: > { %s18_s27 = sadd.s32 1, %s1348_s27  }
 0x769   : > { %p15_p4 = scmp.ge.s32.totalorder %s18_s27, 4  }
 0x76b   :  { %17 = sbr.rel (!%p15_p4) target bundleno = 1 (0x1), region = 85 }

// kernel: transformer_decoder.10
= control target key start
LH: loop header
LB: loop body
LE: loop exit
PB: predicated region body
PF: predicated region fallthrough
CT: control target
= control target key end

     0   :  { %s1300_s26 = smov 0   ;;  %s1458_s0 = inlined_call_operand.vmem [shape: f32[2,8,64], index: 0, kind: input, shape index: {}, may-alias: {0,1}]   ;;  %s1459_s1 = inlined_call_operand.vmem [shape: f32[2,8,64], index: 1, kind: input, shape index: {}, may-alias: {0,1}]   ;;  %s1460_s2 = inlined_call_operand.vmem [shape: bf16[64,192], index: 2, kind: input, shape index: {}]   ;;  %s1461_s3 = inlined_call_operand.vmem [shape: f32[1,192], index: 3, kind: input, shape index: {}]   ;;  %s1462_s4 = inlined_call_operand.vmem [shape: bf16[64,64], index: 4, kind: input, shape index: {}]   ;;  %s1463_s5 = inlined_call_operand.vmem [shape: f32[1,64], index: 5, kind: input, shape index: {}]   ;;  %s1464_s6 = inlined_call_operand.vmem [shape: f32[1,64], index: 6, kind: input, shape index: {}]   ;;  %s1465_s7 = inlined_call_operand.vmem [shape: f32[1,64], index: 7, kind: input, shape index: {}]   ;;  %s1466_s8 = inlined_call_operand.vmem [shape: f32[2,8,64], index: 8, kind: output, shape index: {}]  }
   0x1 LB: > { %s1070_s27 = sadd.s32 4294967295, %s1243_s26   ;;  %p1074_p0 = scmp.ge.s32.totalorder %s1243_s26, 1  ;;  %s1243_s26 = sphi %s1300_s26, %s18_s26  }
   0x2   : > { %p270_p1 = scmp.lt.s32.totalorder %s1243_s26, 3 }
   0x4   : > { %p271_p2 = pnand %p1074_p0, %p270_p1 }
   0x5   : > { %v1203_v0 = vld [vmem:[%s1460_s2 + $0x4] ss:$8 sps:$4 sm:$0xff] (!%p271_p2)   ;;  %p306_p3 = scmp.lt.s32.totalorder (!%p271_p2), %s1070_s27, 1  ;;  %v1205_v1 = vld [vmem:[%s1460_s2] ss:$8 sps:$4 sm:$0xff] (!%p271_p2)   ;;  %v1245_v2 = vmov (!%p271_p2), 0   ;;  %v331_v11 = vlaneseq (!%p271_p2) }
   0x6   : > { %274 = sbr.rel (%p271_p2) target bundleno = 2313 (0x909), region = 52  ;;  %417 = vmatprep.mubr.bf16.mxu0 (!%p271_p2), %v1245_v2  ;;  %385 = vmatprep.subr.bf16.mxu0 (!%p271_p2), %v1203_v0  ;;  %v1206_v3 = vld [vmem:[%s1460_s2 + $0x14] ss:$8 sps:$4 sm:$0xff] (!%p271_p2)   ;;  %v1208_v4 = vld [vmem:[%s1460_s2 + $0x10] ss:$8 sps:$4 sm:$0xff] (!%p271_p2)   ;;  %vm381_vm0 = vcmask (!%p271_p2), 523264  }
   0x7   : > { %386 = vmatpush1.bf16.msra.mxu0 (!%p271_p2), %v1205_v1  ;;  %v1209_v5 = vld [vmem:[%s1460_s2 + $0x24] ss:$8 sps:$4 sm:$0xff] (!%p271_p2)   ;;  %v1211_v6 = vld [vmem:[%s1460_s2 + $0x20] ss:$8 sps:$4 sm:$0xff] (!%p271_p2)   ;;  %v1212_v7 = vld [vmem:[%s1460_s2 + $0x34] ss:$8 sps:$4 sm:$0xff] (!%p271_p2)  }
   0x8   : > { %387 = vmatprep.subr.bf16.mxu0 (!%p271_p2), %v1206_v3  ;;  %v1214_v8 = vld [vmem:[%s1460_s2 + $0x30] ss:$8 sps:$4 sm:$0xff] (!%p271_p2)   ;;  %v332_v12 = vshrl.u32 (!%p271_p2), %v331_v11, 7  ;;  %v1246_v13 = vmov (!%p271_p2), 0.0   ;;  %v328_v15 = vld [vmem:[%s1461_s3] sm:$0x3] (!%p271_p2) }
   0x9   : > { %1125 = vmatprep.subr.bf16.mxu1 (!%p271_p2), %v1246_v13  ;;  %vm1247_vm1 = vmmov (!%p271_p2), 0   ;;  %s1248_s29 = smov (!%p271_p2), 48   ;;  %s1249_s30 = smov (!%p271_p2), 64   ;;  %vm431_vm2 = vcmask (!%p271_p2), 130048   ;;  %vm495_vm3 = vcmask (!%p271_p2), 1043456   ;;  %vm479_vm4 = vcmask (!%p271_p2), 64512  }
   0xa   : > { %v333_v14 = vsub.s32 (!%p271_p2), 0, %v332_v12  ;;  %1127 = vmatprep.mubr.msk.bf16.mxu1 (!%p271_p2), %vm1247_vm1, %v1246_v13  ;;  %v337_v23 = vsub.s32 (!%p271_p2), 1, %v332_v12  ;;  %s1250_s9 = smov (!%p271_p2), 80   ;;  %s1251_s10 = smov (!%p271_p2), 112   ;;  %vm886_vm5 = vcmask (!%p271_p2), 261120   ;;  %vm888_vm6 = vcmask (!%p271_p2), 392192  }
   0xb   : > { %388 = vmatpush1.bf16.msra.mxu0 (!%p271_p2), %v1208_v4  ;;  %s1252_s11 = smov (!%p271_p2), 32   ;;  %s1253_s12 = smov (!%p271_p2), 96  }
   0xc   : > { %389 = vmatprep.subr.bf16.mxu0 (!%p271_p2), %v1209_v5  ;;  %v334_v16 = vrot.slane (!%p271_p2), %v328_v15, %v333_v14  ;;  %v338_v24 = vrot.slane (!%p271_p2), %v328_v15, %v337_v23  ;;  %s1254_s13 = smov (!%p271_p2), 16  }
   0xd   : > { %s1468_s27 = smov (!%p306_p3, %s1070_s27), 1 }
   0xe   : > { %s1075_s18 = sshll.u32 %s1468_s27, 3 }
   0xf   : > { %s309_s23 = scalar_lea.vmem %s1458_s0, %s1075_s18  ;;  %390 = vmatpush1.bf16.msra.mxu0 %v1211_v6 }
  0x10   : > { %v1340_v9 = vld [vmem:[%s309_s23] sm:$0xff]  ;;  %391 = vmatprep.subr.bf16.mxu0 %v1212_v7 }
  0x11   : > { %v329_v10 = vpack.c.bf16 %v1340_v9, %v1340_v9 }
  0x13   : > { %392 = vmatpush1.bf16.msra.mxu0 %v1214_v8 }
  0x14   : > { %1149 = vmatprep.subr.bf16.mxu0 %v1246_v13 }
  0x16   : > { %1085 = vmatmul.mubr.msk.bf16.vlgmr.msra.gmra.mrb[0].mxu0 %vm381_vm0, %v329_v10 }
  0x17   : > { %1151 = vmatprep.mubr.msk.bf16.mxu0 %vm1247_vm1, %v1246_v13 }
  0xe9   : > { %v419_v17 = vpop.f32.mrb[0].mxu0 }
  0xea   : > { %v420_v18 = vadd.f32 %v419_v17, %v334_v16  ;;  %v421_v19 = vpop.f32.mrb[1].mxu0 }
  0xeb   : > { %v423_v20 = vpop.f32.mrb[2].mxu0  ;;  %v422_v26 = vadd.f32 %v421_v19, %v338_v24 }
  0xec   : > { %v426_v21 = vpack.c.bf16 %v420_v18, %v420_v18  ;;  %v424_v22 = vpop.f32.mrb[3].mxu0 }
  0xed   : > { %v1357_v28 = vpack.c.bf16 %v422_v26, %v422_v26 }
  0xee   : > { %541 = vrot.lane.b32.xlu1 %v426_v21, %s1248_s29  ;;  %429 = vrot.lane.b32.xlu0 %v426_v21, %s1249_s30 }
  0xef   : > { %v497_v29 = vsel %vm495_vm3, %v1357_v28, 0 }
 0x160   : > { %v430_v25 = vpop.permute.xlu0 %429  ;;  %v542_v41 = vpop.permute.xlu1 %541 }
 0x161   : > { %v436_v27 = vsel %vm431_vm2, %v430_v25, 0  ;;  %v547_v50 = vsel %vm431_vm2, %v542_v41, 0 }
 0x162   : > { %1126 = vmatpush3.bf16.xpose.msra.mxu1 %v436_v27 }
 0x163   : > { %1131 = vmatprep.subr.bf16.mxu1 %v1246_v13 }
 0x169   : > { %1128 = vmatmul.mubr.msk.bf16.vlgmr.msra.gmra.mrb[0].mxu1 %vm431_vm2, %v426_v21 }
 0x16a   : > { %1132 = vmatpush3.bf16.msra.mxu1 %v497_v29  ;;  %1133 = vmatprep.mubr.msk.bf16.mxu1 %vm1247_vm1, %v1246_v13 }
 0x16b   : > { %1137 = vmatprep.subr.bf16.mxu1 %v1246_v13 }
 0x23c   : > { %v472_v30 = vpop.f32.mrb[0].mxu1 }
 0x23d   : > { %v478_v31 = vmul.f32 0.25, %v472_v30  ;;  %v1129_v32 = vpop.f32.mrb[1].mxu1 }
 0x23e   : > { %v475_v33 = vpop.f32.mrb[2].mxu1 }
 0x23f   : > { %v1130_v34 = vpop.f32.mrb[3].mxu1  ;;  %v480_v35 = vsel %vm479_vm4, %v478_v31, -inf }
 0x240   : > { %481 = vmax.xlane.f32.xlu0 %v480_v35 }
 0x256   : > { %762 = vrot.lane.b32.xlu0 %v426_v21, %s1250_s9 }
 0x2cd   : > { %v482_v36 = vpop.xlane.xlu0 %481 }
 0x2ce   : > { %v483_v37 = vsub.f32 %v478_v31, %v482_v36 }
 0x2d0   : > { %v484_v38 = vmul.f32 1.442695, %v483_v37 }
 0x2d1   : > { %v763_v53 = vpop.permute.xlu0 %762 }
 0x2d2   : > { %1219 = vpow2.f32 %v484_v38 }
 0x2dc   : > { %v1220_v39 = vpop.eup %1219 }
 0x2dd   : > { %v486_v40 = vsel %vm479_vm4, %v1220_v39, 0.0 }
 0x2de   : > { %487 = vadd.xlane.f32.xlu1 %v486_v40 }
 0x2ef   : > { %539 = vrot.lane.b32.xlu1 %v426_v21, %s1251_s10 }
 0x2f3   : > { %653 = vrot.lane.b32.xlu1 %v426_v21, %s1252_s11 }
 0x2f7   : > { %651 = vrot.lane.b32.xlu1 %v426_v21, %s1253_s12 }
 0x2fb   : > { %764 = vrot.lane.b32.xlu1 %v426_v21, %s1254_s13 }
 0x36b   : > { %v488_v42 = vpop.xlane.xlu1 %487 }
 0x36c   : > { %1221 = vrcp.f32 %v488_v42 }
 0x36f   : > { %v540_v43 = vpop.permute.xlu1 %539 }
 0x373   : > { %v654_v44 = vpop.permute.xlu1 %653 }
 0x374   : > { %v659_v45 = vsel %vm431_vm2, %v654_v44, 0 }
 0x375   : > { %1150 = vmatpush3.bf16.xpose.msra.mxu0 %v659_v45 }
 0x376   : > { %v1222_v46 = vpop.eup %1221  ;;  %1161 = vmatprep.subr.bf16.mxu0 %v1246_v13 }
 0x377   : > { %v490_v47 = vmul.f32 %v1222_v46, %v1220_v39  ;;  %v652_v48 = vpop.permute.xlu1 %651 }
 0x379   : > { %v491_v49 = vpack.c.bf16 %v490_v47, %v490_v47  ;;  %v1215_v47 = vld [vmem:[%s1462_s4] sm:$0xff]  }
 0x37b   : > { %1134 = vmatmul.mubr.msk.bf16.vlgmr.msra.gmra.mrb[4].mxu1 %vm479_vm4, %v491_v49  ;;  %v765_v51 = vpop.permute.xlu1 %764  ;;  %v1217_v49 = vld [vmem:[%s1462_s4 + $0x10] sm:$0xff]  }
 0x37c   : > { %1138 = vmatpush3.bf16.xpose.msra.mxu1 %v547_v50  ;;  %v770_v52 = vsel %vm431_vm2, %v765_v51, 0  ;;  %1152 = vmatmul.mubr.msk.bf16.vlgmr.msra.gmra.mrb[4].mxu0 %vm431_vm2, %v652_v48  ;;  %v1216_v48 = vld [vmem:[%s1462_s4 + $0x8] sm:$0xff]  }
 0x37d   : > { %1162 = vmatpush3.bf16.xpose.msra.mxu0 %v770_v52  ;;  %1139 = vmatprep.mubr.msk.bf16.mxu1 %vm1247_vm1, %v1246_v13 }
 0x37e   : > { %1163 = vmatprep.mubr.msk.bf16.mxu0 %vm1247_vm1, %v1246_v13  ;;  %1143 = vmatprep.subr.bf16.mxu1 %v1246_v13 }
 0x37f   : > { %1173 = vmatprep.subr.bf16.mxu0 %v1246_v13 }
 0x383   : > { %1140 = vmatmul.mubr.msk.bf16.vlgmr.msra.gmra.mrb[8].mxu1 %vm431_vm2, %v540_v43 }
 0x384   : > { %1164 = vmatmul.mubr.msk.bf16.vlgmr.msra.gmra.mrb[8].mxu0 %vm431_vm2, %v763_v53  ;;  %1145 = vmatprep.mubr.msk.bf16.mxu1 %vm1247_vm1, %v1246_v13 }
 0x385   : > { %1181 = vmatprep.mubr.msk.bf16.mxu0 %vm1247_vm1, %v1246_v13  ;;  %1174 = vmatpush3.bf16.msra.mxu0 %v1215_v47 }
 0x386   : > { %1175 = vmatprep.subr.bf16.mxu0 %v1246_v13 }
 0x389   : > { %1176 = vmatpush3.bf16.msra.mxu0 %v1216_v48 }
 0x38a   : > { %1177 = vmatprep.subr.bf16.mxu0 %v1246_v13 }
 0x38d   : > { %1178 = vmatpush3.bf16.msra.mxu0 %v1217_v49 }
 0x38e   : > { %1179 = vmatprep.subr.bf16.mxu0 %v1246_v13 }
 0x44e   : > { %v1390_v54 = vpop.f32.mrb[4].mxu1 }
 0x44f   : > { %v1135_v55 = vpop.f32.mrb[5].mxu1  ;;  %v695_v56 = vpop.f32.mrb[4].mxu0 }
 0x450   : > { %v701_v57 = vmul.f32 0.25, %v695_v56  ;;  %v536_v58 = vpop.f32.mrb[6].mxu1  ;;  %v1153_v59 = vpop.f32.mrb[5].mxu0  ;;  %v1218_v55 = vld [vmem:[%s1462_s4 + $0x18] sm:$0xff]  }
 0x451   : > { %v1136_v60 = vpop.f32.mrb[7].mxu1  ;;  %v698_v61 = vpop.f32.mrb[6].mxu0  ;;  %1180 = vmatpush3.bf16.msra.mxu0 %v1218_v55 }
 0x452   : > { %v1154_v62 = vpop.f32.mrb[7].mxu0  ;;  %v702_v63 = vsel %vm479_vm4, %v701_v57, -inf }
 0x453   : > { %703 = vmax.xlane.f32.xlu0 %v702_v63 }
 0x456   : > { %v583_v0 = vpop.f32.mrb[8].mxu1 }
 0x457   : > { %v589_v1 = vmul.f32 0.25, %v583_v0  ;;  %v1141_v2 = vpop.f32.mrb[9].mxu1  ;;  %v806_v3 = vpop.f32.mrb[8].mxu0 }
 0x458   : > { %v586_v4 = vpop.f32.mrb[10].mxu1  ;;  %v1165_v5 = vpop.f32.mrb[9].mxu0  ;;  %v812_v6 = vmul.f32 0.25, %v806_v3 }
 0x459   : > { %v1142_v7 = vpop.f32.mrb[11].mxu1  ;;  %v809_v8 = vpop.f32.mrb[10].mxu0  ;;  %v590_v10 = vsel %vm479_vm4, %v589_v1, -inf }
 0x45a   : > { %v1166_v11 = vpop.f32.mrb[11].mxu0  ;;  %591 = vmax.xlane.f32.xlu1 %v590_v10  ;;  %v813_v12 = vsel %vm479_vm4, %v812_v6, -inf }
 0x45e   : > { %814 = vmax.xlane.f32.xlu1 %v813_v12 }
 0x469   : > { %603 = vrot.lane.b32.xlu0 %v1357_v28, %s1251_s10  ;;  %s317_s10 = scalar_lea.vmem %s1466_s8, %s1075_s18 }
 0x4e0   : > { %v704_v14 = vpop.xlane.xlu0 %703 }
 0x4e1   : > { %v705_v15 = vsub.f32 %v701_v57, %v704_v14 }
 0x4e3   : > { %v706_v16 = vmul.f32 1.442695, %v705_v15 }
 0x4e4   : > { %v604_v17 = vpop.permute.xlu0 %603 }
 0x4e5   : > { %1223 = vpow2.f32 %v706_v16  ;;  %v609_v18 = vsel %vm495_vm3, %v604_v17, 0 }
 0x4e6   : > { %1144 = vmatpush3.bf16.msra.mxu1 %v609_v18 }
 0x4e7   : > { %v592_v19 = vpop.xlane.xlu1 %591  ;;  %1155 = vmatprep.subr.bf16.mxu1 %v1246_v13 }
 0x4e8   : > { %v593_v20 = vsub.f32 %v589_v1, %v592_v19 }
 0x4ea   : > { %v594_v23 = vmul.f32 1.442695, %v593_v20 }
 0x4eb   : > { %v815_v21 = vpop.xlane.xlu1 %814 }
 0x4ec   : > { %v816_v22 = vsub.f32 %v812_v6, %v815_v21  ;;  %v1094_v6 = vld [vmem:[%s1463_s5] ss:$0 sm:$0xff] }
 0x4ee   : > { %v817_v24 = vmul.f32 1.442695, %v816_v22 }
 0x4ef   : > { %v1224_v25 = vpop.eup %1223 }
 0x4f0   : > { %1225 = vpow2.f32 %v817_v24  ;;  %v708_v26 = vsel %vm479_vm4, %v1224_v25, 0.0 }
 0x4f1   : > { %709 = vadd.xlane.f32.xlu1 %v708_v26  ;;  %1227 = vpow2.f32 %v594_v23 }
 0x4fa   : > { %v1226_v27 = vpop.eup %1225 }
 0x4fb   : > { %v819_v29 = vsel %vm479_vm4, %v1226_v27, 0.0  ;;  %v1228_v30 = vpop.eup %1227 }
 0x4fc   : > { %820 = vadd.xlane.f32.xlu1 %v819_v29  ;;  %v596_v31 = vsel %vm479_vm4, %v1228_v30, 0.0 }
 0x500   : > { %597 = vadd.xlane.f32.xlu1 %v596_v31 }
 0x511   : > { %714 = vrot.lane.b32.xlu1 %v1357_v28, %s1253_s12 }
 0x515   : > { %825 = vrot.lane.b32.xlu1 %v1357_v28, %s1250_s9 }
 0x57e   : > { %v710_v32 = vpop.xlane.xlu1 %709 }
 0x589   : > { %v821_v33 = vpop.xlane.xlu1 %820 }
 0x58d   : > { %v598_v34 = vpop.xlane.xlu1 %597 }
 0x58e   : > { %1229 = vrcp.f32 %v598_v34 }
 0x58f   : > { %1231 = vrcp.f32 %v710_v32 }
 0x590   : > { %1233 = vrcp.f32 %v821_v33 }
 0x591   : > { %v715_v37 = vpop.permute.xlu1 %714 }
 0x592   : > { %v720_v40 = vsel %vm495_vm3, %v715_v37, 0 }
 0x595   : > { %v826_v41 = vpop.permute.xlu1 %825 }
 0x596   : > { %v831_v44 = vsel %vm495_vm3, %v826_v41, 0 }
 0x598   : > { %v1230_v35 = vpop.eup %1229 }
 0x599   : > { %v600_v36 = vmul.f32 %v1230_v35, %v1228_v30  ;;  %v1232_v39 = vpop.eup %1231 }
 0x59a   : > { %v712_v28 = vmul.f32 %v1232_v39, %v1224_v25  ;;  %v1234_v43 = vpop.eup %1233  ;;  %v1101_v25 = vld [vmem:[%s1465_s7] ss:$0 sm:$0xff] }
 0x59b   : > { %v601_v38 = vpack.c.bf16 %v600_v36, %v600_v36  ;;  %v823_v45 = vmul.f32 %v1234_v43, %v1226_v27 }
 0x59c   : > { %v713_v42 = vpack.c.bf16 %v712_v28, %v712_v28 }
 0x59d   : > { %1146 = vmatmul.mubr.msk.bf16.vlgmr.msra.gmra.mrb[12].mxu1 %vm479_vm4, %v601_v38  ;;  %v824_v46 = vpack.c.bf16 %v823_v45, %v823_v45 }
 0x59e   : > { %1156 = vmatpush3.bf16.msra.mxu1 %v720_v40  ;;  %1157 = vmatprep.mubr.msk.bf16.mxu1 %vm1247_vm1, %v1246_v13 }
 0x59f   : > { %1167 = vmatprep.subr.bf16.mxu1 %v1246_v13 }
 0x5a5   : > { %1158 = vmatmul.mubr.msk.bf16.vlgmr.msra.gmra.mrb[16].mxu1 %vm479_vm4, %v713_v42 }
 0x5a6   : > { %1168 = vmatpush3.bf16.msra.mxu1 %v831_v44  ;;  %1169 = vmatprep.mubr.msk.bf16.mxu1 %vm1247_vm1, %v1246_v13 }
 0x5ad   : > { %1170 = vmatmul.mubr.msk.bf16.vlgmr.msra.gmra.mrb[20].mxu1 %vm479_vm4, %v824_v46 }
 0x670   : > { %v645_v50 = vpop.f32.mrb[12].mxu1 }
 0x671   : > { %874 = vrot.lane.b32.xlu0 %v645_v50, %s1254_s13  ;;  %v1147_v51 = vpop.f32.mrb[13].mxu1 }
 0x672   : > { %v648_v52 = vpop.f32.mrb[14].mxu1 }
 0x673   : > { %v1148_v53 = vpop.f32.mrb[15].mxu1 }
 0x678   : > { %v756_v56 = vpop.f32.mrb[16].mxu1 }
 0x679   : > { %878 = vrot.lane.b32.xlu1 %v756_v56, %s1252_s11  ;;  %v1159_v57 = vpop.f32.mrb[17].mxu1 }
 0x67a   : > { %v759_v58 = vpop.f32.mrb[18].mxu1 }
 0x67b   : > { %v1160_v59 = vpop.f32.mrb[19].mxu1 }
 0x680   : > { %v867_v60 = vpop.f32.mrb[20].mxu1 }
 0x681   : > { %882 = vrot.lane.b32.xlu0 %v867_v60, %s1248_s29  ;;  %v1171_v61 = vpop.f32.mrb[21].mxu1 }
 0x682   : > { %v870_v62 = vpop.f32.mrb[22].mxu1 }
 0x683   : > { %v1172_v63 = vpop.f32.mrb[23].mxu1 }
 0x6e3   : > { %v875_v0 = vpop.permute.xlu0 %874 }
 0x6e4   : > { %v885_v1 = vsel %vm431_vm2, %v1390_v54, %v875_v0 }
 0x6eb   : > { %v879_v13 = vpop.permute.xlu1 %878 }
 0x6ec   : > { %v887_v2 = vsel %vm886_vm5, %v885_v1, %v879_v13 }
 0x6f3   : > { %v883_v3 = vpop.permute.xlu0 %882 }
 0x6f4   : > { %v889_v4 = vsel %vm888_vm6, %v887_v2, %v883_v3 }
 0x6f5   : > { %v890_v5 = vpack.c.bf16 %v889_v4, %v889_v4 }
 0x6f7   : > { %1182 = vmatmul.mubr.msk.bf16.vlgmr.msra.gmra.mrb[12].mxu0 %vm381_vm0, %v890_v5 }
 0x7ca   : > { %v967_v7 = vpop.f32.mrb[12].mxu0 }
 0x7cb   : > { %v968_v8 = vadd.f32 %v1094_v6, %v967_v7  ;;  %v1183_v10 = vpop.f32.mrb[13].mxu0 }
 0x7cc   : > { %v970_v11 = vpop.f32.mrb[14].mxu0 }
 0x7cd   : > { %v1184_v12 = vpop.f32.mrb[15].mxu0  ;;  %v973_v14 = vadd.f32 %v968_v8, %v1340_v9  ;;  %v1100_v9 = vld [vmem:[%s1464_s6] ss:$0 sm:$0xff] }
 0x7cf   : > { %v974_v15 = vsel %vm381_vm0, %v973_v14, 0.0 }
 0x7d0   : > { %975 = vadd.xlane.f32.xlu1 %v974_v15 }
 0x85d   : > { %v976_v54 = vpop.xlane.xlu1 %975 }
 0x85e   : > { %v978_v16 = vmul.f32 0.015625, %v976_v54 }
 0x860   : > { %v979_v17 = vsub.f32 %v973_v14, %v978_v16 }
 0x862   : > { %v980_v18 = vmul.f32 %v979_v17, %v979_v17 }
 0x864   : > { %v981_v19 = vsel %vm381_vm0, %v980_v18, 0.0 }
 0x865   : > { %982 = vadd.xlane.f32.xlu0 %v981_v19 }
 0x8f2   : > { %v983_v20 = vpop.xlane.xlu0 %982 }
 0x8f3   : > { %v984_v21 = vmul.f32 0.015625, %v983_v20 }
 0x8f5   : > { %v985_v22 = vadd.f32 1e-05, %v984_v21 }
 0x8f7   : > { %1235 = vrsqrt.f32 %v985_v22 }
 0x901   : > { %v1236_v23 = vpop.eup %1235 }
 0x902   : > { %v987_v24 = vmul.f32 %v1236_v23, %v979_v17 }
 0x904   : > { %v995_v26 = vmul.f32 %v1100_v9, %v987_v24 }
 0x906   : > { %v1003_v27 = vadd.f32 %v1101_v25, %v995_v26 }
 0x908   : > { %1004 = vst.msk [vmem:[%s317_s10] sm:$0xff] %vm381_vm0, %v1003_v27 }
 0x909 PF: > { %s18_s26 = sadd.s32 1, %s1243_s26  }
 0x90a   : > { %p15_p4 = scmp.ge.s32.totalorder %s18_s26, 4  }
 0x90c   :  { %17 = sbr.rel (!%p15_p4) target bundleno = 1 (0x1), region = 85 }

// kernel: transformer_decoder.13
= control target key start
LH: loop header
LB: loop body
LE: loop exit
PB: predicated region body
PF: predicated region fallthrough
CT: control target
= control target key end

     0   :  { %v223_v1 = vmov 0.0   ;;  %vm224_vm0 = vmmov 0   ;;  %s288_s0 = inlined_call_operand.vmem [shape: f32[16,64], index: 0, kind: input, shape index: {}]   ;;  %s289_s1 = inlined_call_operand.vmem [shape: bf16[64,64], index: 1, kind: input, shape index: {}]   ;;  %s290_s2 = inlined_call_operand.vmem [shape: f32[1,64], index: 2, kind: input, shape index: {}]   ;;  %s291_s3 = inlined_call_operand.hbm [shape: f32[16,64], index: 3, kind: output, shape index: {}]  }
   0x1   :  { %v187_v0 = vld [vmem:[%s289_s1] sm:$0xff]   ;;  %170 = vmatprep.subr.bf16.mxu0 %v223_v1  ;;  %v188_v2 = vld [vmem:[%s289_s1 + $0x8] sm:$0xff]   ;;  %178 = vmatprep.mubr.msk.bf16.mxu0 %vm224_vm0, %v223_v1 }
   0x2   :  { %171 = vmatpush3.bf16.msra.mxu0 %v187_v0 }
   0x3   :  { %172 = vmatprep.subr.bf16.mxu0 %v223_v1 }
   0x4   :  { %8 = vsyncpa [#allocation3], 0  ;;  %v189_v3 = vld [vmem:[%s289_s1 + $0x10] sm:$0xff]   ;;  %v190_v4 = vld [vmem:[%s289_s1 + $0x18] sm:$0xff]   ;;  %vm58_vm1 = vcmask 523264  }
   0x5   :  { %v16_v5 = vld [vmem:[%s288_s0] sm:$0xff]  ;;  %v17_v6 = vld [vmem:[%s288_s0 + $0x8] sm:$0xff]  ;;  %s225_s0 = smov [#allocation2]  }
   0x6   :  { %173 = vmatpush3.bf16.msra.mxu0 %v188_v2  ;;  %v18_v7 = vpack.c.bf16 %v17_v6, %v16_v5  ;;  %v159_v8 = vld [vmem:[%s290_s2] ss:$0 sm:$0xff]  ;;  %s148_s1 = sshll.u32 %s225_s0, 4  ;;  %s149_s1 = int_to_ptr.vmem [resolvable:$true] %s148_s1 }
   0x7   :  { %174 = vmatprep.subr.bf16.mxu0 %v223_v1  ;;  %s199_s2 = scalar_lea.vmem %s149_s1, 256  ;;  %p204_p1 = scmp.lt.s32.totalorder %s149_s1, %s149_s1 }
   0x8   :  { %p200_p0 = scmp.ne.s32.totalorder %s149_s1, %s199_s2  ;;  %p205_p2 = scmp.lt.s32.totalorder %s199_s2, %s199_s2 }
   0xa   :  { %175 = vmatpush3.bf16.msra.mxu0 %v189_v3  ;;  %p206_p3 = por %p205_p2, %p204_p1 }
   0xb   :  { %176 = vmatprep.subr.bf16.mxu0 %v223_v1 }
   0xc   :  { %p207_p4 = pnand %p206_p3, %p200_p0 }
   0xe   :  { %177 = vmatpush3.bf16.msra.mxu0 %v190_v4 }
  0x11   :  { %179 = vmatmul.mubr.msk.bf16.vlgmr.msra.gmra.mrb[0].mxu0 %vm58_vm1, %v18_v7 }
  0xe4   :  { %v96_v9 = vpop.f32.mrb[0].mxu0 }
  0xe5   :  { %v97_v10 = vadd.f32 %v159_v8, %v96_v9  ;;  %v180_v11 = vpop.f32.mrb[1].mxu0 }
  0xe6   :  { %v99_v12 = vpop.f32.mrb[2].mxu0 }
  0xe7   :  { %v103_v13 = vsel %vm58_vm1, %v97_v10, -inf  ;;  %v100_v14 = vadd.f32 %v159_v8, %v99_v12  ;;  %v181_v15 = vpop.f32.mrb[3].mxu0 }
  0xe8   :  { %v104_v16 = vrot.slane %v103_v13, 4 }
  0xe9   :  { %v123_v17 = vsel %vm58_vm1, %v100_v14, -inf }
  0xea   :  { %v105_v18 = vmax.f32 %v103_v13, %v104_v16  ;;  %v124_v19 = vrot.slane %v123_v17, 4 }
  0xec   :  { %v106_v20 = vrot.slane %v105_v18, 2  ;;  %v125_v21 = vmax.f32 %v123_v17, %v124_v19 }
  0xee   :  { %v107_v22 = vmax.f32 %v105_v18, %v106_v20  ;;  %v126_v23 = vrot.slane %v125_v21, 2 }
  0xf0   :  { %v108_v24 = vrot.slane %v107_v22, 1  ;;  %v127_v25 = vmax.f32 %v125_v21, %v126_v23 }
  0xf2   :  { %v109_v26 = vmax.f32 %v107_v22, %v108_v24  ;;  %v128_v27 = vrot.slane %v127_v25, 1 }
  0xf4   :  { %v110_v28 = vsub.f32 %v97_v10, %v109_v26  ;;  %v129_v29 = vmax.f32 %v127_v25, %v128_v27 }
  0xf6   :  { %v111_v30 = vmul.f32 1.442695, %v110_v28  ;;  %v130_v31 = vsub.f32 %v100_v14, %v129_v29 }
  0xf8   :  { %191 = vpow2.f32 %v111_v30  ;;  %v131_v32 = vmul.f32 1.442695, %v130_v31 }
  0xfa   :  { %193 = vpow2.f32 %v131_v32 }
 0x102   :  { %v192_v33 = vpop.eup %191 }
 0x103   :  { %v113_v34 = vsel %vm58_vm1, %v192_v33, 0.0 }
 0x104   :  { %v194_v35 = vpop.eup %193  ;;  %v114_v36 = vrot.slane %v113_v34, 4 }
 0x105   :  { %v133_v37 = vsel %vm58_vm1, %v194_v35, 0.0 }
 0x106   :  { %v115_v38 = vadd.f32 %v114_v36, %v113_v34  ;;  %v134_v39 = vrot.slane %v133_v37, 4 }
 0x108   :  { %v116_v40 = vrot.slane %v115_v38, 2  ;;  %v135_v41 = vadd.f32 %v134_v39, %v133_v37 }
 0x10a   :  { %v117_v42 = vadd.f32 %v116_v40, %v115_v38  ;;  %v136_v43 = vrot.slane %v135_v41, 2 }
 0x10c   :  { %v118_v44 = vrot.slane %v117_v42, 1  ;;  %v137_v45 = vadd.f32 %v136_v43, %v135_v41 }
 0x10e   :  { %v119_v46 = vadd.f32 %v118_v44, %v117_v42  ;;  %v138_v47 = vrot.slane %v137_v45, 1 }
 0x110   :  { %195 = vrcp.f32 %v119_v46  ;;  %v139_v48 = vadd.f32 %v138_v47, %v137_v45 }
 0x112   :  { %197 = vrcp.f32 %v139_v48 }
 0x11a   :  { %v196_v49 = vpop.eup %195 }
 0x11b   :  { %v121_v50 = vmul.f32 %v196_v49, %v192_v33 }
 0x11c   :  { %v198_v51 = vpop.eup %197 }
 0x11d   :  { %122 = vst.msk [vmem:[#allocation2] sm:$0xff] %vm58_vm1, %v121_v50  ;;  %v141_v52 = vmul.f32 %v198_v51, %v194_v35 }
 0x11f   :  { %142 = vst.msk [vmem:[#allocation2 + $0x8] sm:$0xff] %vm58_vm1, %v141_v52 }
 0x120   :  { %210 = shalt.err (!%p207_p4)
}
 0x121   :  { %s211_s28 = scalar_lea.hbm %s291_s3, 256 }
 0x122   :  { %p212_p5 = scmp.ne.s32.totalorder %s291_s3, %s211_s28  ;;  %p215_p6 = scmp.lt.u32.totalorder %s211_s28, %s291_s3 }
 0x124   :  { %p217_p7 = pnand %p215_p6, %p212_p5 }
 0x126   :  { %220 = shalt.err (!%p217_p7)
}
 0x127   :  { %s226_s6 = smov 128   ;;  %s227_s7 = smov 8  }
 0x128   :  { %154 = dma.vmem_to_hbm [thread:$0]  %s149_s1, 256, %s291_s3, [#allocation3], %s226_s6, %s226_s6, %s227_s7  }
 0x129   :  { %221 = dma.done.wait [#allocation3], 256  }
 0x12a   :  { %222 = vsyncadd [#allocation3], 4294967040 }
 0x12b   :  { %158 = vsyncpa [#allocation3], 1 }

</bundles_post_ra>
